<compile_context>
chip_gen: v5e
topology: v5e:2x2
jax: 0.10.0
libtpu: 0.0.40
codegen_flags: <defaults>
</compile_context>

<pallas_src>
import math

import jax
import jax.numpy as jnp
from jax import lax
from jax.experimental import pallas as pl
from jax.experimental.pallas import tpu as pltpu

C_OUT = 5            # conv1 output channels
KSZ = 3              # conv kernel size
H = W = 28           # spatial size implied by fc1 (5 * 14 * 14)
PH = 14              # pooled height
PWP = 16             # pooled width padded 14 -> 16 (sublane-tile aligned)
FEAT = C_OUT * PH * PWP   # 1120 (fc1 input width after padding)
HIDDEN = 200
N_CLASSES = 10
ROW_CHUNK = 7        # pooled rows processed per inner loop step (14 = 2 * 7)
N_CHUNKS = PH // ROW_CHUNK


# ------------------------------ Pallas kernel ------------------------------ #

def fused_kernel(x_ref, cw_ref, cb_ref, w1_ref, b1_ref, w2_ref, b2_ref,
                 o_ref, feat_ref):
    """conv3x3(pad=1) + bias + ReLU + maxpool2x2 + fc1 + ReLU + fc2 for one
    batch tile of BT images (batch in the lane dimension).

    x_ref   : (4, 15, 17, BT) f32 VMEM -- zero-padded image, rows/cols 2x2
                                          de-interleaved: x[p, ri, ci, n] =
                                          xpad[2*ri + p//2, 2*ci + p%2, n]
    cw_ref  : (45,) f32 SMEM           -- conv weights, layout [c*9 + di*3 + dj]
    cb_ref  : (5,)  f32 SMEM           -- conv bias
    w1_ref  : (200, 1120) bf16 VMEM    -- fc1 weights (pooled W padded 14->16)
    b1_ref  : (200, 1)  f32 VMEM
    w2_ref  : (10, 200) f32 VMEM
    b2_ref  : (10, 1)   f32 VMEM
    o_ref   : (10, BT)  f32 VMEM       -- logits^T, batch in lanes
    feat_ref: (1120, BT) bf16 VMEM scratch -- pooled features, NCHW flatten order
    """

    def chan_body(c, carry):
        bias = cb_ref[c]
        # hoist the 9 conv-weight scalar reads out of the chunk/shift/tap loops
        wts = [cw_ref[c * 9 + t] for t in range(9)]
        feat_base = c * (PH * PWP)

        def chunk_body(ck, carry2):
            row0 = ck * ROW_CHUNK
            # max over the 4 pool shifts of the per-shift conv accumulator;
            # bias + ReLU applied ONCE afterwards (monotone => exact).
            pooled = None
            for a in range(2):              # pool row shift
                for b in range(2):          # pool col shift
                    acc = None
                    for di in range(KSZ):
                        for dj in range(KSZ):
                            r = a + di      # row offset into padded image (0..3)
                            s = b + dj      # col offset into padded image (0..3)
                            # slab[i, j, n] = xpad[2*(row0+i) + r, 2*j + s, n]
                            slab = x_ref[(r % 2) * 2 + (s % 2),
                                         pl.ds(row0 + r // 2, ROW_CHUNK),
                                         pl.ds(s // 2, PWP), :]
                            term = slab * wts[di * 3 + dj]
                            acc = term if acc is None else acc + term
                    pooled = acc if pooled is None else jnp.maximum(pooled, acc)
            out = jnp.maximum(pooled + bias, 0.0).astype(feat_ref.dtype)

            # bf16 stores into the flat feature scratch (PyTorch NCHW flatten
            # order; junk pooled cols 14,15 hit zeroed fc1 columns). Offsets are
            # multiples of PWP=16 -> bf16 sublane-tile aligned, no reshapes.
            for i in range(ROW_CHUNK):
                off = pl.multiple_of(feat_base + (row0 + i) * PWP, PWP)
                feat_ref[pl.ds(off, PWP), :] = out[i]
            return carry2

        # fori_loop (not a Python loop) so each chunk's live vregs are bounded.
        lax.fori_loop(0, N_CHUNKS, chunk_body, 0)
        return carry

    lax.fori_loop(0, C_OUT, chan_body, 0)

    # fc1 (bf16 x bf16 -> f32 acc on MXU) -> ReLU -> fc2 (f32), batch in lanes.
    h = jnp.dot(w1_ref[...], feat_ref[...], preferred_element_type=jnp.float32)
    h = jnp.maximum(h + b1_ref[...], 0.0)
    logits = jnp.dot(w2_ref[...], h, preferred_element_type=jnp.float32) + b2_ref[...]
    o_ref[...] = logits.astype(o_ref.dtype)


# ------------------------------ wrapper glue ------------------------------- #

def pack_params(params):
    """One-time re-layout of the PyTorch-style parameters for the kernel."""
    conv_w, conv_b, fc1_w, fc1_b, fc2_w, fc2_b = params
    # fc1 weights with the pooled width padded 14 -> 16 (zero columns for the
    # junk pooled columns produced in-kernel); bf16 MXU operand.
    w1p = jnp.pad(fc1_w.reshape(HIDDEN, C_OUT, PH, PH),
                  ((0, 0), (0, 0), (0, 0), (0, PWP - PH)))
    w1p = w1p.reshape(HIDDEN, FEAT).astype(jnp.bfloat16)
    return (conv_w.reshape(-1).astype(jnp.float32),        # (45,)
            conv_b.astype(jnp.float32),                    # (5,)
            w1p,                                           # (200, 1120) bf16
            fc1_b.reshape(HIDDEN, 1).astype(jnp.float32),  # (200, 1)
            fc2_w.astype(jnp.float32),                     # (10, 200)
            fc2_b.reshape(N_CLASSES, 1).astype(jnp.float32))


def a1dt_forward(x, packed):
    cw, cb, w1p, b1, w2, b2 = packed
    B = x.shape[0]
    # BT=256 fills the 256-wide MXU on v6e/v7x and halves grid-step overhead;
    # fall back to 128 for small batches so the "parallel" batch axis still has
    # >=2 steps to shard across v7x's two TensorCores.
    bt = 256 if B >= 512 else 128
    Bp = pl.cdiv(B, bt) * bt

    # (B,1,28,28) -> zero-padded, 2x2 row/col de-interleaved (4,15,17,Bp) with
    # batch in the last (lane) dim. Doing the de-interleave *before* moving
    # batch to minor leaves only one materializing transpose in XLA.
    xpad = jnp.pad(x[:, 0].astype(jnp.float32),
                   ((0, Bp - B), (1, 1), (1, 5)))                 # (Bp, 30, 34)
    xq = xpad.reshape(Bp, 15, 2, 17, 2).transpose(2, 4, 1, 3, 0)  # (2,2,15,17,Bp)
    xq = xq.reshape(4, 15, 17, Bp)

    logits_t = pl.pallas_call(
        fused_kernel,
        out_shape=jax.ShapeDtypeStruct((N_CLASSES, Bp), jnp.float32),
        grid=(Bp // bt,),
        in_specs=[
            pl.BlockSpec((4, 15, 17, bt), lambda i: (0, 0, 0, i)),   # images
            pl.BlockSpec(memory_space=pltpu.MemorySpace.SMEM),        # conv w
            pl.BlockSpec(memory_space=pltpu.MemorySpace.SMEM),        # conv b
            pl.BlockSpec((HIDDEN, FEAT), lambda i: (0, 0)),           # fc1 w (resident)
            pl.BlockSpec((HIDDEN, 1), lambda i: (0, 0)),              # fc1 b
            pl.BlockSpec((N_CLASSES, HIDDEN), lambda i: (0, 0)),      # fc2 w
            pl.BlockSpec((N_CLASSES, 1), lambda i: (0, 0)),           # fc2 b
        ],
        out_specs=pl.BlockSpec((N_CLASSES, bt), lambda i: (0, i)),
        scratch_shapes=[pltpu.VMEM((FEAT, bt), jnp.bfloat16)],
        compiler_params=pltpu.CompilerParams(
            dimension_semantics=("parallel",)),
    )(xq, cw, cb, w1p, b1, w2, b2)

    return logits_t[:, :B].T   # (B, N_CLASSES)


# --------------------------- deterministic init ---------------------------- #

def xavier_uniform(key, shape, fan_in, fan_out, gain):
    a = gain * math.sqrt(6.0 / (fan_in + fan_out))
    return jax.random.uniform(key, shape, jnp.float32, -a, a)


def init_params(key):
    ks = jax.random.split(key, 6)
    g = math.sqrt(2.0)  # torch calculate_gain('relu')
    conv_w = xavier_uniform(ks[0], (C_OUT, 1, KSZ, KSZ), KSZ * KSZ, C_OUT * KSZ * KSZ, g)
    conv_b = jax.random.uniform(ks[1], (C_OUT,), jnp.float32,
                                -1.0 / math.sqrt(9.0), 1.0 / math.sqrt(9.0))
    fc1_w = xavier_uniform(ks[2], (HIDDEN, C_OUT * PH * PH), C_OUT * PH * PH, HIDDEN, g)
    fc1_b = jax.random.uniform(ks[3], (HIDDEN,), jnp.float32,
                               -1.0 / math.sqrt(C_OUT * PH * PH),
                               1.0 / math.sqrt(C_OUT * PH * PH))
    fc2_w = xavier_uniform(ks[4], (N_CLASSES, HIDDEN), HIDDEN, N_CLASSES, g)
    fc2_b = jax.random.uniform(ks[5], (N_CLASSES,), jnp.float32,
                               -1.0 / math.sqrt(HIDDEN), 1.0 / math.sqrt(HIDDEN))
    return conv_w, conv_b, fc1_w, fc1_b, fc2_w, fc2_b


def reference_forward(x, params, *, fc1_bf16_inputs=False):
    """Pure-JAX reference mirroring the PyTorch forward (NCHW), full f32.
    With fc1_bf16_inputs=True the fc1 operands get the same bf16 rounding the
    kernel applies (f32 accumulation), isolating kernel bugs from that
    documented approximation."""
    conv_w, conv_b, fc1_w, fc1_b, fc2_w, fc2_b = params
    hp = lax.Precision.HIGHEST
    conv = lax.conv_general_dilated(
        x, conv_w, window_strides=(1, 1), padding=((1, 1), (1, 1)),
        dimension_numbers=("NCHW", "OIHW", "NCHW"), precision=hp)
    conv = conv + conv_b[None, :, None, None]
    r = jnp.maximum(conv, 0.0)
    pooled = lax.reduce_window(r, -jnp.inf, lax.max,
                               (1, 1, 2, 2), (1, 1, 2, 2), "VALID")
    flat = pooled.reshape(x.shape[0], -1)
    w1 = fc1_w
    if fc1_bf16_inputs:
        flat = flat.astype(jnp.bfloat16).astype(jnp.float32)
        w1 = w1.astype(jnp.bfloat16).astype(jnp.float32)
    h = jnp.maximum(jnp.dot(flat, w1.T, precision=hp) + fc1_b, 0.0)
    return jnp.dot(h, fc2_w.T, precision=hp) + fc2_b


if __name__ == "__main__":
    key = jax.random.PRNGKey(0)
    kp, kx = jax.random.split(key)
    params = init_params(kp)
    packed = pack_params(params)
    x = jax.random.normal(kx, (2, 1, 28, 28), jnp.float32)  # batch=2, NCHW

    fwd = jax.jit(a1dt_forward)
    out = jax.block_until_ready(fwd(x, packed))
    assert out.shape == (2, N_CLASSES)

    # Tight check vs. a reference with the same bf16 rounding on fc1 operands.
    ref_q = reference_forward(x, params, fc1_bf16_inputs=True)
    err_q = jnp.max(jnp.abs(out - ref_q))
    assert jnp.allclose(out, ref_q, atol=2e-3, rtol=2e-3), err_q

    # Loose sanity check vs. the exact f32 module (difference == bf16-fc1 rounding).
    ref = reference_forward(x, params)
    err = jnp.max(jnp.abs(out - ref))
    assert jnp.allclose(out, ref, atol=2.5e-1, rtol=1e-1), err

    print("KERNEL_OK")
</pallas_src>

<mosaic_0001>
module attributes {stable_mosaic.version = 11 : i64} {
  func.func @fused_kernel(%arg0: i32, %arg1: memref<4x15x17x128xf32, #tpu.memory_space<vmem>>, %arg2: memref<45xf32, #tpu.memory_space<smem>>, %arg3: memref<5xf32, #tpu.memory_space<smem>>, %arg4: memref<200x1120xbf16, #tpu.memory_space<vmem>>, %arg5: memref<200x1xf32, #tpu.memory_space<vmem>>, %arg6: memref<10x200xf32, #tpu.memory_space<vmem>>, %arg7: memref<10x1xf32, #tpu.memory_space<vmem>>, %arg8: memref<10x128xf32, #tpu.memory_space<vmem>>, %arg9: memref<1120x128xbf16, #tpu.memory_space<vmem>>) attributes {dimension_semantics = [#tpu.dimension_semantics<parallel>], iteration_bounds = array<i64: 1>, scalar_prefetch = 0 : i64, scratch_operands = 1 : i64, tpu.core_type = #tpu.core_type<tc>, window_params = [{transform_indices = @transform_0, window_bounds = array<i64: 4, 15, 17, 128>}, {transform_indices = @transform_1, window_bounds = array<i64: 45>}, {transform_indices = @transform_2, window_bounds = array<i64: 5>}, {pipeline_mode = #tpu.pipeline_mode<synchronous>, transform_indices = @transform_3, window_bounds = array<i64: 200, 1120>}, {pipeline_mode = #tpu.pipeline_mode<synchronous>, transform_indices = @transform_4, window_bounds = array<i64: 200, 1>}, {pipeline_mode = #tpu.pipeline_mode<synchronous>, transform_indices = @transform_5, window_bounds = array<i64: 10, 200>}, {pipeline_mode = #tpu.pipeline_mode<synchronous>, transform_indices = @transform_6, window_bounds = array<i64: 10, 1>}, {transform_indices = @transform_7, window_bounds = array<i64: 10, 128>}]} {
    %c0_i32 = arith.constant 0 : i32
    %c5_i32 = arith.constant 5 : i32
    %0 = arith.addi %c0_i32, %c5_i32 : i32
    %c1_i32 = arith.constant 1 : i32
    scf.for %arg10 = %c0_i32 to %0 step %c1_i32  : i32 {
      %15 = arith.index_cast %arg10 : i32 to index
      %16 = memref.load %arg3[%15] : memref<5xf32, #tpu.memory_space<smem>>
      %c9_i32 = arith.constant 9 : i32
      %17 = arith.muli %arg10, %c9_i32 : i32
      %c0_i32_14 = arith.constant 0 : i32
      %18 = arith.addi %17, %c0_i32_14 : i32
      %19 = arith.index_cast %18 : i32 to index
      %20 = memref.load %arg2[%19] : memref<45xf32, #tpu.memory_space<smem>>
      %c9_i32_15 = arith.constant 9 : i32
      %21 = arith.muli %arg10, %c9_i32_15 : i32
      %c1_i32_16 = arith.constant 1 : i32
      %22 = arith.addi %21, %c1_i32_16 : i32
      %23 = arith.index_cast %22 : i32 to index
      %24 = memref.load %arg2[%23] : memref<45xf32, #tpu.memory_space<smem>>
      %c9_i32_17 = arith.constant 9 : i32
      %25 = arith.muli %arg10, %c9_i32_17 : i32
      %c2_i32 = arith.constant 2 : i32
      %26 = arith.addi %25, %c2_i32 : i32
      %27 = arith.index_cast %26 : i32 to index
      %28 = memref.load %arg2[%27] : memref<45xf32, #tpu.memory_space<smem>>
      %c9_i32_18 = arith.constant 9 : i32
      %29 = arith.muli %arg10, %c9_i32_18 : i32
      %c3_i32 = arith.constant 3 : i32
      %30 = arith.addi %29, %c3_i32 : i32
      %31 = arith.index_cast %30 : i32 to index
      %32 = memref.load %arg2[%31] : memref<45xf32, #tpu.memory_space<smem>>
      %c9_i32_19 = arith.constant 9 : i32
      %33 = arith.muli %arg10, %c9_i32_19 : i32
      %c4_i32 = arith.constant 4 : i32
      %34 = arith.addi %33, %c4_i32 : i32
      %35 = arith.index_cast %34 : i32 to index
      %36 = memref.load %arg2[%35] : memref<45xf32, #tpu.memory_space<smem>>
      %c9_i32_20 = arith.constant 9 : i32
      %37 = arith.muli %arg10, %c9_i32_20 : i32
      %c5_i32_21 = arith.constant 5 : i32
      %38 = arith.addi %37, %c5_i32_21 : i32
      %39 = arith.index_cast %38 : i32 to index
      %40 = memref.load %arg2[%39] : memref<45xf32, #tpu.memory_space<smem>>
      %c9_i32_22 = arith.constant 9 : i32
      %41 = arith.muli %arg10, %c9_i32_22 : i32
      %c6_i32 = arith.constant 6 : i32
      %42 = arith.addi %41, %c6_i32 : i32
      %43 = arith.index_cast %42 : i32 to index
      %44 = memref.load %arg2[%43] : memref<45xf32, #tpu.memory_space<smem>>
      %c9_i32_23 = arith.constant 9 : i32
      %45 = arith.muli %arg10, %c9_i32_23 : i32
      %c7_i32 = arith.constant 7 : i32
      %46 = arith.addi %45, %c7_i32 : i32
      %47 = arith.index_cast %46 : i32 to index
      %48 = memref.load %arg2[%47] : memref<45xf32, #tpu.memory_space<smem>>
      %c9_i32_24 = arith.constant 9 : i32
      %49 = arith.muli %arg10, %c9_i32_24 : i32
      %c8_i32 = arith.constant 8 : i32
      %50 = arith.addi %49, %c8_i32 : i32
      %51 = arith.index_cast %50 : i32 to index
      %52 = memref.load %arg2[%51] : memref<45xf32, #tpu.memory_space<smem>>
      %c224_i32 = arith.constant 224 : i32
      %53 = arith.muli %arg10, %c224_i32 : i32
      %c0_i32_25 = arith.constant 0 : i32
      %c2_i32_26 = arith.constant 2 : i32
      %54 = arith.addi %c0_i32_25, %c2_i32_26 : i32
      %c1_i32_27 = arith.constant 1 : i32
      scf.for %arg11 = %c0_i32_25 to %54 step %c1_i32_27  : i32 {
        %c7_i32_29 = arith.constant 7 : i32
        %55 = arith.muli %arg11, %c7_i32_29 : i32
        %c0_i32_30 = arith.constant 0 : i32
        %56 = arith.addi %55, %c0_i32_30 : i32
        %c0_31 = arith.constant 0 : index
        %57 = arith.index_cast %56 : i32 to index
        %c0_32 = arith.constant 0 : index
        %c0_33 = arith.constant 0 : index
        %58 = vector.load %arg1[%c0_31, %57, %c0_32, %c0_33] : memref<4x15x17x128xf32, #tpu.memory_space<vmem>>, vector<1x7x16x128xf32>
        %59 = vector.shape_cast %58 : vector<1x7x16x128xf32> to vector<7x16x128xf32>
        %60 = vector.broadcast %20 : f32 to vector<7x16x128xf32>
        %61 = arith.mulf %59, %60 : vector<7x16x128xf32>
        %c0_i32_34 = arith.constant 0 : i32
        %62 = arith.addi %55, %c0_i32_34 : i32
        %c1 = arith.constant 1 : index
        %63 = arith.index_cast %62 : i32 to index
        %c0_35 = arith.constant 0 : index
        %c0_36 = arith.constant 0 : index
        %64 = vector.load %arg1[%c1, %63, %c0_35, %c0_36] : memref<4x15x17x128xf32, #tpu.memory_space<vmem>>, vector<1x7x16x128xf32>
        %65 = vector.shape_cast %64 : vector<1x7x16x128xf32> to vector<7x16x128xf32>
        %66 = vector.broadcast %24 : f32 to vector<7x16x128xf32>
        %67 = arith.mulf %65, %66 : vector<7x16x128xf32>
        %68 = arith.addf %61, %67 : vector<7x16x128xf32>
        %c0_i32_37 = arith.constant 0 : i32
        %69 = arith.addi %55, %c0_i32_37 : i32
        %c0_38 = arith.constant 0 : index
        %70 = arith.index_cast %69 : i32 to index
        %c1_39 = arith.constant 1 : index
        %c0_40 = arith.constant 0 : index
        %71 = vector.load %arg1[%c0_38, %70, %c1_39, %c0_40] : memref<4x15x17x128xf32, #tpu.memory_space<vmem>>, vector<1x7x16x128xf32>
        %72 = vector.shape_cast %71 : vector<1x7x16x128xf32> to vector<7x16x128xf32>
        %73 = vector.broadcast %28 : f32 to vector<7x16x128xf32>
        %74 = arith.mulf %72, %73 : vector<7x16x128xf32>
        %75 = arith.addf %68, %74 : vector<7x16x128xf32>
        %c0_i32_41 = arith.constant 0 : i32
        %76 = arith.addi %55, %c0_i32_41 : i32
        %c2 = arith.constant 2 : index
        %77 = arith.index_cast %76 : i32 to index
        %c0_42 = arith.constant 0 : index
        %c0_43 = arith.constant 0 : index
        %78 = vector.load %arg1[%c2, %77, %c0_42, %c0_43] : memref<4x15x17x128xf32, #tpu.memory_space<vmem>>, vector<1x7x16x128xf32>
        %79 = vector.shape_cast %78 : vector<1x7x16x128xf32> to vector<7x16x128xf32>
        %80 = vector.broadcast %32 : f32 to vector<7x16x128xf32>
        %81 = arith.mulf %79, %80 : vector<7x16x128xf32>
        %82 = arith.addf %75, %81 : vector<7x16x128xf32>
        %c0_i32_44 = arith.constant 0 : i32
        %83 = arith.addi %55, %c0_i32_44 : i32
        %c3 = arith.constant 3 : index
        %84 = arith.index_cast %83 : i32 to index
        %c0_45 = arith.constant 0 : index
        %c0_46 = arith.constant 0 : index
        %85 = vector.load %arg1[%c3, %84, %c0_45, %c0_46] : memref<4x15x17x128xf32, #tpu.memory_space<vmem>>, vector<1x7x16x128xf32>
        %86 = vector.shape_cast %85 : vector<1x7x16x128xf32> to vector<7x16x128xf32>
        %87 = vector.broadcast %36 : f32 to vector<7x16x128xf32>
        %88 = arith.mulf %86, %87 : vector<7x16x128xf32>
        %89 = arith.addf %82, %88 : vector<7x16x128xf32>
        %c0_i32_47 = arith.constant 0 : i32
        %90 = arith.addi %55, %c0_i32_47 : i32
        %c2_48 = arith.constant 2 : index
        %91 = arith.index_cast %90 : i32 to index
        %c1_49 = arith.constant 1 : index
        %c0_50 = arith.constant 0 : index
        %92 = vector.load %arg1[%c2_48, %91, %c1_49, %c0_50] : memref<4x15x17x128xf32, #tpu.memory_space<vmem>>, vector<1x7x16x128xf32>
        %93 = vector.shape_cast %92 : vector<1x7x16x128xf32> to vector<7x16x128xf32>
        %94 = vector.broadcast %40 : f32 to vector<7x16x128xf32>
        %95 = arith.mulf %93, %94 : vector<7x16x128xf32>
        %96 = arith.addf %89, %95 : vector<7x16x128xf32>
        %c1_i32_51 = arith.constant 1 : i32
        %97 = arith.addi %55, %c1_i32_51 : i32
        %c0_52 = arith.constant 0 : index
        %98 = arith.index_cast %97 : i32 to index
        %c0_53 = arith.constant 0 : index
        %c0_54 = arith.constant 0 : index
        %99 = vector.load %arg1[%c0_52, %98, %c0_53, %c0_54] : memref<4x15x17x128xf32, #tpu.memory_space<vmem>>, vector<1x7x16x128xf32>
        %100 = vector.shape_cast %99 : vector<1x7x16x128xf32> to vector<7x16x128xf32>
        %101 = vector.broadcast %44 : f32 to vector<7x16x128xf32>
        %102 = arith.mulf %100, %101 : vector<7x16x128xf32>
        %103 = arith.addf %96, %102 : vector<7x16x128xf32>
        %c1_i32_55 = arith.constant 1 : i32
        %104 = arith.addi %55, %c1_i32_55 : i32
        %c1_56 = arith.constant 1 : index
        %105 = arith.index_cast %104 : i32 to index
        %c0_57 = arith.constant 0 : index
        %c0_58 = arith.constant 0 : index
        %106 = vector.load %arg1[%c1_56, %105, %c0_57, %c0_58] : memref<4x15x17x128xf32, #tpu.memory_space<vmem>>, vector<1x7x16x128xf32>
        %107 = vector.shape_cast %106 : vector<1x7x16x128xf32> to vector<7x16x128xf32>
        %108 = vector.broadcast %48 : f32 to vector<7x16x128xf32>
        %109 = arith.mulf %107, %108 : vector<7x16x128xf32>
        %110 = arith.addf %103, %109 : vector<7x16x128xf32>
        %c1_i32_59 = arith.constant 1 : i32
        %111 = arith.addi %55, %c1_i32_59 : i32
        %c0_60 = arith.constant 0 : index
        %112 = arith.index_cast %111 : i32 to index
        %c1_61 = arith.constant 1 : index
        %c0_62 = arith.constant 0 : index
        %113 = vector.load %arg1[%c0_60, %112, %c1_61, %c0_62] : memref<4x15x17x128xf32, #tpu.memory_space<vmem>>, vector<1x7x16x128xf32>
        %114 = vector.shape_cast %113 : vector<1x7x16x128xf32> to vector<7x16x128xf32>
        %115 = vector.broadcast %52 : f32 to vector<7x16x128xf32>
        %116 = arith.mulf %114, %115 : vector<7x16x128xf32>
        %117 = arith.addf %110, %116 : vector<7x16x128xf32>
        %c0_i32_63 = arith.constant 0 : i32
        %118 = arith.addi %55, %c0_i32_63 : i32
        %c1_64 = arith.constant 1 : index
        %119 = arith.index_cast %118 : i32 to index
        %c0_65 = arith.constant 0 : index
        %c0_66 = arith.constant 0 : index
        %120 = vector.load %arg1[%c1_64, %119, %c0_65, %c0_66] : memref<4x15x17x128xf32, #tpu.memory_space<vmem>>, vector<1x7x16x128xf32>
        %121 = vector.shape_cast %120 : vector<1x7x16x128xf32> to vector<7x16x128xf32>
        %122 = vector.broadcast %20 : f32 to vector<7x16x128xf32>
        %123 = arith.mulf %121, %122 : vector<7x16x128xf32>
        %c0_i32_67 = arith.constant 0 : i32
        %124 = arith.addi %55, %c0_i32_67 : i32
        %c0_68 = arith.constant 0 : index
        %125 = arith.index_cast %124 : i32 to index
        %c1_69 = arith.constant 1 : index
        %c0_70 = arith.constant 0 : index
        %126 = vector.load %arg1[%c0_68, %125, %c1_69, %c0_70] : memref<4x15x17x128xf32, #tpu.memory_space<vmem>>, vector<1x7x16x128xf32>
        %127 = vector.shape_cast %126 : vector<1x7x16x128xf32> to vector<7x16x128xf32>
        %128 = vector.broadcast %24 : f32 to vector<7x16x128xf32>
        %129 = arith.mulf %127, %128 : vector<7x16x128xf32>
        %130 = arith.addf %123, %129 : vector<7x16x128xf32>
        %c0_i32_71 = arith.constant 0 : i32
        %131 = arith.addi %55, %c0_i32_71 : i32
        %c1_72 = arith.constant 1 : index
        %132 = arith.index_cast %131 : i32 to index
        %c1_73 = arith.constant 1 : index
        %c0_74 = arith.constant 0 : index
        %133 = vector.load %arg1[%c1_72, %132, %c1_73, %c0_74] : memref<4x15x17x128xf32, #tpu.memory_space<vmem>>, vector<1x7x16x128xf32>
        %134 = vector.shape_cast %133 : vector<1x7x16x128xf32> to vector<7x16x128xf32>
        %135 = vector.broadcast %28 : f32 to vector<7x16x128xf32>
        %136 = arith.mulf %134, %135 : vector<7x16x128xf32>
        %137 = arith.addf %130, %136 : vector<7x16x128xf32>
        %c0_i32_75 = arith.constant 0 : i32
        %138 = arith.addi %55, %c0_i32_75 : i32
        %c3_76 = arith.constant 3 : index
        %139 = arith.index_cast %138 : i32 to index
        %c0_77 = arith.constant 0 : index
        %c0_78 = arith.constant 0 : index
        %140 = vector.load %arg1[%c3_76, %139, %c0_77, %c0_78] : memref<4x15x17x128xf32, #tpu.memory_space<vmem>>, vector<1x7x16x128xf32>
        %141 = vector.shape_cast %140 : vector<1x7x16x128xf32> to vector<7x16x128xf32>
        %142 = vector.broadcast %32 : f32 to vector<7x16x128xf32>
        %143 = arith.mulf %141, %142 : vector<7x16x128xf32>
        %144 = arith.addf %137, %143 : vector<7x16x128xf32>
        %c0_i32_79 = arith.constant 0 : i32
        %145 = arith.addi %55, %c0_i32_79 : i32
        %c2_80 = arith.constant 2 : index
        %146 = arith.index_cast %145 : i32 to index
        %c1_81 = arith.constant 1 : index
        %c0_82 = arith.constant 0 : index
        %147 = vector.load %arg1[%c2_80, %146, %c1_81, %c0_82] : memref<4x15x17x128xf32, #tpu.memory_space<vmem>>, vector<1x7x16x128xf32>
        %148 = vector.shape_cast %147 : vector<1x7x16x128xf32> to vector<7x16x128xf32>
        %149 = vector.broadcast %36 : f32 to vector<7x16x128xf32>
        %150 = arith.mulf %148, %149 : vector<7x16x128xf32>
        %151 = arith.addf %144, %150 : vector<7x16x128xf32>
        %c0_i32_83 = arith.constant 0 : i32
        %152 = arith.addi %55, %c0_i32_83 : i32
        %c3_84 = arith.constant 3 : index
        %153 = arith.index_cast %152 : i32 to index
        %c1_85 = arith.constant 1 : index
        %c0_86 = arith.constant 0 : index
        %154 = vector.load %arg1[%c3_84, %153, %c1_85, %c0_86] : memref<4x15x17x128xf32, #tpu.memory_space<vmem>>, vector<1x7x16x128xf32>
        %155 = vector.shape_cast %154 : vector<1x7x16x128xf32> to vector<7x16x128xf32>
        %156 = vector.broadcast %40 : f32 to vector<7x16x128xf32>
        %157 = arith.mulf %155, %156 : vector<7x16x128xf32>
        %158 = arith.addf %151, %157 : vector<7x16x128xf32>
        %c1_i32_87 = arith.constant 1 : i32
        %159 = arith.addi %55, %c1_i32_87 : i32
        %c1_88 = arith.constant 1 : index
        %160 = arith.index_cast %159 : i32 to index
        %c0_89 = arith.constant 0 : index
        %c0_90 = arith.constant 0 : index
        %161 = vector.load %arg1[%c1_88, %160, %c0_89, %c0_90] : memref<4x15x17x128xf32, #tpu.memory_space<vmem>>, vector<1x7x16x128xf32>
        %162 = vector.shape_cast %161 : vector<1x7x16x128xf32> to vector<7x16x128xf32>
        %163 = vector.broadcast %44 : f32 to vector<7x16x128xf32>
        %164 = arith.mulf %162, %163 : vector<7x16x128xf32>
        %165 = arith.addf %158, %164 : vector<7x16x128xf32>
        %c1_i32_91 = arith.constant 1 : i32
        %166 = arith.addi %55, %c1_i32_91 : i32
        %c0_92 = arith.constant 0 : index
        %167 = arith.index_cast %166 : i32 to index
        %c1_93 = arith.constant 1 : index
        %c0_94 = arith.constant 0 : index
        %168 = vector.load %arg1[%c0_92, %167, %c1_93, %c0_94] : memref<4x15x17x128xf32, #tpu.memory_space<vmem>>, vector<1x7x16x128xf32>
        %169 = vector.shape_cast %168 : vector<1x7x16x128xf32> to vector<7x16x128xf32>
        %170 = vector.broadcast %48 : f32 to vector<7x16x128xf32>
        %171 = arith.mulf %169, %170 : vector<7x16x128xf32>
        %172 = arith.addf %165, %171 : vector<7x16x128xf32>
        %c1_i32_95 = arith.constant 1 : i32
        %173 = arith.addi %55, %c1_i32_95 : i32
        %c1_96 = arith.constant 1 : index
        %174 = arith.index_cast %173 : i32 to index
        %c1_97 = arith.constant 1 : index
        %c0_98 = arith.constant 0 : index
        %175 = vector.load %arg1[%c1_96, %174, %c1_97, %c0_98] : memref<4x15x17x128xf32, #tpu.memory_space<vmem>>, vector<1x7x16x128xf32>
        %176 = vector.shape_cast %175 : vector<1x7x16x128xf32> to vector<7x16x128xf32>
        %177 = vector.broadcast %52 : f32 to vector<7x16x128xf32>
        %178 = arith.mulf %176, %177 : vector<7x16x128xf32>
        %179 = arith.addf %172, %178 : vector<7x16x128xf32>
        %180 = arith.maximumf %117, %179 : vector<7x16x128xf32>
        %c0_i32_99 = arith.constant 0 : i32
        %181 = arith.addi %55, %c0_i32_99 : i32
        %c2_100 = arith.constant 2 : index
        %182 = arith.index_cast %181 : i32 to index
        %c0_101 = arith.constant 0 : index
        %c0_102 = arith.constant 0 : index
        %183 = vector.load %arg1[%c2_100, %182, %c0_101, %c0_102] : memref<4x15x17x128xf32, #tpu.memory_space<vmem>>, vector<1x7x16x128xf32>
        %184 = vector.shape_cast %183 : vector<1x7x16x128xf32> to vector<7x16x128xf32>
        %185 = vector.broadcast %20 : f32 to vector<7x16x128xf32>
        %186 = arith.mulf %184, %185 : vector<7x16x128xf32>
        %c0_i32_103 = arith.constant 0 : i32
        %187 = arith.addi %55, %c0_i32_103 : i32
        %c3_104 = arith.constant 3 : index
        %188 = arith.index_cast %187 : i32 to index
        %c0_105 = arith.constant 0 : index
        %c0_106 = arith.constant 0 : index
        %189 = vector.load %arg1[%c3_104, %188, %c0_105, %c0_106] : memref<4x15x17x128xf32, #tpu.memory_space<vmem>>, vector<1x7x16x128xf32>
        %190 = vector.shape_cast %189 : vector<1x7x16x128xf32> to vector<7x16x128xf32>
        %191 = vector.broadcast %24 : f32 to vector<7x16x128xf32>
        %192 = arith.mulf %190, %191 : vector<7x16x128xf32>
        %193 = arith.addf %186, %192 : vector<7x16x128xf32>
        %c0_i32_107 = arith.constant 0 : i32
        %194 = arith.addi %55, %c0_i32_107 : i32
        %c2_108 = arith.constant 2 : index
        %195 = arith.index_cast %194 : i32 to index
        %c1_109 = arith.constant 1 : index
        %c0_110 = arith.constant 0 : index
        %196 = vector.load %arg1[%c2_108, %195, %c1_109, %c0_110] : memref<4x15x17x128xf32, #tpu.memory_space<vmem>>, vector<1x7x16x128xf32>
        %197 = vector.shape_cast %196 : vector<1x7x16x128xf32> to vector<7x16x128xf32>
        %198 = vector.broadcast %28 : f32 to vector<7x16x128xf32>
        %199 = arith.mulf %197, %198 : vector<7x16x128xf32>
        %200 = arith.addf %193, %199 : vector<7x16x128xf32>
        %c1_i32_111 = arith.constant 1 : i32
        %201 = arith.addi %55, %c1_i32_111 : i32
        %c0_112 = arith.constant 0 : index
        %202 = arith.index_cast %201 : i32 to index
        %c0_113 = arith.constant 0 : index
        %c0_114 = arith.constant 0 : index
        %203 = vector.load %arg1[%c0_112, %202, %c0_113, %c0_114] : memref<4x15x17x128xf32, #tpu.memory_space<vmem>>, vector<1x7x16x128xf32>
        %204 = vector.shape_cast %203 : vector<1x7x16x128xf32> to vector<7x16x128xf32>
        %205 = vector.broadcast %32 : f32 to vector<7x16x128xf32>
        %206 = arith.mulf %204, %205 : vector<7x16x128xf32>
        %207 = arith.addf %200, %206 : vector<7x16x128xf32>
        %c1_i32_115 = arith.constant 1 : i32
        %208 = arith.addi %55, %c1_i32_115 : i32
        %c1_116 = arith.constant 1 : index
        %209 = arith.index_cast %208 : i32 to index
        %c0_117 = arith.constant 0 : index
        %c0_118 = arith.constant 0 : index
        %210 = vector.load %arg1[%c1_116, %209, %c0_117, %c0_118] : memref<4x15x17x128xf32, #tpu.memory_space<vmem>>, vector<1x7x16x128xf32>
        %211 = vector.shape_cast %210 : vector<1x7x16x128xf32> to vector<7x16x128xf32>
        %212 = vector.broadcast %36 : f32 to vector<7x16x128xf32>
        %213 = arith.mulf %211, %212 : vector<7x16x128xf32>
        %214 = arith.addf %207, %213 : vector<7x16x128xf32>
        %c1_i32_119 = arith.constant 1 : i32
        %215 = arith.addi %55, %c1_i32_119 : i32
        %c0_120 = arith.constant 0 : index
        %216 = arith.index_cast %215 : i32 to index
        %c1_121 = arith.constant 1 : index
        %c0_122 = arith.constant 0 : index
        %217 = vector.load %arg1[%c0_120, %216, %c1_121, %c0_122] : memref<4x15x17x128xf32, #tpu.memory_space<vmem>>, vector<1x7x16x128xf32>
        %218 = vector.shape_cast %217 : vector<1x7x16x128xf32> to vector<7x16x128xf32>
        %219 = vector.broadcast %40 : f32 to vector<7x16x128xf32>
        %220 = arith.mulf %218, %219 : vector<7x16x128xf32>
        %221 = arith.addf %214, %220 : vector<7x16x128xf32>
        %c1_i32_123 = arith.constant 1 : i32
        %222 = arith.addi %55, %c1_i32_123 : i32
        %c2_124 = arith.constant 2 : index
        %223 = arith.index_cast %222 : i32 to index
        %c0_125 = arith.constant 0 : index
        %c0_126 = arith.constant 0 : index
        %224 = vector.load %arg1[%c2_124, %223, %c0_125, %c0_126] : memref<4x15x17x128xf32, #tpu.memory_space<vmem>>, vector<1x7x16x128xf32>
        %225 = vector.shape_cast %224 : vector<1x7x16x128xf32> to vector<7x16x128xf32>
        %226 = vector.broadcast %44 : f32 to vector<7x16x128xf32>
        %227 = arith.mulf %225, %226 : vector<7x16x128xf32>
        %228 = arith.addf %221, %227 : vector<7x16x128xf32>
        %c1_i32_127 = arith.constant 1 : i32
        %229 = arith.addi %55, %c1_i32_127 : i32
        %c3_128 = arith.constant 3 : index
        %230 = arith.index_cast %229 : i32 to index
        %c0_129 = arith.constant 0 : index
        %c0_130 = arith.constant 0 : index
        %231 = vector.load %arg1[%c3_128, %230, %c0_129, %c0_130] : memref<4x15x17x128xf32, #tpu.memory_space<vmem>>, vector<1x7x16x128xf32>
        %232 = vector.shape_cast %231 : vector<1x7x16x128xf32> to vector<7x16x128xf32>
        %233 = vector.broadcast %48 : f32 to vector<7x16x128xf32>
        %234 = arith.mulf %232, %233 : vector<7x16x128xf32>
        %235 = arith.addf %228, %234 : vector<7x16x128xf32>
        %c1_i32_131 = arith.constant 1 : i32
        %236 = arith.addi %55, %c1_i32_131 : i32
        %c2_132 = arith.constant 2 : index
        %237 = arith.index_cast %236 : i32 to index
        %c1_133 = arith.constant 1 : index
        %c0_134 = arith.constant 0 : index
        %238 = vector.load %arg1[%c2_132, %237, %c1_133, %c0_134] : memref<4x15x17x128xf32, #tpu.memory_space<vmem>>, vector<1x7x16x128xf32>
        %239 = vector.shape_cast %238 : vector<1x7x16x128xf32> to vector<7x16x128xf32>
        %240 = vector.broadcast %52 : f32 to vector<7x16x128xf32>
        %241 = arith.mulf %239, %240 : vector<7x16x128xf32>
        %242 = arith.addf %235, %241 : vector<7x16x128xf32>
        %243 = arith.maximumf %180, %242 : vector<7x16x128xf32>
        %c0_i32_135 = arith.constant 0 : i32
        %244 = arith.addi %55, %c0_i32_135 : i32
        %c3_136 = arith.constant 3 : index
        %245 = arith.index_cast %244 : i32 to index
        %c0_137 = arith.constant 0 : index
        %c0_138 = arith.constant 0 : index
        %246 = vector.load %arg1[%c3_136, %245, %c0_137, %c0_138] : memref<4x15x17x128xf32, #tpu.memory_space<vmem>>, vector<1x7x16x128xf32>
        %247 = vector.shape_cast %246 : vector<1x7x16x128xf32> to vector<7x16x128xf32>
        %248 = vector.broadcast %20 : f32 to vector<7x16x128xf32>
        %249 = arith.mulf %247, %248 : vector<7x16x128xf32>
        %c0_i32_139 = arith.constant 0 : i32
        %250 = arith.addi %55, %c0_i32_139 : i32
        %c2_140 = arith.constant 2 : index
        %251 = arith.index_cast %250 : i32 to index
        %c1_141 = arith.constant 1 : index
        %c0_142 = arith.constant 0 : index
        %252 = vector.load %arg1[%c2_140, %251, %c1_141, %c0_142] : memref<4x15x17x128xf32, #tpu.memory_space<vmem>>, vector<1x7x16x128xf32>
        %253 = vector.shape_cast %252 : vector<1x7x16x128xf32> to vector<7x16x128xf32>
        %254 = vector.broadcast %24 : f32 to vector<7x16x128xf32>
        %255 = arith.mulf %253, %254 : vector<7x16x128xf32>
        %256 = arith.addf %249, %255 : vector<7x16x128xf32>
        %c0_i32_143 = arith.constant 0 : i32
        %257 = arith.addi %55, %c0_i32_143 : i32
        %c3_144 = arith.constant 3 : index
        %258 = arith.index_cast %257 : i32 to index
        %c1_145 = arith.constant 1 : index
        %c0_146 = arith.constant 0 : index
        %259 = vector.load %arg1[%c3_144, %258, %c1_145, %c0_146] : memref<4x15x17x128xf32, #tpu.memory_space<vmem>>, vector<1x7x16x128xf32>
        %260 = vector.shape_cast %259 : vector<1x7x16x128xf32> to vector<7x16x128xf32>
        %261 = vector.broadcast %28 : f32 to vector<7x16x128xf32>
        %262 = arith.mulf %260, %261 : vector<7x16x128xf32>
        %263 = arith.addf %256, %262 : vector<7x16x128xf32>
        %c1_i32_147 = arith.constant 1 : i32
        %264 = arith.addi %55, %c1_i32_147 : i32
        %c1_148 = arith.constant 1 : index
        %265 = arith.index_cast %264 : i32 to index
        %c0_149 = arith.constant 0 : index
        %c0_150 = arith.constant 0 : index
        %266 = vector.load %arg1[%c1_148, %265, %c0_149, %c0_150] : memref<4x15x17x128xf32, #tpu.memory_space<vmem>>, vector<1x7x16x128xf32>
        %267 = vector.shape_cast %266 : vector<1x7x16x128xf32> to vector<7x16x128xf32>
        %268 = vector.broadcast %32 : f32 to vector<7x16x128xf32>
        %269 = arith.mulf %267, %268 : vector<7x16x128xf32>
        %270 = arith.addf %263, %269 : vector<7x16x128xf32>
        %c1_i32_151 = arith.constant 1 : i32
        %271 = arith.addi %55, %c1_i32_151 : i32
        %c0_152 = arith.constant 0 : index
        %272 = arith.index_cast %271 : i32 to index
        %c1_153 = arith.constant 1 : index
        %c0_154 = arith.constant 0 : index
        %273 = vector.load %arg1[%c0_152, %272, %c1_153, %c0_154] : memref<4x15x17x128xf32, #tpu.memory_space<vmem>>, vector<1x7x16x128xf32>
        %274 = vector.shape_cast %273 : vector<1x7x16x128xf32> to vector<7x16x128xf32>
        %275 = vector.broadcast %36 : f32 to vector<7x16x128xf32>
        %276 = arith.mulf %274, %275 : vector<7x16x128xf32>
        %277 = arith.addf %270, %276 : vector<7x16x128xf32>
        %c1_i32_155 = arith.constant 1 : i32
        %278 = arith.addi %55, %c1_i32_155 : i32
        %c1_156 = arith.constant 1 : index
        %279 = arith.index_cast %278 : i32 to index
        %c1_157 = arith.constant 1 : index
        %c0_158 = arith.constant 0 : index
        %280 = vector.load %arg1[%c1_156, %279, %c1_157, %c0_158] : memref<4x15x17x128xf32, #tpu.memory_space<vmem>>, vector<1x7x16x128xf32>
        %281 = vector.shape_cast %280 : vector<1x7x16x128xf32> to vector<7x16x128xf32>
        %282 = vector.broadcast %40 : f32 to vector<7x16x128xf32>
        %283 = arith.mulf %281, %282 : vector<7x16x128xf32>
        %284 = arith.addf %277, %283 : vector<7x16x128xf32>
        %c1_i32_159 = arith.constant 1 : i32
        %285 = arith.addi %55, %c1_i32_159 : i32
        %c3_160 = arith.constant 3 : index
        %286 = arith.index_cast %285 : i32 to index
        %c0_161 = arith.constant 0 : index
        %c0_162 = arith.constant 0 : index
        %287 = vector.load %arg1[%c3_160, %286, %c0_161, %c0_162] : memref<4x15x17x128xf32, #tpu.memory_space<vmem>>, vector<1x7x16x128xf32>
        %288 = vector.shape_cast %287 : vector<1x7x16x128xf32> to vector<7x16x128xf32>
        %289 = vector.broadcast %44 : f32 to vector<7x16x128xf32>
        %290 = arith.mulf %288, %289 : vector<7x16x128xf32>
        %291 = arith.addf %284, %290 : vector<7x16x128xf32>
        %c1_i32_163 = arith.constant 1 : i32
        %292 = arith.addi %55, %c1_i32_163 : i32
        %c2_164 = arith.constant 2 : index
        %293 = arith.index_cast %292 : i32 to index
        %c1_165 = arith.constant 1 : index
        %c0_166 = arith.constant 0 : index
        %294 = vector.load %arg1[%c2_164, %293, %c1_165, %c0_166] : memref<4x15x17x128xf32, #tpu.memory_space<vmem>>, vector<1x7x16x128xf32>
        %295 = vector.shape_cast %294 : vector<1x7x16x128xf32> to vector<7x16x128xf32>
        %296 = vector.broadcast %48 : f32 to vector<7x16x128xf32>
        %297 = arith.mulf %295, %296 : vector<7x16x128xf32>
        %298 = arith.addf %291, %297 : vector<7x16x128xf32>
        %c1_i32_167 = arith.constant 1 : i32
        %299 = arith.addi %55, %c1_i32_167 : i32
        %c3_168 = arith.constant 3 : index
        %300 = arith.index_cast %299 : i32 to index
        %c1_169 = arith.constant 1 : index
        %c0_170 = arith.constant 0 : index
        %301 = vector.load %arg1[%c3_168, %300, %c1_169, %c0_170] : memref<4x15x17x128xf32, #tpu.memory_space<vmem>>, vector<1x7x16x128xf32>
        %302 = vector.shape_cast %301 : vector<1x7x16x128xf32> to vector<7x16x128xf32>
        %303 = vector.broadcast %52 : f32 to vector<7x16x128xf32>
        %304 = arith.mulf %302, %303 : vector<7x16x128xf32>
        %305 = arith.addf %298, %304 : vector<7x16x128xf32>
        %306 = arith.maximumf %243, %305 : vector<7x16x128xf32>
        %307 = vector.broadcast %16 : f32 to vector<7x16x128xf32>
        %308 = arith.addf %306, %307 : vector<7x16x128xf32>
        %cst_171 = arith.constant 0.000000e+00 : f32
        %309 = vector.broadcast %cst_171 : f32 to vector<7x16x128xf32>
        %310 = arith.maximumf %308, %309 : vector<7x16x128xf32>
        %311 = arith.truncf %310 : vector<7x16x128xf32> to vector<7x16x128xbf16>
        %c0_i32_172 = arith.constant 0 : i32
        %312 = arith.addi %55, %c0_i32_172 : i32
        %c16_i32 = arith.constant 16 : i32
        %313 = arith.muli %312, %c16_i32 : i32
        %314 = arith.addi %53, %313 : i32
        %315 = tpu.assume_multiple %314, 16 : i32
        %316 = vector.extract_strided_slice %311 {offsets = [0, 0, 0], sizes = [1, 16, 128], strides = [1, 1, 1]} : vector<7x16x128xbf16> to vector<1x16x128xbf16>
        %317 = vector.shape_cast %316 : vector<1x16x128xbf16> to vector<16x128xbf16>
        %318 = arith.index_cast %315 : i32 to index
        %c0_173 = arith.constant 0 : index
        %319 = vector.load %arg9[%318, %c0_173] : memref<1120x128xbf16, #tpu.memory_space<vmem>>, vector<16x128xbf16>
        tpu.vector_store %arg9[%318, %c0_173], %317 {strides = array<i32>} : memref<1120x128xbf16, #tpu.memory_space<vmem>>, vector<16x128xbf16>,
        %c1_i32_174 = arith.constant 1 : i32
        %320 = arith.addi %55, %c1_i32_174 : i32
        %c16_i32_175 = arith.constant 16 : i32
        %321 = arith.muli %320, %c16_i32_175 : i32
        %322 = arith.addi %53, %321 : i32
        %323 = tpu.assume_multiple %322, 16 : i32
        %324 = vector.extract_strided_slice %311 {offsets = [1, 0, 0], sizes = [1, 16, 128], strides = [1, 1, 1]} : vector<7x16x128xbf16> to vector<1x16x128xbf16>
        %325 = vector.shape_cast %324 : vector<1x16x128xbf16> to vector<16x128xbf16>
        %326 = arith.index_cast %323 : i32 to index
        %c0_176 = arith.constant 0 : index
        %327 = vector.load %arg9[%326, %c0_176] : memref<1120x128xbf16, #tpu.memory_space<vmem>>, vector<16x128xbf16>
        tpu.vector_store %arg9[%326, %c0_176], %325 {strides = array<i32>} : memref<1120x128xbf16, #tpu.memory_space<vmem>>, vector<16x128xbf16>,
        %c2_i32_177 = arith.constant 2 : i32
        %328 = arith.addi %55, %c2_i32_177 : i32
        %c16_i32_178 = arith.constant 16 : i32
        %329 = arith.muli %328, %c16_i32_178 : i32
        %330 = arith.addi %53, %329 : i32
        %331 = tpu.assume_multiple %330, 16 : i32
        %332 = vector.extract_strided_slice %311 {offsets = [2, 0, 0], sizes = [1, 16, 128], strides = [1, 1, 1]} : vector<7x16x128xbf16> to vector<1x16x128xbf16>
        %333 = vector.shape_cast %332 : vector<1x16x128xbf16> to vector<16x128xbf16>
        %334 = arith.index_cast %331 : i32 to index
        %c0_179 = arith.constant 0 : index
        %335 = vector.load %arg9[%334, %c0_179] : memref<1120x128xbf16, #tpu.memory_space<vmem>>, vector<16x128xbf16>
        tpu.vector_store %arg9[%334, %c0_179], %333 {strides = array<i32>} : memref<1120x128xbf16, #tpu.memory_space<vmem>>, vector<16x128xbf16>,
        %c3_i32_180 = arith.constant 3 : i32
        %336 = arith.addi %55, %c3_i32_180 : i32
        %c16_i32_181 = arith.constant 16 : i32
        %337 = arith.muli %336, %c16_i32_181 : i32
        %338 = arith.addi %53, %337 : i32
        %339 = tpu.assume_multiple %338, 16 : i32
        %340 = vector.extract_strided_slice %311 {offsets = [3, 0, 0], sizes = [1, 16, 128], strides = [1, 1, 1]} : vector<7x16x128xbf16> to vector<1x16x128xbf16>
        %341 = vector.shape_cast %340 : vector<1x16x128xbf16> to vector<16x128xbf16>
        %342 = arith.index_cast %339 : i32 to index
        %c0_182 = arith.constant 0 : index
        %343 = vector.load %arg9[%342, %c0_182] : memref<1120x128xbf16, #tpu.memory_space<vmem>>, vector<16x128xbf16>
        tpu.vector_store %arg9[%342, %c0_182], %341 {strides = array<i32>} : memref<1120x128xbf16, #tpu.memory_space<vmem>>, vector<16x128xbf16>,
        %c4_i32_183 = arith.constant 4 : i32
        %344 = arith.addi %55, %c4_i32_183 : i32
        %c16_i32_184 = arith.constant 16 : i32
        %345 = arith.muli %344, %c16_i32_184 : i32
        %346 = arith.addi %53, %345 : i32
        %347 = tpu.assume_multiple %346, 16 : i32
        %348 = vector.extract_strided_slice %311 {offsets = [4, 0, 0], sizes = [1, 16, 128], strides = [1, 1, 1]} : vector<7x16x128xbf16> to vector<1x16x128xbf16>
        %349 = vector.shape_cast %348 : vector<1x16x128xbf16> to vector<16x128xbf16>
        %350 = arith.index_cast %347 : i32 to index
        %c0_185 = arith.constant 0 : index
        %351 = vector.load %arg9[%350, %c0_185] : memref<1120x128xbf16, #tpu.memory_space<vmem>>, vector<16x128xbf16>
        tpu.vector_store %arg9[%350, %c0_185], %349 {strides = array<i32>} : memref<1120x128xbf16, #tpu.memory_space<vmem>>, vector<16x128xbf16>,
        %c5_i32_186 = arith.constant 5 : i32
        %352 = arith.addi %55, %c5_i32_186 : i32
        %c16_i32_187 = arith.constant 16 : i32
        %353 = arith.muli %352, %c16_i32_187 : i32
        %354 = arith.addi %53, %353 : i32
        %355 = tpu.assume_multiple %354, 16 : i32
        %356 = vector.extract_strided_slice %311 {offsets = [5, 0, 0], sizes = [1, 16, 128], strides = [1, 1, 1]} : vector<7x16x128xbf16> to vector<1x16x128xbf16>
        %357 = vector.shape_cast %356 : vector<1x16x128xbf16> to vector<16x128xbf16>
        %358 = arith.index_cast %355 : i32 to index
        %c0_188 = arith.constant 0 : index
        %359 = vector.load %arg9[%358, %c0_188] : memref<1120x128xbf16, #tpu.memory_space<vmem>>, vector<16x128xbf16>
        tpu.vector_store %arg9[%358, %c0_188], %357 {strides = array<i32>} : memref<1120x128xbf16, #tpu.memory_space<vmem>>, vector<16x128xbf16>,
        %c6_i32_189 = arith.constant 6 : i32
        %360 = arith.addi %55, %c6_i32_189 : i32
        %c16_i32_190 = arith.constant 16 : i32
        %361 = arith.muli %360, %c16_i32_190 : i32
        %362 = arith.addi %53, %361 : i32
        %363 = tpu.assume_multiple %362, 16 : i32
        %364 = vector.extract_strided_slice %311 {offsets = [6, 0, 0], sizes = [1, 16, 128], strides = [1, 1, 1]} : vector<7x16x128xbf16> to vector<1x16x128xbf16>
        %365 = vector.shape_cast %364 : vector<1x16x128xbf16> to vector<16x128xbf16>
        %366 = arith.index_cast %363 : i32 to index
        %c0_191 = arith.constant 0 : index
        %367 = vector.load %arg9[%366, %c0_191] : memref<1120x128xbf16, #tpu.memory_space<vmem>>, vector<16x128xbf16>
        tpu.vector_store %arg9[%366, %c0_191], %365 {strides = array<i32>} : memref<1120x128xbf16, #tpu.memory_space<vmem>>, vector<16x128xbf16>,
      }
      %c2_i32_28 = arith.constant 2 : i32
    }
    %c5_i32_0 = arith.constant 5 : i32
    %c0 = arith.constant 0 : index
    %c0_1 = arith.constant 0 : index
    %1 = vector.load %arg4[%c0, %c0_1] : memref<200x1120xbf16, #tpu.memory_space<vmem>>, vector<200x1120xbf16>
    %c0_2 = arith.constant 0 : index
    %c0_3 = arith.constant 0 : index
    %2 = vector.load %arg9[%c0_2, %c0_3] : memref<1120x128xbf16, #tpu.memory_space<vmem>>, vector<1120x128xbf16>
    %cst = arith.constant dense<0.000000e+00> : vector<200x128xf32>
    %3 = tpu.matmul %1, %2, %cst {dimension_numbers = #tpu.dot_dimension_numbers<[1], [0], [0], [1], [0, 0, 1, 1], [], []>} : vector<200x1120xbf16>, vector<1120x128xbf16>, vector<200x128xf32> -> vector<200x128xf32>
    %c0_4 = arith.constant 0 : index
    %c0_5 = arith.constant 0 : index
    %4 = vector.load %arg5[%c0_4, %c0_5] : memref<200x1xf32, #tpu.memory_space<vmem>>, vector<200x1xf32>
    %5 = vector.broadcast %4 : vector<200x1xf32> to vector<200x128xf32>
    %6 = arith.addf %3, %5 : vector<200x128xf32>
    %cst_6 = arith.constant 0.000000e+00 : f32
    %7 = vector.broadcast %cst_6 : f32 to vector<200x128xf32>
    %8 = arith.maximumf %6, %7 : vector<200x128xf32>
    %c0_7 = arith.constant 0 : index
    %c0_8 = arith.constant 0 : index
    %9 = vector.load %arg6[%c0_7, %c0_8] : memref<10x200xf32, #tpu.memory_space<vmem>>, vector<10x200xf32>
    %cst_9 = arith.constant dense<0.000000e+00> : vector<10x128xf32>
    %10 = tpu.matmul %9, %8, %cst_9 {dimension_numbers = #tpu.dot_dimension_numbers<[1], [0], [0], [1], [0, 0, 1, 1], [], []>} : vector<10x200xf32>, vector<200x128xf32>, vector<10x128xf32> -> vector<10x128xf32>
    %c0_10 = arith.constant 0 : index
    %c0_11 = arith.constant 0 : index
    %11 = vector.load %arg7[%c0_10, %c0_11] : memref<10x1xf32, #tpu.memory_space<vmem>>, vector<10x1xf32>
    %12 = vector.broadcast %11 : vector<10x1xf32> to vector<10x128xf32>
    %13 = arith.addf %10, %12 : vector<10x128xf32>
    %c0_12 = arith.constant 0 : index
    %c0_13 = arith.constant 0 : index
    %14 = vector.load %arg8[%c0_12, %c0_13] : memref<10x128xf32, #tpu.memory_space<vmem>>, vector<10x128xf32>
    tpu.vector_store %arg8[%c0_12, %c0_13], %13 {strides = array<i32>} : memref<10x128xf32, #tpu.memory_space<vmem>>, vector<10x128xf32>,
    return
  }
  func.func @transform_0(%arg0: i32) -> (i32, i32, i32, i32) {
    %c0_i32 = arith.constant 0 : i32
    %c0_i32_0 = arith.constant 0 : i32
    %c0_i32_1 = arith.constant 0 : i32
    %c0_i32_2 = arith.constant 0 : i32
    return %c0_i32, %c0_i32_0, %c0_i32_1, %arg0 : i32, i32, i32, i32
  }
  func.func @transform_1(%arg0: i32) -> i32 {
    %c0_i32 = arith.constant 0 : i32
    %c0_i32_0 = arith.constant 0 : i32
    return %c0_i32 : i32
  }
  func.func @transform_2(%arg0: i32) -> i32 {
    %c0_i32 = arith.constant 0 : i32
    %c0_i32_0 = arith.constant 0 : i32
    return %c0_i32 : i32
  }
  func.func @transform_3(%arg0: i32) -> (i32, i32) {
    %c0_i32 = arith.constant 0 : i32
    %c0_i32_0 = arith.constant 0 : i32
    %c0_i32_1 = arith.constant 0 : i32
    return %c0_i32, %c0_i32_0 : i32, i32
  }
  func.func @transform_4(%arg0: i32) -> (i32, i32) {
    %c0_i32 = arith.constant 0 : i32
    %c0_i32_0 = arith.constant 0 : i32
    %c0_i32_1 = arith.constant 0 : i32
    return %c0_i32, %c0_i32_0 : i32, i32
  }
  func.func @transform_5(%arg0: i32) -> (i32, i32) {
    %c0_i32 = arith.constant 0 : i32
    %c0_i32_0 = arith.constant 0 : i32
    %c0_i32_1 = arith.constant 0 : i32
    return %c0_i32, %c0_i32_0 : i32, i32
  }
  func.func @transform_6(%arg0: i32) -> (i32, i32) {
    %c0_i32 = arith.constant 0 : i32
    %c0_i32_0 = arith.constant 0 : i32
    %c0_i32_1 = arith.constant 0 : i32
    return %c0_i32, %c0_i32_0 : i32, i32
  }
  func.func @transform_7(%arg0: i32) -> (i32, i32) {
    %c0_i32 = arith.constant 0 : i32
    %c0_i32_0 = arith.constant 0 : i32
    return %c0_i32, %arg0 : i32, i32
  }
}

</mosaic_0001>

<bundles_post_ra>
// kernel: a1dt_forward.1
= control target key start
LH: loop header
LB: loop body
LE: loop exit
PB: predicated region body
PF: predicated region fallthrough
CT: control target
= control target key end

     0   :  { %s7935_s0 = inlined_call_operand.vmem [shape: f32[4,15,17,128], index: 0, kind: input, shape index: {}]   ;;  %s7936_s1 = inlined_call_operand.vmem [shape: f32[45], index: 1, kind: input, shape index: {}]   ;;  %s7937_s2 = inlined_call_operand.vmem [shape: f32[5], index: 2, kind: input, shape index: {}]   ;;  %s7938_s3 = inlined_call_operand.vmem [shape: bf16[200,1120], index: 3, kind: input, shape index: {}]   ;;  %s7939_s4 = inlined_call_operand.vmem [shape: f32[200,1], index: 4, kind: input, shape index: {}]   ;;  %s7940_s5 = inlined_call_operand.vmem [shape: f32[10,200], index: 5, kind: input, shape index: {}]   ;;  %s7941_s6 = inlined_call_operand.vmem [shape: f32[10,1], index: 6, kind: input, shape index: {}]   ;;  %s7942_s7 = inlined_call_operand.vmem [shape: f32[10,128], index: 7, kind: output, shape index: {}]  }
   0x1   :  { %8194 = sst [smem:[#allocation118_spill]] %s7935_s0 }
   0x2   :  { %12 = vsyncpa [#allocation4], 0  ;;  %s21_s26 = sshll.u32 %s7936_s1, 4  ;;  %s22_s26 = int_to_ptr.vmem [resolvable:$true] %s21_s26 }
   0x3   :  { %13 = vsyncpa [#allocation6], 0  ;;  %s30_s29 = sshll.u32 %s7937_s2, 4  ;;  %s5031_s30 = smov [#allocation3]   ;;  %s31_s29 = int_to_ptr.vmem [resolvable:$true] %s30_s29 }
   0x4   :  { %24 = dma.vmem_to_smem %s22_s26, 16, %s5031_s30, [#allocation4]  }
   0x5   :  { %s5032_s8 = smov [#allocation5]  }
   0x6   :  { %33 = dma.vmem_to_smem %s31_s29, 16, %s5032_s8, [#allocation6]  }
   0x7   :  { %5019 = dma.done.wait [#allocation4], 16  }
   0x8   :  { %5020 = vsyncadd [#allocation4], 4294967280 }
   0x9   :  { %5021 = dma.done.wait [#allocation6], 16  }
   0xa   :  { %5022 = vsyncadd [#allocation6], 4294967280 }
   0xb   :  { %50 = sfence }
   0xc   :  { %s5080_s9 = smov 0  }
   0xd LB: > { %s5086_s1 = sld [smem:[#allocation5 + %s5025_s9]]  ;;  %s59_s2 = smul.u32 9, %s5025_s9  ;;  %s5025_s9 = sphi %s5080_s9, %s57_s9  }
   0xe   : > { %s5090_s10 = smul.u32 224, %s5025_s9  ;;  %s5110_s28 = smov 0  }
   0xf   : > { %s5092_s11 = sld [smem:[#allocation3 + %s59_s2]]  ;;  %s61_s12 = sadd.s32 1, %s59_s2 }
  0x10   : > { %8196 = sst [smem:[#allocation10_spill]] %s5090_s10  ;;  %s63_s14 = sadd.s32 2, %s59_s2 }
  0x11   : > { %s5094_s13 = sld [smem:[#allocation3 + %s61_s12]]  ;;  %s65_s16 = sadd.s32 3, %s59_s2 }
  0x12   : > { %s5096_s15 = sld [smem:[#allocation3 + %s63_s14]]  ;;  %s67_s18 = sadd.s32 4, %s59_s2 }
  0x13   : > { %8195 = sst [smem:[#allocation9_spill]] %s5086_s1  ;;  %s69_s20 = sadd.s32 5, %s59_s2 }
  0x14   : > { %s5098_s17 = sld [smem:[#allocation3 + %s65_s16]]  ;;  %s71_s22 = sadd.s32 6, %s59_s2 }
  0x15   : > { %8197 = sst [smem:[#allocation11_spill]] %s5092_s11  ;;  %s73_s24 = sadd.s32 7, %s59_s2 }
  0x16   : > { %s5100_s19 = sld [smem:[#allocation3 + %s67_s18]]  ;;  %s75_s26 = sadd.s32 8, %s59_s2 }
  0x17   : > { %8198 = sst [smem:[#allocation12_spill]] %s5094_s13 }
  0x18   : > { %s5102_s21 = sld [smem:[#allocation3 + %s69_s20]] }
  0x19   : > { %s5104_s23 = sld [smem:[#allocation3 + %s71_s22]] }
  0x1a   : > { %s5106_s25 = sld [smem:[#allocation3 + %s73_s24]] }
  0x1b   : > { %s5108_s27 = sld [smem:[#allocation3 + %s75_s26]] }
  0x1c LB: >> { %s8199_s10 = sld [smem:[#allocation10_spill]]  ;;  %s3689_s29 = smul.u32 168, %s5029_s28  ;;  %v5128_v2 = vstv %s5096_s15  ;;  %v5134_v6 = vstv %s5098_s17  ;;  %v5144_v10 = vstv %s5100_s19  ;;  %s5029_s28 = sphi %s5110_s28, %s83_s28  }
  0x1d   : >> { %s8200_s11 = sld [smem:[#allocation11_spill]]  ;;  %8205 = vst [vmem:[#allocation15_spill] sm:$0xff] %v5128_v2  ;;  %s6799_s12 = smul.u32 112, %s5029_s28 }
  0x1e   : >> { %s8201_s13 = sld [smem:[#allocation12_spill]]  ;;  %8206 = vst [vmem:[#allocation16_spill] sm:$0xff] %v5134_v6  ;;  %v5159_v17 = vstv %s5102_s21  ;;  %s83_s28 = sadd.s32 1, %s5029_s28  }
  0x1f   : >> { %s8202_s0 = sld [smem:[#allocation118_spill]]  ;;  %8207 = vst [vmem:[#allocation17_spill] sm:$0xff] %v5144_v10  ;;  %v5193_v31 = vstv %s5104_s23  ;;  %s4631_s20 = sadd.s32 16, %s6799_s12 }
  0x20   : >> { %8208 = vst [vmem:[#allocation18_spill] sm:$0xff] %v5159_v17  ;;  %s8640_s1 = sld [smem:[#allocation9_spill]]  ;;  %s4633_s22 = sadd.s32 32, %s6799_s12 }
  0x21   : >> { %8210 = vst [vmem:[#allocation20_spill] sm:$0xff] %v5193_v31  ;;  %s4635_s24 = sadd.s32 48, %s6799_s12  ;;  %s4639_s8 = sadd.s32 80, %s6799_s12 }
  0x22   : >> { %s1373_s14 = sadd.s32 %s6799_s12, %s8199_s10  ;;  %s6856_s26 = sadd.s32 %s4631_s20, %s8199_s10 }
  0x23   : >> { %v5122_v0 = vstv %s8200_s11  ;;  %s6829_s16 = sshra.s32 %s1373_s14, 3  ;;  %s6861_s30 = sadd.s32 %s4633_s22, %s8199_s10 }
  0x24   : >> { %8203 = vst [vmem:[#allocation13_spill] sm:$0xff] %v5122_v0  ;;  %v5125_v1 = vstv %s8201_s13  ;;  %s4641_s14 = sadd.s32 96, %s6799_s12  ;;  %s1382_s20 = sshra.s32 %s6856_s26, 3 }
  0x25   : >> { %s5119_s2 = scalar_lea.vmem %s8202_s0, %s3689_s29  ;;  %8204 = vst [vmem:[#allocation14_spill] sm:$0xff] %v5125_v1  ;;  %s4637_s29 = sadd.s32 64, %s6799_s12 }
  0x26   : >> { %v87_v3 = vld [vmem:[%s5119_s2] sm:$0xff]  ;;  %v88_v4 = vld [vmem:[%s5119_s2 + $0x8] sm:$0xff]  ;;  %v89_v5 = vld [vmem:[%s5119_s2 + $0x18] sm:$0xff]  ;;  %s6870_s18 = sadd.s32 %s4637_s29, %s8199_s10  ;;  %s1391_s22 = sshra.s32 %s6861_s30, 3 }
  0x27   : >> { %v90_v7 = vld [vmem:[%s5119_s2 + $0x20] sm:$0xff]  ;;  %v5138_v8 = vld [vmem:[%s5119_s2 + $0x30] sm:$0xff]  ;;  %v5141_v9 = vld [vmem:[%s5119_s2 + $0x38] sm:$0xff]  ;;  %v102_v14 = vmul.f32 %v5122_v0, %v87_v3  ;;  %v103_v15 = vmul.f32 %v5122_v0, %v88_v4  ;;  %v104_v16 = vmul.f32 %v5122_v0, %v89_v5  ;;  %v5249_v52 = vmul.f32 %v5193_v31, %v89_v5  ;;  %s6874_s0 = sadd.s32 %s4639_s8, %s8199_s10  ;;  %s3892_s26 = sshll.u32 %s1382_s20, 2 }
  0x28   : >> { %v5147_v11 = vld [vmem:[%s5119_s2 + $0x48] sm:$0xff]  ;;  %v5150_v12 = vld [vmem:[%s5119_s2 + $0x50] sm:$0xff]  ;;  %v5153_v13 = vld [vmem:[%s5119_s2 + $0x60] sm:$0xff]  ;;  %v105_v21 = vmul.f32 %v5122_v0, %v90_v7  ;;  %v106_v22 = vmul.f32 %v5122_v0, %v5138_v8  ;;  %v107_v23 = vmul.f32 %v5122_v0, %v5141_v9  ;;  %v5267_v59 = vmul.f32 %v5193_v31, %v90_v7  ;;  %s1409_s29 = sshra.s32 %s6870_s18, 3  ;;  %s3894_s30 = sshll.u32 %s1391_s22, 2 }
  0x29   : >> { %v5162_v18 = vld [vmem:[%s5119_s2 + $0x68] sm:$0xff]  ;;  %v5165_v19 = vld [vmem:[%s5119_s2 + $0x78] sm:$0xff]  ;;  %v5168_v20 = vld [vmem:[%s5119_s2 + $0x80] sm:$0xff]  ;;  %v108_v24 = vmul.f32 %v5122_v0, %v5147_v11  ;;  %v109_v27 = vmul.f32 %v5122_v0, %v5150_v12  ;;  %v110_v28 = vmul.f32 %v5122_v0, %v5153_v13  ;;  %s1418_s8 = sshra.s32 %s6874_s0, 3  ;;  %s8649_s18 = sshll.u32 %s6829_s16, 2 }
  0x2a   : >> { %v5178_v25 = vld [vmem:[%s5119_s2 + $0x90] sm:$0xff]  ;;  %v5181_v26 = vld [vmem:[%s5119_s2 + $0x98] sm:$0xff]  ;;  %v111_v29 = vmul.f32 %v5122_v0, %v5162_v18  ;;  %v5190_v30 = vld [vmem:[%s5119_s2 + $0x168] sm:$0xff]  ;;  %v112_v32 = vmul.f32 %v5122_v0, %v5165_v19  ;;  %v113_v33 = vmul.f32 %v5122_v0, %v5168_v20  ;;  %s1377_s20 = scalar_lea.vmem [#allocation2], %s8649_s18  ;;  %s1385_s13 = scalar_lea.vmem [#allocation2], %s3892_s26 }
  0x2b   : >> { %8209 = vst [vmem:[#allocation19_spill] sm:$0xff] %v5190_v30  ;;  %v5201_v34 = vmul.f32 %v5122_v0, %v5178_v25  ;;  %v5204_v35 = vld [vmem:[%s5119_s2 + $0x170] sm:$0xff]  ;;  %v5207_v36 = vld [vmem:[%s5119_s2 + $0x180] sm:$0xff]  ;;  %v5210_v37 = vld [vmem:[%s5119_s2 + $0x188] sm:$0xff]  ;;  %v133_v38 = vmul.f32 %v5190_v30, %v5125_v1  ;;  %v5216_v39 = vmul.f32 %v5122_v0, %v5181_v26  ;;  %s1394_s0 = scalar_lea.vmem [#allocation2], %s3894_s30  ;;  %p80_p0 = scmp.ge.s32.totalorder %s83_s28, 2  }
  0x2c   : >> { %8211 = vst [vmem:[#allocation21_spill] sm:$0xff] %v5204_v35  ;;  %v5219_v40 = vld [vmem:[%s5119_s2 + $0x198] sm:$0xff]  ;;  %v5222_v41 = vld [vmem:[%s5119_s2 + $0x1a0] sm:$0xff]  ;;  %v5225_v42 = vld [vmem:[%s5119_s2 + $0x1b0] sm:$0xff]  ;;  %v134_v43 = vmul.f32 %v5204_v35, %v5125_v1  ;;  %v135_v44 = vmul.f32 %v5207_v36, %v5125_v1  ;;  %v136_v45 = vmul.f32 %v5210_v37, %v5125_v1  ;;  %s57_s9 = sadd.s32 (%p80_p0), 1, %s5025_s9  }
  0x2d   : >> { %v5234_v46 = vld [vmem:[%s5119_s2 + $0x1b8] sm:$0xff]  ;;  %v5237_v47 = vld [vmem:[%s5119_s2 + $0x1c8] sm:$0xff]  ;;  %v5240_v48 = vld [vmem:[%s5119_s2 + $0x1d0] sm:$0xff]  ;;  %v137_v49 = vmul.f32 %v5219_v40, %v5125_v1  ;;  %v138_v50 = vmul.f32 %v5222_v41, %v5125_v1  ;;  %v139_v51 = vmul.f32 %v5225_v42, %v5125_v1  ;;  %v147_v63 = vadd.f32 %v133_v38, %v102_v14  ;;  %p54_p1 = scmp.ge.s32.totalorder (%p80_p0), %s57_s9, 5  }
  0x2e   : >> { %8212 = vst [vmem:[#allocation22_spill] sm:$0xff] %v5237_v47  ;;  %v5252_v53 = vld [vmem:[%s5119_s2 + $0x1e0] sm:$0xff]  ;;  %v5255_v54 = vld [vmem:[%s5119_s2 + $0x1e8] sm:$0xff]  ;;  %v5258_v55 = vld [vmem:[%s5119_s2 + $0x1f8] sm:$0xff]  ;;  %v140_v56 = vmul.f32 %v5234_v46, %v5125_v1  ;;  %v141_v57 = vmul.f32 %v5237_v47, %v5125_v1  ;;  %v142_v58 = vmul.f32 %v5240_v48, %v5125_v1  ;;  %v148_v3 = vadd.f32 %v134_v43, %v103_v15 }
  0x2f   : >> { %8213 = vst [vmem:[#allocation23_spill] sm:$0xff] %v5240_v48  ;;  %v5270_v60 = vld [vmem:[%s5119_s2 + $0x200] sm:$0xff]  ;;  %v143_v61 = vmul.f32 %v5252_v53, %v5125_v1  ;;  %v144_v62 = vmul.f32 %v5255_v54, %v5125_v1  ;;  %v145_v4 = vmul.f32 %v5258_v55, %v5125_v1  ;;  %v149_v7 = vadd.f32 %v135_v44, %v104_v16  ;;  %v5284_v15 = vld [vmem:[%s5119_s2 + $0x9] sm:$0xff] }
  0x30   : >> { %8214 = vst [vmem:[#allocation24_spill] sm:$0xff] %v5252_v53  ;;  %v146_v5 = vmul.f32 %v5270_v60, %v5125_v1  ;;  %v150_v35 = vadd.f32 %v136_v45, %v105_v21  ;;  %v151_v30 = vadd.f32 %v137_v49, %v106_v22  ;;  %v152_v0 = vadd.f32 %v138_v50, %v107_v23  ;;  %v5281_v14 = vld [vmem:[%s5119_s2 + $0x1] sm:$0xff]  ;;  %v5287_v38 = vld [vmem:[%s5119_s2 + $0x19] sm:$0xff]  ;;  %v5293_v22 = vld [vmem:[%s5119_s2 + $0x31] sm:$0xff] }
  0x31   : >> { %8215 = vst [vmem:[#allocation25_spill] sm:$0xff] %v5255_v54  ;;  %v153_v53 = vadd.f32 %v139_v51, %v108_v24  ;;  %v154_v54 = vadd.f32 %v140_v56, %v109_v27  ;;  %v155_v43 = vadd.f32 %v141_v57, %v110_v28  ;;  %v156_v1 = vadd.f32 %v142_v58, %v111_v29  ;;  %v5290_v21 = vld [vmem:[%s5119_s2 + $0x21] sm:$0xff]  ;;  %v5296_v23 = vld [vmem:[%s5119_s2 + $0x39] sm:$0xff]  ;;  %v5299_v24 = vld [vmem:[%s5119_s2 + $0x49] sm:$0xff] }
  0x32   : >> { %8216 = vst [vmem:[#allocation26_spill] sm:$0xff] %v5258_v55  ;;  %v157_v16 = vadd.f32 %v143_v61, %v112_v32  ;;  %v158_v44 = vadd.f32 %v144_v62, %v113_v33  ;;  %v5302_v27 = vld [vmem:[%s5119_s2 + $0x51] sm:$0xff]  ;;  %v5305_v45 = vld [vmem:[%s5119_s2 + $0x61] sm:$0xff]  ;;  %v176_v28 = vmul.f32 %v5128_v2, %v5281_v14  ;;  %v177_v29 = vmul.f32 %v5128_v2, %v5284_v15  ;;  %v5316_v49 = vld [vmem:[%s5119_s2 + $0x69] sm:$0xff] }
  0x33   : >> { %8217 = vst [vmem:[#allocation27_spill] sm:$0xff] %v5270_v60  ;;  %v178_v32 = vmul.f32 %v5128_v2, %v5287_v38  ;;  %v179_v33 = vmul.f32 %v5128_v2, %v5290_v21  ;;  %v5319_v50 = vld [vmem:[%s5119_s2 + $0x79] sm:$0xff]  ;;  %v5322_v51 = vld [vmem:[%s5119_s2 + $0x81] sm:$0xff]  ;;  %v180_v56 = vmul.f32 %v5128_v2, %v5293_v22  ;;  %v181_v57 = vmul.f32 %v5128_v2, %v5296_v23  ;;  %v5333_v62 = vld [vmem:[%s5119_s2 + $0x91] sm:$0xff] }
  0x34   : >> { %8218 = vst [vmem:[#allocation28_spill] sm:$0xff] %v5281_v14  ;;  %v182_v58 = vmul.f32 %v5128_v2, %v5299_v24  ;;  %v183_v61 = vmul.f32 %v5128_v2, %v5302_v27  ;;  %v184_v14 = vmul.f32 %v5128_v2, %v5305_v45  ;;  %v191_v60 = vadd.f32 %v177_v29, %v148_v3  ;;  %v5377_v29 = vld [vmem:[%s5119_s2 + $0x330] sm:$0xff] }
  0x35   : >> { %8219 = vst [vmem:[#allocation29_spill] sm:$0xff] %v5284_v15  ;;  %v5336_v15 = vld [vmem:[%s5119_s2 + $0x99] sm:$0xff]  ;;  %v193_v55 = vadd.f32 %v179_v33, %v150_v35  ;;  %v5362_v35 = vld [vmem:[%s5119_s2 + $0x2f0] sm:$0xff] }
  0x36   : >> { %8220 = vst [vmem:[#allocation30_spill] sm:$0xff] %v5287_v38  ;;  %v188_v38 = vmul.f32 %v5128_v2, %v5333_v62 }
  0x37   : >> { %8221 = vst [vmem:[#allocation31_spill] sm:$0xff] %v5290_v21  ;;  %v160_v21 = vadd.f32 %v146_v5, %v5216_v39  ;;  %v197_v39 = vadd.f32 %v183_v61, %v154_v54  ;;  %v5353_v5 = vld [vmem:[%s5119_s2 + $0x2d0] sm:$0xff]  ;;  %v5374_v54 = vld [vmem:[%s5119_s2 + $0x320] sm:$0xff]  ;;  %v229_v61 = vmul.f32 %v5377_v29, %v5134_v6 }
  0x38   : >> { %8222 = vst [vmem:[#allocation32_spill] sm:$0xff] %v5293_v22  ;;  %v185_v22 = vmul.f32 %v5128_v2, %v5316_v49 }
  0x39   : >> { %8223 = vst [vmem:[#allocation33_spill] sm:$0xff] %v5296_v23  ;;  %v186_v23 = vmul.f32 %v5128_v2, %v5319_v50 }
  0x3a   : >> { %8224 = vst [vmem:[#allocation34_spill] sm:$0xff] %v5299_v24  ;;  %v187_v24 = vmul.f32 %v5128_v2, %v5322_v51  ;;  %v199_v3 = vadd.f32 %v185_v22, %v156_v1  ;;  %v5391_v22 = vld [vmem:[%s5119_s2 + $0x348] sm:$0xff] }
  0x3b   : >> { %8225 = vst [vmem:[#allocation35_spill] sm:$0xff] %v5302_v27  ;;  %v159_v27 = vadd.f32 %v145_v4, %v5201_v34  ;;  %v195_v34 = vadd.f32 %v181_v57, %v152_v0  ;;  %v196_v4 = vadd.f32 %v182_v58, %v153_v53  ;;  %v5368_v0 = vld [vmem:[%s5119_s2 + $0x308] sm:$0xff]  ;;  %v5371_v53 = vld [vmem:[%s5119_s2 + $0x318] sm:$0xff]  ;;  %v5405_v57 = vld [vmem:[%s5119_s2 + $0x360] sm:$0xff] }
  0x3c   : >> { %8226 = vst [vmem:[#allocation36_spill] sm:$0xff] %v5305_v45  ;;  %v189_v45 = vmul.f32 %v5128_v2, %v5336_v15  ;;  %v5359_v2 = vld [vmem:[%s5119_s2 + $0x2e8] sm:$0xff]  ;;  %v227_v33 = vmul.f32 %v5371_v53, %v5134_v6 }
  0x3d   : >> { %8227 = vst [vmem:[#allocation37_spill] sm:$0xff] %v5316_v49  ;;  %v190_v49 = vadd.f32 %v176_v28, %v147_v63  ;;  %v198_v63 = vadd.f32 %v184_v14, %v155_v43  ;;  %v201_v28 = vadd.f32 %v187_v24, %v158_v44  ;;  %v221_v14 = vmul.f32 %v5353_v5, %v5134_v6  ;;  %v5388_v44 = vld [vmem:[%s5119_s2 + $0x338] sm:$0xff]  ;;  %v5408_v58 = vld [vmem:[%s5119_s2 + $0x368] sm:$0xff] }
  0x3e   : >> { %8228 = vst [vmem:[#allocation38_spill] sm:$0xff] %v5319_v50  ;;  %v192_v50 = vadd.f32 %v178_v32, %v149_v7  ;;  %v200_v7 = vadd.f32 %v186_v23, %v157_v16  ;;  %v223_v43 = vmul.f32 %v5359_v2, %v5134_v6  ;;  %v224_v16 = vmul.f32 %v5362_v35, %v5134_v6  ;;  %v5394_v23 = vld [vmem:[%s5119_s2 + $0x350] sm:$0xff] }
  0x3f   : >> { %8229 = vst [vmem:[#allocation39_spill] sm:$0xff] %v5322_v51  ;;  %v194_v51 = vadd.f32 %v180_v56, %v151_v30  ;;  %v5365_v30 = vld [vmem:[%s5119_s2 + $0x300] sm:$0xff]  ;;  %v226_v32 = vmul.f32 %v5368_v0, %v5134_v6  ;;  %v228_v56 = vmul.f32 %v5374_v54, %v5134_v6 }
  0x40   : >> { %8230 = vst [vmem:[#allocation40_spill] sm:$0xff] %v5333_v62  ;;  %v5356_v62 = vld [vmem:[%s5119_s2 + $0x2d8] sm:$0xff]  ;;  %v225_v24 = vmul.f32 %v5365_v30, %v5134_v6 }
  0x41   : >> { %8231 = vst [vmem:[#allocation41_spill] sm:$0xff] %v5336_v15  ;;  %v222_v1 = vmul.f32 %v5356_v62, %v5134_v6 }
  0x42   : >> { %8232 = vst [vmem:[#allocation42_spill] sm:$0xff] %v5353_v5  ;;  %v237_v5 = vadd.f32 %v223_v43, %v192_v50  ;;  %v239_v15 = vadd.f32 %v225_v24, %v194_v51  ;;  %v5435_v51 = vld [vmem:[%s5119_s2 + $0x468] sm:$0xff] }
  0x43   : >> { %8233 = vst [vmem:[#allocation43_spill] sm:$0xff] %v5356_v62  ;;  %v235_v62 = vadd.f32 %v221_v14, %v190_v49  ;;  %v243_v49 = vadd.f32 %v229_v61, %v198_v63  ;;  %v270_v43 = vmul.f32 %v5435_v51, %v5144_v10 }
  0x44   : >> { %8234 = vst [vmem:[#allocation44_spill] sm:$0xff] %v5359_v2  ;;  %v233_v2 = vmul.f32 %v5405_v57, %v5134_v6 }
  0x45   : >> { %8235 = vst [vmem:[#allocation45_spill] sm:$0xff] %v5362_v35  ;;  %v203_v35 = vadd.f32 %v189_v45, %v160_v21  ;;  %v242_v21 = vadd.f32 %v228_v56, %v197_v39  ;;  %v5426_v45 = vld [vmem:[%s5119_s2 + $0x440] sm:$0xff]  ;;  %v5444_v39 = vld [vmem:[%s5119_s2 + $0x488] sm:$0xff]  ;;  %v5478_v56 = vld [vmem:[%s5119_s2 + $0x4d0] sm:$0xff] }
  0x46   : >> { %8236 = vst [vmem:[#allocation46_spill] sm:$0xff] %v5365_v30  ;;  %v230_v30 = vmul.f32 %v5388_v44, %v5134_v6 }
  0x47   : >> { %8237 = vst [vmem:[#allocation47_spill] sm:$0xff] %v5368_v0  ;;  %v231_v0 = vmul.f32 %v5391_v22, %v5134_v6 }
  0x48   : >> { %8238 = vst [vmem:[#allocation48_spill] sm:$0xff] %v5371_v53  ;;  %v232_v53 = vmul.f32 %v5394_v23, %v5134_v6 }
  0x49   : >> { %8239 = vst [vmem:[#allocation49_spill] sm:$0xff] %v5374_v54  ;;  %v202_v54 = vadd.f32 %v188_v38, %v159_v27  ;;  %v241_v38 = vadd.f32 %v227_v33, %v196_v4  ;;  %v5423_v27 = vld [vmem:[%s5119_s2 + $0x438] sm:$0xff]  ;;  %v245_v50 = vadd.f32 %v231_v0, %v200_v7  ;;  %v5441_v4 = vld [vmem:[%s5119_s2 + $0x480] sm:$0xff]  ;;  %v5461_v0 = vld [vmem:[%s5119_s2 + $0x4b0] sm:$0xff] }
  0x4a   : >> { %8240 = vst [vmem:[#allocation50_spill] sm:$0xff] %v5377_v29  ;;  %v234_v29 = vmul.f32 %v5408_v58, %v5134_v6  ;;  %v246_v14 = vadd.f32 %v232_v53, %v201_v28  ;;  %v266_v63 = vmul.f32 %v5423_v27, %v5144_v10  ;;  %v5464_v53 = vld [vmem:[%s5119_s2 + $0x4b8] sm:$0xff]  ;;  %v272_v24 = vmul.f32 %v5441_v4, %v5144_v10  ;;  %v5475_v33 = vld [vmem:[%s5119_s2 + $0x4c8] sm:$0xff] }
  0x4b   : >> { %8241 = vst [vmem:[#allocation51_spill] sm:$0xff] %v5388_v44  ;;  %v236_v44 = vadd.f32 %v222_v1, %v191_v60  ;;  %v244_v60 = vadd.f32 %v230_v30, %v199_v3  ;;  %v5447_v1 = vld [vmem:[%s5119_s2 + $0x498] sm:$0xff]  ;;  %v267_v3 = vmul.f32 %v5426_v45, %v5144_v10  ;;  %v5458_v30 = vld [vmem:[%s5119_s2 + $0x4a0] sm:$0xff] }
  0x4c   : >> { %8242 = vst [vmem:[#allocation52_spill] sm:$0xff] %v5391_v22  ;;  %v238_v22 = vadd.f32 %v224_v16, %v193_v55  ;;  %v5432_v55 = vld [vmem:[%s5119_s2 + $0x458] sm:$0xff]  ;;  %v274_v61 = vmul.f32 %v5447_v1, %v5144_v10 }
  0x4d   : >> { %8243 = vst [vmem:[#allocation53_spill] sm:$0xff] %v5394_v23  ;;  %v240_v23 = vadd.f32 %v226_v32, %v195_v34  ;;  %v5438_v34 = vld [vmem:[%s5119_s2 + $0x470] sm:$0xff]  ;;  %v269_v28 = vmul.f32 %v5432_v55, %v5144_v10  ;;  %v273_v32 = vmul.f32 %v5444_v39, %v5144_v10 }
  0x4e   : >> { %8244 = vst [vmem:[#allocation54_spill] sm:$0xff] %v5405_v57  ;;  %v271_v16 = vmul.f32 %v5438_v34, %v5144_v10  ;;  %v275_v57 = vmul.f32 %v5458_v30, %v5144_v10 }
  0x4f   : >> { %8245 = vst [vmem:[#allocation55_spill] sm:$0xff] %v5408_v58  ;;  %v5429_v58 = vld [vmem:[%s5119_s2 + $0x450] sm:$0xff] }
  0x50   : >> { %8246 = vst [vmem:[#allocation56_spill] sm:$0xff] %v5423_v27  ;;  %v268_v7 = vmul.f32 %v5429_v58, %v5144_v10  ;;  %v284_v27 = vadd.f32 %v270_v43, %v239_v15  ;;  %v5505_v15 = vld [vmem:[%s5119_s2 + $0x301] sm:$0xff] }
  0x51   : >> { %8247 = vst [vmem:[#allocation57_spill] sm:$0xff] %v5426_v45 }
  0x52   : >> { %8248 = vst [vmem:[#allocation58_spill] sm:$0xff] %v5429_v58  ;;  %v280_v58 = vadd.f32 %v266_v63, %v235_v62  ;;  %v282_v45 = vadd.f32 %v268_v7, %v237_v5  ;;  %v288_v62 = vadd.f32 %v274_v61, %v243_v49  ;;  %v313_v7 = vmul.f32 %v5505_v15, %v5159_v17 }
  0x53   : >> { %8249 = vst [vmem:[#allocation59_spill] sm:$0xff] %v5432_v55  ;;  %v278_v55 = vmul.f32 %v5475_v33, %v5144_v10 }
  0x54   : >> { %8250 = vst [vmem:[#allocation60_spill] sm:$0xff] %v5435_v51  ;;  %v248_v51 = vadd.f32 %v234_v29, %v203_v35  ;;  %v287_v35 = vadd.f32 %v273_v32, %v242_v21  ;;  %v5496_v29 = vld [vmem:[%s5119_s2 + $0x2d9] sm:$0xff]  ;;  %v5514_v21 = vld [vmem:[%s5119_s2 + $0x321] sm:$0xff]  ;;  %v5548_v32 = vld [vmem:[%s5119_s2 + $0x369] sm:$0xff] }
  0x55   : >> { %8251 = vst [vmem:[#allocation61_spill] sm:$0xff] %v5438_v34  ;;  %v276_v34 = vmul.f32 %v5461_v0, %v5144_v10 }
  0x56   : >> { %8252 = vst [vmem:[#allocation62_spill] sm:$0xff] %v5441_v4  ;;  %v277_v4 = vmul.f32 %v5464_v53, %v5144_v10 }
  0x57   : >> { %8253 = vst [vmem:[#allocation63_spill] sm:$0xff] %v5444_v39  ;;  %v247_v39 = vadd.f32 %v233_v2, %v202_v54  ;;  %v286_v2 = vadd.f32 %v272_v24, %v241_v38  ;;  %v5493_v54 = vld [vmem:[%s5119_s2 + $0x2d1] sm:$0xff]  ;;  %v290_v5 = vadd.f32 %v276_v34, %v245_v50  ;;  %v5511_v38 = vld [vmem:[%s5119_s2 + $0x319] sm:$0xff]  ;;  %v5531_v34 = vld [vmem:[%s5119_s2 + $0x349] sm:$0xff] }
  0x58   : >> { %8254 = vst [vmem:[#allocation64_spill] sm:$0xff] %v5447_v1  ;;  %v279_v1 = vmul.f32 %v5478_v56, %v5144_v10  ;;  %v5499_v10 = vld [vmem:[%s5119_s2 + $0x2e9] sm:$0xff]  ;;  %v291_v63 = vadd.f32 %v277_v4, %v246_v14  ;;  %v309_v49 = vmul.f32 %v5493_v54, %v5159_v17  ;;  %v5528_v14 = vld [vmem:[%s5119_s2 + $0x339] sm:$0xff]  ;;  %v5534_v4 = vld [vmem:[%s5119_s2 + $0x351] sm:$0xff]  ;;  %v315_v43 = vmul.f32 %v5511_v38, %v5159_v17 }
  0x59   : >> { %8255 = vst [vmem:[#allocation65_spill] sm:$0xff] %v5458_v30  ;;  %v281_v30 = vadd.f32 %v267_v3, %v236_v44  ;;  %v289_v44 = vadd.f32 %v275_v57, %v244_v60  ;;  %v5517_v3 = vld [vmem:[%s5119_s2 + $0x331] sm:$0xff]  ;;  %v310_v57 = vmul.f32 %v5496_v29, %v5159_v17  ;;  %v311_v60 = vmul.f32 %v5499_v10, %v5159_v17  ;;  %v5545_v24 = vld [vmem:[%s5119_s2 + $0x361] sm:$0xff] }
  0x5a   : >> { %8256 = vst [vmem:[#allocation66_spill] sm:$0xff] %v5461_v0  ;;  %v283_v0 = vadd.f32 %v269_v28, %v238_v22  ;;  %v5502_v22 = vld [vmem:[%s5119_s2 + $0x2f1] sm:$0xff]  ;;  %v317_v61 = vmul.f32 %v5517_v3, %v5159_v17  ;;  %v329_v48 = vadd.f32 %v315_v43, %v286_v2 }
  0x5b   : >> { %8257 = vst [vmem:[#allocation67_spill] sm:$0xff] %v5464_v53  ;;  %v285_v53 = vadd.f32 %v271_v16, %v240_v23  ;;  %v5508_v23 = vld [vmem:[%s5119_s2 + $0x309] sm:$0xff]  ;;  %v312_v50 = vmul.f32 %v5502_v22, %v5159_v17  ;;  %v316_v16 = vmul.f32 %v5514_v21, %v5159_v17 }
  0x5c   : >> { %8258 = vst [vmem:[#allocation68_spill] sm:$0xff] %v5475_v33  ;;  %v314_v28 = vmul.f32 %v5508_v23, %v5159_v17  ;;  %v331_v47 = vadd.f32 %v317_v61, %v288_v62  ;;  %v5582_v2 = vld [vmem:[%s5119_s2 + $0xb0] sm:$0xff] }
  0x5d   : >> { %8259 = vst [vmem:[#allocation69_spill] sm:$0xff] %v5478_v56  ;;  %v325_v56 = vadd.f32 %v311_v60, %v282_v45  ;;  %v326_v33 = vadd.f32 %v312_v50, %v283_v0  ;;  %v5571_v45 = vld [vmem:[%s5119_s2 + $0xa8] sm:$0xff]  ;;  %v362_v0 = vmul.f32 %v5193_v31, %v5162_v18 }
  0x5e   : >> { %8260 = vst [vmem:[#allocation70_spill] sm:$0xff] %v5493_v54  ;;  %v323_v54 = vadd.f32 %v309_v49, %v280_v58  ;;  %v328_v6 = vadd.f32 %v314_v28, %v285_v53  ;;  %v359_v58 = vmul.f32 %v5193_v31, %v5147_v11  ;;  %v365_v11 = vmul.f32 %v5193_v31, %v5178_v25  ;;  %v5614_v49 = vld [vmem:[%s5119_s2 + $0x210] sm:$0xff]  ;;  %v8281_v60 = vld [vmem:[#allocation24_spill] sm:$0xff]  ;;  %v8284_v28 = vld [vmem:[#allocation27_spill] sm:$0xff] }
  0x5f   : >> { %8261 = vst [vmem:[#allocation71_spill] sm:$0xff] %v5496_v29  ;;  %v322_v29 = vmul.f32 %v5548_v32, %v5159_v17 }
  0x60   : >> { %8262 = vst [vmem:[#allocation72_spill] sm:$0xff] %v5499_v10  ;;  %v293_v10 = vadd.f32 %v279_v1, %v248_v51  ;;  %v358_v1 = vmul.f32 %v5193_v31, %v5141_v9  ;;  %v364_v9 = vmul.f32 %v5193_v31, %v5168_v20 }
  0x61   : >> { %8263 = vst [vmem:[#allocation73_spill] sm:$0xff] %v5502_v22  ;;  %v318_v22 = vmul.f32 %v5528_v14, %v5159_v17 }
  0x62   : >> { %8264 = vst [vmem:[#allocation74_spill] sm:$0xff] %v5505_v15  ;;  %v319_v15 = vmul.f32 %v5531_v34, %v5159_v17  ;;  %v336_v18 = vadd.f32 %v322_v29, %v293_v10  ;;  %v5595_v29 = vstv %s5106_s25 }
  0x63   : >> { %8265 = vst [vmem:[#allocation75_spill] sm:$0xff] %v5508_v23  ;;  %v320_v23 = vmul.f32 %v5534_v4, %v5159_v17  ;;  %v408_v50 = vmul.f32 %v8281_v60, %v5595_v29  ;;  %v411_v43 = vmul.f32 %v8284_v28, %v5595_v29  ;;  %v412_v61 = vmul.f32 %v5614_v49, %v5595_v29 }
  0x64   : >> { %8266 = vst [vmem:[#allocation76_spill] sm:$0xff] %v5511_v38  ;;  %v292_v38 = vadd.f32 %v278_v55, %v247_v39  ;;  %v333_v55 = vadd.f32 %v319_v15, %v290_v5  ;;  %v357_v39 = vmul.f32 %v5193_v31, %v5138_v8  ;;  %v363_v8 = vmul.f32 %v5193_v31, %v5165_v19 }
  0x65   : >> { %8267 = vst [vmem:[#allocation77_spill] sm:$0xff] %v5514_v21  ;;  %v321_v21 = vmul.f32 %v5545_v24, %v5159_v17  ;;  %v334_v51 = vadd.f32 %v320_v23, %v291_v63  ;;  %v368_v19 = vmul.f32 %v5582_v2, %v5193_v31 }
  0x66   : >> { %8268 = vst [vmem:[#allocation78_spill] sm:$0xff] %v5517_v3  ;;  %v324_v3 = vadd.f32 %v310_v57, %v281_v30  ;;  %v361_v30 = vmul.f32 %v5193_v31, %v5153_v13  ;;  %v367_v13 = vmul.f32 %v5571_v45, %v5193_v31  ;;  %v371_v62 = vadd.f32 %v357_v39, %v325_v56  ;;  %v8277_v56 = vld [vmem:[#allocation22_spill] sm:$0xff] }
  0x67   : >> { %8269 = vst [vmem:[#allocation79_spill] sm:$0xff] %v5528_v14  ;;  %v327_v14 = vadd.f32 %v313_v7, %v284_v27  ;;  %v360_v27 = vmul.f32 %v5193_v31, %v5150_v12  ;;  %v335_v53 = vadd.f32 %v321_v21, %v292_v38  ;;  %v366_v12 = vmul.f32 %v5193_v31, %v5181_v26  ;;  %v8278_v21 = vld [vmem:[#allocation23_spill] sm:$0xff]  ;;  %v5617_v57 = vld [vmem:[%s5119_s2 + $0x218] sm:$0xff] }
  0x68   : >> { %8270 = vst [vmem:[#allocation80_spill] sm:$0xff] %v5531_v34  ;;  %v330_v34 = vadd.f32 %v316_v16, %v287_v35  ;;  %v369_v35 = vadd.f32 %v5249_v52, %v323_v54  ;;  %v370_v20 = vadd.f32 %v5267_v59, %v324_v3  ;;  %v375_v25 = vadd.f32 %v361_v30, %v329_v48 }
  0x69   : >> { %8271 = vst [vmem:[#allocation81_spill] sm:$0xff] %v5534_v4  ;;  %v332_v4 = vadd.f32 %v318_v22, %v289_v44  ;;  %v372_v44 = vadd.f32 %v358_v1, %v326_v33  ;;  %v373_v5 = vadd.f32 %v359_v58, %v327_v14  ;;  %v374_v63 = vadd.f32 %v360_v27, %v328_v6  ;;  %v8282_v14 = vld [vmem:[#allocation25_spill] sm:$0xff] }
  0x6a   : >> { %8272 = vst [vmem:[#allocation82_spill] sm:$0xff] %v5545_v24  ;;  %v376_v22 = vadd.f32 %v362_v0, %v330_v34  ;;  %v377_v26 = vadd.f32 %v363_v8, %v331_v47  ;;  %v379_v23 = vadd.f32 %v365_v11, %v333_v55  ;;  %v380_v38 = vadd.f32 %v366_v12, %v334_v51 }
  0x6b   : >> { %8273 = vst [vmem:[#allocation83_spill] sm:$0xff] %v5548_v32  ;;  %v378_v15 = vadd.f32 %v364_v9, %v332_v4  ;;  %v381_v10 = vadd.f32 %v367_v13, %v335_v53  ;;  %v400_v52 = vmul.f32 %v5207_v36, %v5595_v29  ;;  %v401_v59 = vmul.f32 %v5210_v37, %v5595_v29  ;;  %v8283_v4 = vld [vmem:[#allocation26_spill] sm:$0xff] }
  0x6c   : >> { %8274 = vst [vmem:[#allocation84_spill] sm:$0xff] %v5571_v45  ;;  %v402_v6 = vmul.f32 %v5219_v40, %v5595_v29  ;;  %v403_v48 = vmul.f32 %v5222_v41, %v5595_v29  ;;  %v404_v47 = vmul.f32 %v5225_v42, %v5595_v29  ;;  %v405_v33 = vmul.f32 %v5234_v46, %v5595_v29 }
  0x6d   : >> { %8275 = vst [vmem:[#allocation85_spill] sm:$0xff] %v5582_v2  ;;  %v406_v54 = vmul.f32 %v8277_v56, %v5595_v29  ;;  %v407_v3 = vmul.f32 %v8278_v21, %v5595_v29  ;;  %v409_v34 = vmul.f32 %v8282_v14, %v5595_v29  ;;  %v410_v7 = vmul.f32 %v8283_v4, %v5595_v29  ;;  %v8287_v2 = vld [vmem:[#allocation31_spill] sm:$0xff] }
  0x6e   : >> { %8276 = vst [vmem:[#allocation86_spill] sm:$0xff] %v5595_v29  ;;  %v382_v16 = vadd.f32 %v368_v19, %v336_v18  ;;  %v413_v55 = vmul.f32 %v5617_v57, %v5595_v29  ;;  %v5632_v51 = vstv %s5108_s27  ;;  %v414_v39 = vadd.f32 %v400_v52, %v369_v35  ;;  %v8286_v18 = vld [vmem:[#allocation30_spill] sm:$0xff]  ;;  %v8288_v35 = vld [vmem:[#allocation32_spill] sm:$0xff] }
  0x6f   : >> { %8279 = vst [vmem:[#allocation22_spill] sm:$0xff] %v5614_v49  ;;  %v415_v1 = vadd.f32 %v401_v59, %v370_v20  ;;  %v416_v58 = vadd.f32 %v402_v6, %v371_v62  ;;  %v417_v27 = vadd.f32 %v403_v48, %v372_v44  ;;  %v418_v30 = vadd.f32 %v404_v47, %v373_v5  ;;  %v8289_v62 = vld [vmem:[#allocation33_spill] sm:$0xff]  ;;  %v8290_v5 = vld [vmem:[#allocation34_spill] sm:$0xff]  ;;  %v8297_v47 = vld [vmem:[#allocation39_spill] sm:$0xff] }
  0x70   : >> { %8280 = vst [vmem:[#allocation23_spill] sm:$0xff] %v5617_v57  ;;  %v419_v0 = vadd.f32 %v405_v33, %v374_v63  ;;  %v420_v8 = vadd.f32 %v406_v54, %v375_v25  ;;  %v421_v9 = vadd.f32 %v407_v3, %v376_v22  ;;  %v422_v53 = vadd.f32 %v408_v50, %v377_v26  ;;  %v8291_v25 = vld [vmem:[#allocation35_spill] sm:$0xff]  ;;  %v8292_v26 = vld [vmem:[#allocation36_spill] sm:$0xff]  ;;  %v5654_v59 = vld [vmem:[%s5119_s2 + $0xb1] sm:$0xff] }
  0x71   : >> { %8285 = vst [vmem:[#allocation24_spill] sm:$0xff] %v5632_v51  ;;  %v423_v11 = vadd.f32 %v409_v34, %v378_v15  ;;  %v424_v12 = vadd.f32 %v410_v7, %v379_v23  ;;  %v425_v13 = vadd.f32 %v411_v43, %v380_v38  ;;  %v443_v19 = vmul.f32 %v5632_v51, %v8286_v18  ;;  %v8293_v23 = vld [vmem:[#allocation37_spill] sm:$0xff]  ;;  %v8296_v6 = vld [vmem:[#allocation38_spill] sm:$0xff]  ;;  %v8298_v54 = vld [vmem:[#allocation40_spill] sm:$0xff] }
  0x72   : >> { %v444_v45 = vmul.f32 %v5632_v51, %v8287_v2  ;;  %v445_v20 = vmul.f32 %v5632_v51, %v8288_v35  ;;  %v446_v44 = vmul.f32 %v5632_v51, %v8289_v62  ;;  %v447_v63 = vmul.f32 %v5632_v51, %v8290_v5  ;;  %v5651_v52 = vld [vmem:[%s5119_s2 + $0xa9] sm:$0xff]  ;;  %8295 = vst [vmem:[#allocation26_spill] sm:$0xff] %v5654_v59 }
  0x73   : >> { %v448_v22 = vmul.f32 %v5632_v51, %v8291_v25  ;;  %v449_v15 = vmul.f32 %v5632_v51, %v8292_v26  ;;  %v450_v38 = vmul.f32 %v5632_v51, %v8293_v23  ;;  %8294 = vst [vmem:[#allocation25_spill] sm:$0xff] %v5651_v52  ;;  %v451_v48 = vmul.f32 %v5632_v51, %v8296_v6  ;;  %v8299_v50 = vld [vmem:[#allocation41_spill] sm:$0xff] }
  0x74   : >> { %v452_v33 = vmul.f32 %v5632_v51, %v8297_v47  ;;  %v453_v3 = vmul.f32 %v5632_v51, %v8298_v54  ;;  %v454_v34 = vmul.f32 %v5632_v51, %v8299_v50  ;;  %v5664_v7 = vadd.f32 %v412_v61, %v381_v10 }
  0x75   : >> { %v5666_v43 = vadd.f32 %v413_v55, %v382_v16  ;;  %v5670_v29 = vmul.f32 %v5651_v52, %v5632_v51  ;;  %v5674_v57 = vmul.f32 %v5654_v59, %v5632_v51  ;;  %v5676_v49 = vadd.f32 %v443_v19, %v414_v39  ;;  %v5762_v51 = vld [vmem:[%s5119_s2 + $0x189] sm:$0xff]  ;;  %v5765_v59 = vld [vmem:[%s5119_s2 + $0x199] sm:$0xff] }
  0x76   : >> { %8300 = vst [vmem:[#allocation27_spill] sm:$0xff] %v5664_v7  ;;  %v5678_v31 = vadd.f32 %v444_v45, %v415_v1  ;;  %v5680_v17 = vadd.f32 %v445_v20, %v416_v58  ;;  %v5682_v32 = vadd.f32 %v446_v44, %v417_v27  ;;  %v5684_v10 = vadd.f32 %v447_v63, %v418_v30  ;;  %v8316_v1 = vld [vmem:[#allocation13_spill] sm:$0xff]  ;;  %v8317_v58 = vld [vmem:[#allocation19_spill] sm:$0xff] }
  0x77   : >> { %8301 = vst [vmem:[#allocation30_spill] sm:$0xff] %v5666_v43  ;;  %v5686_v16 = vadd.f32 %v448_v22, %v419_v0  ;;  %v5688_v61 = vadd.f32 %v449_v15, %v420_v8  ;;  %v5690_v55 = vadd.f32 %v450_v38, %v421_v9  ;;  %v5692_v43 = vadd.f32 %v451_v48, %v422_v53  ;;  %v8318_v30 = vld [vmem:[#allocation21_spill] sm:$0xff]  ;;  %v8319_v38 = vld [vmem:[#allocation14_spill] sm:$0xff]  ;;  %v8320_v48 = vld [vmem:[#allocation28_spill] sm:$0xff] }
  0x78   : >> { %8302 = vst [vmem:[#allocation31_spill] sm:$0xff] %v5670_v29  ;;  %v5694_v29 = vadd.f32 %v452_v33, %v423_v11  ;;  %v5696_v39 = vadd.f32 %v453_v3, %v424_v12  ;;  %v5698_v45 = vadd.f32 %v454_v34, %v425_v13  ;;  %v471_v27 = vmul.f32 %v8317_v58, %v8316_v1  ;;  %v8321_v3 = vld [vmem:[#allocation29_spill] sm:$0xff]  ;;  %v5759_v7 = vld [vmem:[%s5119_s2 + $0x181] sm:$0xff] }
  0x79   : >> { %8303 = vst [vmem:[#allocation32_spill] sm:$0xff] %v5674_v57  ;;  %v472_v19 = vmul.f32 %v8318_v30, %v8316_v1  ;;  %v473_v0 = vmul.f32 %v5207_v36, %v8316_v1  ;;  %v474_v8 = vmul.f32 %v5210_v37, %v8316_v1  ;;  %v475_v9 = vmul.f32 %v5219_v40, %v8316_v1 }
  0x7a   : >> { %8304 = vst [vmem:[#allocation87_spill] sm:$0xff] %v5676_v49  ;;  %v476_v53 = vmul.f32 %v5222_v41, %v8316_v1  ;;  %v477_v11 = vmul.f32 %v5225_v42, %v8316_v1  ;;  %v478_v12 = vmul.f32 %v5234_v46, %v8316_v1  ;;  %v479_v13 = vmul.f32 %v8277_v56, %v8316_v1 }
  0x7b   : >> { %8305 = vst [vmem:[#allocation88_spill] sm:$0xff] %v5678_v31  ;;  %v480_v20 = vmul.f32 %v8278_v21, %v8316_v1  ;;  %v481_v44 = vmul.f32 %v8281_v60, %v8316_v1  ;;  %v482_v63 = vmul.f32 %v8282_v14, %v8316_v1  ;;  %v483_v22 = vmul.f32 %v8283_v4, %v8316_v1 }
  0x7c   : >> { %8306 = vst [vmem:[#allocation89_spill] sm:$0xff] %v5680_v17  ;;  %v484_v15 = vmul.f32 %v8284_v28, %v8316_v1  ;;  %v485_v33 = vmul.f32 %v8320_v48, %v8319_v38  ;;  %v486_v34 = vmul.f32 %v8321_v3, %v8319_v38  ;;  %v487_v58 = vmul.f32 %v8286_v18, %v8319_v38 }
  0x7d   : >> { %8307 = vst [vmem:[#allocation90_spill] sm:$0xff] %v5682_v32  ;;  %v488_v30 = vmul.f32 %v8287_v2, %v8319_v38  ;;  %v490_v1 = vmul.f32 %v8289_v62, %v8319_v38  ;;  %v491_v48 = vmul.f32 %v8290_v5, %v8319_v38  ;;  %v492_v3 = vmul.f32 %v8291_v25, %v8319_v38  ;;  %v3791_v32 = vld [vmem:[%s5119_s2 + $0x171] sm:$0xff]  ;;  %v8335_v25 = vld [vmem:[#allocation16_spill] sm:$0xff] }
  0x7e   : >> { %8308 = vst [vmem:[#allocation91_spill] sm:$0xff] %v5684_v10  ;;  %v3790_v10 = vld [vmem:[%s5119_s2 + $0x169] sm:$0xff]  ;;  %v499_v17 = vadd.f32 %v485_v33, %v471_v27  ;;  %v500_v31 = vadd.f32 %v486_v34, %v472_v19  ;;  %v501_v49 = vadd.f32 %v487_v58, %v473_v0  ;;  %v5768_v27 = vld [vmem:[%s5119_s2 + $0x1a1] sm:$0xff]  ;;  %v5771_v19 = vld [vmem:[%s5119_s2 + $0x1b1] sm:$0xff] }
  0x7f   : >> { %8309 = vst [vmem:[#allocation92_spill] sm:$0xff] %v5686_v16  ;;  %v498_v16 = vmul.f32 %v8299_v50, %v8319_v38  ;;  %v502_v57 = vadd.f32 %v488_v30, %v474_v8  ;;  %v506_v50 = vadd.f32 %v492_v3, %v478_v12  ;;  %v5774_v0 = vld [vmem:[%s5119_s2 + $0x1b9] sm:$0xff]  ;;  %v5777_v30 = vld [vmem:[%s5119_s2 + $0x1c9] sm:$0xff]  ;;  %v5792_v12 = vld [vmem:[%s5119_s2 + $0x201] sm:$0xff] }
  0x80   : >> { %8310 = vst [vmem:[#allocation93_spill] sm:$0xff] %v5688_v61  ;;  %v497_v61 = vmul.f32 %v8298_v54, %v8319_v38  ;;  %v504_v54 = vadd.f32 %v490_v1, %v476_v53  ;;  %v5786_v53 = vld [vmem:[%s5119_s2 + $0x1e9] sm:$0xff] }
  0x81   : >> { %8311 = vst [vmem:[#allocation94_spill] sm:$0xff] %v5690_v55  ;;  %v496_v55 = vmul.f32 %v8297_v47, %v8319_v38  ;;  %v5780_v47 = vld [vmem:[%s5119_s2 + $0x1d1] sm:$0xff]  ;;  %v8336_v5 = vld [vmem:[#allocation56_spill] sm:$0xff] }
  0x82   : >> { %8312 = vst [vmem:[#allocation95_spill] sm:$0xff] %v5692_v43  ;;  %v495_v43 = vmul.f32 %v8296_v6, %v8319_v38  ;;  %v511_v1 = vadd.f32 %v497_v61, %v483_v22  ;;  %v8337_v62 = vld [vmem:[#allocation57_spill] sm:$0xff] }
  0x83   : >> { %8313 = vst [vmem:[#allocation96_spill] sm:$0xff] %v5694_v29  ;;  %v494_v29 = vmul.f32 %v8293_v23, %v8319_v38  ;;  %v510_v58 = vadd.f32 %v496_v55, %v482_v63 }
  0x84   : >> { %8314 = vst [vmem:[#allocation97_spill] sm:$0xff] %v5696_v39  ;;  %v493_v39 = vmul.f32 %v8292_v26, %v8319_v38  ;;  %v509_v34 = vadd.f32 %v495_v43, %v481_v44 }
  0x85   : >> { %8315 = vst [vmem:[#allocation98_spill] sm:$0xff] %v5698_v45  ;;  %v489_v45 = vmul.f32 %v8288_v35, %v8319_v38  ;;  %v505_v38 = vadd.f32 %v491_v48, %v477_v11  ;;  %v508_v33 = vadd.f32 %v494_v29, %v480_v20  ;;  %v5789_v11 = vld [vmem:[%s5119_s2 + $0x1f9] sm:$0xff] }
  0x86   : >> { %8322 = vst [vmem:[#allocation19_spill] sm:$0xff] %v5759_v7  ;;  %v507_v8 = vadd.f32 %v493_v39, %v479_v13  ;;  %v8334_v48 = vld [vmem:[#allocation15_spill] sm:$0xff] }
  0x87   : >> { %8323 = vst [vmem:[#allocation21_spill] sm:$0xff] %v5762_v51  ;;  %v503_v52 = vadd.f32 %v489_v45, %v475_v9  ;;  %v5783_v45 = vld [vmem:[%s5119_s2 + $0x1e1] sm:$0xff]  ;;  %v512_v9 = vadd.f32 %v498_v16, %v484_v15  ;;  %v527_v3 = vmul.f32 %v3790_v10, %v8334_v48  ;;  %v528_v29 = vmul.f32 %v3791_v32, %v8334_v48 }
  0x88   : >> { %8324 = vst [vmem:[#allocation28_spill] sm:$0xff] %v5765_v59  ;;  %v529_v43 = vmul.f32 %v5759_v7, %v8334_v48  ;;  %v530_v55 = vmul.f32 %v5762_v51, %v8334_v48  ;;  %v531_v61 = vmul.f32 %v5765_v59, %v8334_v48  ;;  %v532_v16 = vmul.f32 %v5768_v27, %v8334_v48 }
  0x89   : >> { %8325 = vst [vmem:[#allocation29_spill] sm:$0xff] %v5768_v27  ;;  %v533_v39 = vmul.f32 %v5771_v19, %v8334_v48  ;;  %v534_v10 = vmul.f32 %v5774_v0, %v8334_v48  ;;  %v535_v32 = vmul.f32 %v5777_v30, %v8334_v48  ;;  %v536_v13 = vmul.f32 %v5780_v47, %v8334_v48 }
  0x8a   : >> { %8326 = vst [vmem:[#allocation99_spill] sm:$0xff] %v5771_v19  ;;  %v537_v20 = vmul.f32 %v5783_v45, %v8334_v48  ;;  %v538_v44 = vmul.f32 %v5786_v53, %v8334_v48  ;;  %v539_v63 = vmul.f32 %v5789_v11, %v8334_v48  ;;  %v540_v22 = vmul.f32 %v5792_v12, %v8334_v48 }
  0x8b   : >> { %8327 = vst [vmem:[#allocation100_spill] sm:$0xff] %v5774_v0  ;;  %v541_v15 = vadd.f32 %v527_v3, %v499_v17  ;;  %v542_v0 = vadd.f32 %v528_v29, %v500_v31  ;;  %v543_v19 = vadd.f32 %v529_v43, %v501_v49  ;;  %v544_v27 = vadd.f32 %v530_v55, %v502_v57  ;;  %v8338_v17 = vld [vmem:[#allocation58_spill] sm:$0xff]  ;;  %v8339_v49 = vld [vmem:[#allocation59_spill] sm:$0xff]  ;;  %v8345_v3 = vld [vmem:[#allocation65_spill] sm:$0xff] }
  0x8c   : >> { %8328 = vst [vmem:[#allocation101_spill] sm:$0xff] %v5777_v30  ;;  %v545_v30 = vadd.f32 %v531_v61, %v503_v52  ;;  %v546_v59 = vadd.f32 %v532_v16, %v504_v54  ;;  %v547_v51 = vadd.f32 %v533_v39, %v505_v38  ;;  %v549_v7 = vadd.f32 %v535_v32, %v507_v8  ;;  %v8340_v52 = vld [vmem:[#allocation60_spill] sm:$0xff]  ;;  %v8342_v8 = vld [vmem:[#allocation62_spill] sm:$0xff]  ;;  %v8347_v61 = vld [vmem:[#allocation67_spill] sm:$0xff] }
  0x8d   : >> { %8329 = vst [vmem:[#allocation102_spill] sm:$0xff] %v5780_v47  ;;  %v548_v47 = vadd.f32 %v534_v10, %v506_v50  ;;  %v550_v6 = vadd.f32 %v536_v13, %v508_v33  ;;  %v552_v23 = vadd.f32 %v538_v44, %v510_v58  ;;  %v553_v26 = vadd.f32 %v539_v63, %v511_v1  ;;  %v8341_v50 = vld [vmem:[#allocation61_spill] sm:$0xff]  ;;  %v8344_v1 = vld [vmem:[#allocation64_spill] sm:$0xff]  ;;  %v8346_v43 = vld [vmem:[#allocation66_spill] sm:$0xff] }
  0x8e   : >> { %8330 = vst [vmem:[#allocation103_spill] sm:$0xff] %v5783_v45  ;;  %v551_v45 = vadd.f32 %v537_v20, %v509_v34  ;;  %v556_v48 = vmul.f32 %v8337_v62, %v8335_v25  ;;  %v557_v31 = vmul.f32 %v8338_v17, %v8335_v25  ;;  %v558_v57 = vmul.f32 %v8339_v49, %v8335_v25  ;;  %v8343_v34 = vld [vmem:[#allocation63_spill] sm:$0xff]  ;;  %v8348_v39 = vld [vmem:[#allocation68_spill] sm:$0xff]  ;;  %v8349_v32 = vld [vmem:[#allocation69_spill] sm:$0xff] }
  0x8f   : >> { %8331 = vst [vmem:[#allocation104_spill] sm:$0xff] %v5786_v53  ;;  %v554_v53 = vadd.f32 %v540_v22, %v512_v9  ;;  %v559_v54 = vmul.f32 %v8340_v52, %v8335_v25  ;;  %v560_v38 = vmul.f32 %v8341_v50, %v8335_v25  ;;  %v561_v33 = vmul.f32 %v8342_v8, %v8335_v25  ;;  %v8350_v62 = vld [vmem:[#allocation17_spill] sm:$0xff] }
  0x90   : >> { %8332 = vst [vmem:[#allocation105_spill] sm:$0xff] %v5789_v11  ;;  %v555_v11 = vmul.f32 %v8336_v5, %v8335_v25  ;;  %v562_v58 = vmul.f32 %v8343_v34, %v8335_v25  ;;  %v563_v9 = vmul.f32 %v8344_v1, %v8335_v25  ;;  %v564_v29 = vmul.f32 %v8345_v3, %v8335_v25  ;;  %v8351_v5 = vld [vmem:[#allocation70_spill] sm:$0xff] }
  0x91   : >> { %8333 = vst [vmem:[#allocation106_spill] sm:$0xff] %v5792_v12  ;;  %v565_v55 = vmul.f32 %v8346_v43, %v8335_v25  ;;  %v566_v16 = vmul.f32 %v8347_v61, %v8335_v25  ;;  %v567_v10 = vmul.f32 %v8348_v39, %v8335_v25  ;;  %v568_v13 = vmul.f32 %v8349_v32, %v8335_v25  ;;  %v8352_v12 = vld [vmem:[#allocation71_spill] sm:$0xff] }
  0x92   : >> { %v569_v20 = vadd.f32 %v555_v11, %v541_v15  ;;  %v570_v44 = vadd.f32 %v556_v48, %v542_v0  ;;  %v571_v63 = vadd.f32 %v557_v31, %v543_v19  ;;  %v572_v22 = vadd.f32 %v558_v57, %v544_v27  ;;  %v8353_v0 = vld [vmem:[#allocation72_spill] sm:$0xff]  ;;  %v8354_v27 = vld [vmem:[#allocation73_spill] sm:$0xff]  ;;  %v8360_v48 = vld [vmem:[#allocation79_spill] sm:$0xff] }
  0x93   : >> { %v573_v1 = vadd.f32 %v559_v54, %v545_v30  ;;  %v574_v34 = vadd.f32 %v560_v38, %v546_v59  ;;  %v575_v8 = vadd.f32 %v561_v33, %v547_v51  ;;  %v576_v3 = vadd.f32 %v562_v58, %v548_v47  ;;  %v8355_v51 = vld [vmem:[#allocation74_spill] sm:$0xff]  ;;  %v8358_v30 = vld [vmem:[#allocation77_spill] sm:$0xff]  ;;  %v8361_v31 = vld [vmem:[#allocation80_spill] sm:$0xff] }
  0x94   : >> { %v577_v50 = vadd.f32 %v563_v9, %v549_v7  ;;  %v578_v52 = vadd.f32 %v564_v29, %v550_v6  ;;  %v579_v43 = vadd.f32 %v565_v55, %v551_v45  ;;  %v580_v49 = vadd.f32 %v566_v16, %v552_v23  ;;  %v8356_v6 = vld [vmem:[#allocation75_spill] sm:$0xff]  ;;  %v8362_v54 = vld [vmem:[#allocation81_spill] sm:$0xff] }
  0x95   : >> { %v581_v17 = vadd.f32 %v567_v10, %v553_v26  ;;  %v582_v61 = vadd.f32 %v568_v13, %v554_v53  ;;  %v583_v39 = vmul.f32 %v8351_v5, %v8350_v62  ;;  %v584_v25 = vmul.f32 %v8352_v12, %v8350_v62  ;;  %v8357_v26 = vld [vmem:[#allocation76_spill] sm:$0xff]  ;;  %v8359_v53 = vld [vmem:[#allocation78_spill] sm:$0xff]  ;;  %v8363_v58 = vld [vmem:[#allocation83_spill] sm:$0xff] }
  0x96   : >> { %v585_v19 = vmul.f32 %v8353_v0, %v8350_v62  ;;  %v586_v59 = vmul.f32 %v8354_v27, %v8350_v62  ;;  %v587_v47 = vmul.f32 %v8355_v51, %v8350_v62  ;;  %v588_v23 = vmul.f32 %v8356_v6, %v8350_v62  ;;  %v8379_v0 = vld [vmem:[#allocation20_spill] sm:$0xff] }
  0x97   : >> { %v589_v7 = vmul.f32 %v8357_v26, %v8350_v62  ;;  %v590_v45 = vmul.f32 %v8358_v30, %v8350_v62  ;;  %v591_v11 = vmul.f32 %v8359_v53, %v8350_v62  ;;  %v592_v15 = vmul.f32 %v8360_v48, %v8350_v62  ;;  %v5877_v53 = vld [vmem:[%s5119_s2 + $0x439] sm:$0xff] }
  0x98   : >> { %v593_v57 = vmul.f32 %v8361_v31, %v8350_v62  ;;  %v594_v38 = vmul.f32 %v8362_v54, %v8350_v62  ;;  %v595_v33 = vmul.f32 %v5545_v24, %v8350_v62  ;;  %v596_v9 = vmul.f32 %v8363_v58, %v8350_v62  ;;  %8364 = vst [vmem:[#allocation69_spill] sm:$0xff] %v5877_v53  ;;  %v5880_v24 = vld [vmem:[%s5119_s2 + $0x441] sm:$0xff] }
  0x99   : >> { %v597_v29 = vadd.f32 %v583_v39, %v569_v20  ;;  %v598_v55 = vadd.f32 %v584_v25, %v570_v44  ;;  %v599_v16 = vadd.f32 %v585_v19, %v571_v63  ;;  %v600_v10 = vadd.f32 %v586_v59, %v572_v22  ;;  %8365 = vst [vmem:[#allocation70_spill] sm:$0xff] %v5880_v24  ;;  %v5883_v44 = vld [vmem:[%s5119_s2 + $0x451] sm:$0xff]  ;;  %v5886_v63 = vld [vmem:[%s5119_s2 + $0x459] sm:$0xff]  ;;  %v5895_v22 = vld [vmem:[%s5119_s2 + $0x481] sm:$0xff] }
  0x9a   : >> { %v601_v13 = vadd.f32 %v587_v47, %v573_v1  ;;  %v602_v31 = vadd.f32 %v588_v23, %v574_v34  ;;  %v603_v48 = vadd.f32 %v589_v7, %v575_v8  ;;  %v604_v54 = vadd.f32 %v590_v45, %v576_v3  ;;  %8366 = vst [vmem:[#allocation71_spill] sm:$0xff] %v5883_v44  ;;  %v5889_v34 = vld [vmem:[%s5119_s2 + $0x469] sm:$0xff]  ;;  %v5892_v3 = vld [vmem:[%s5119_s2 + $0x471] sm:$0xff]  ;;  %v5905_v19 = vld [vmem:[%s5119_s2 + $0x499] sm:$0xff] }
  0x9b   : >> { %v605_v62 = vadd.f32 %v591_v11, %v577_v50  ;;  %v606_v39 = vadd.f32 %v592_v15, %v578_v52  ;;  %v607_v20 = vadd.f32 %v593_v57, %v579_v43  ;;  %v608_v25 = vadd.f32 %v594_v38, %v580_v49  ;;  %8367 = vst [vmem:[#allocation107_spill] sm:$0xff] %v5886_v63  ;;  %v5898_v50 = vld [vmem:[%s5119_s2 + $0x489] sm:$0xff]  ;;  %v8372_v52 = vld [vmem:[#allocation18_spill] sm:$0xff]  ;;  %v5908_v59 = vld [vmem:[%s5119_s2 + $0x4a1] sm:$0xff] }
  0x9c   : >> { %8368 = vst [vmem:[#allocation108_spill] sm:$0xff] %v5889_v34  ;;  %v609_v8 = vadd.f32 %v595_v33, %v581_v17  ;;  %v610_v1 = vadd.f32 %v596_v9, %v582_v61  ;;  %v625_v49 = vmul.f32 %v5877_v53, %v8372_v52  ;;  %v626_v43 = vmul.f32 %v5880_v24, %v8372_v52  ;;  %v5911_v47 = vld [vmem:[%s5119_s2 + $0x4b1] sm:$0xff]  ;;  %v5922_v45 = vld [vmem:[%s5119_s2 + $0x4b9] sm:$0xff]  ;;  %v5925_v11 = vld [vmem:[%s5119_s2 + $0x4c9] sm:$0xff] }
  0x9d   : >> { %8369 = vst [vmem:[#allocation109_spill] sm:$0xff] %v5892_v3  ;;  %v627_v17 = vmul.f32 %v5883_v44, %v8372_v52  ;;  %v628_v61 = vmul.f32 %v5886_v63, %v8372_v52  ;;  %v629_v23 = vmul.f32 %v5889_v34, %v8372_v52  ;;  %v630_v7 = vmul.f32 %v5892_v3, %v8372_v52  ;;  %v5928_v15 = vld [vmem:[%s5119_s2 + $0x4d1] sm:$0xff] }
  0x9e   : >> { %8370 = vst [vmem:[#allocation110_spill] sm:$0xff] %v5895_v22  ;;  %v631_v57 = vmul.f32 %v5895_v22, %v8372_v52  ;;  %v632_v38 = vmul.f32 %v5898_v50, %v8372_v52  ;;  %v633_v33 = vmul.f32 %v5905_v19, %v8372_v52  ;;  %v634_v9 = vmul.f32 %v5908_v59, %v8372_v52 }
  0x9f   : >> { %8371 = vst [vmem:[#allocation111_spill] sm:$0xff] %v5898_v50  ;;  %v635_v3 = vmul.f32 %v5911_v47, %v8372_v52  ;;  %v636_v34 = vmul.f32 %v5922_v45, %v8372_v52  ;;  %v637_v63 = vmul.f32 %v5925_v11, %v8372_v52  ;;  %v638_v22 = vmul.f32 %v5928_v15, %v8372_v52 }
  0xa0   : >> { %8373 = vst [vmem:[#allocation112_spill] sm:$0xff] %v5905_v19  ;;  %v639_v44 = vadd.f32 %v625_v49, %v597_v29  ;;  %v640_v50 = vadd.f32 %v626_v43, %v598_v55  ;;  %v641_v24 = vadd.f32 %v627_v17, %v599_v16  ;;  %v642_v53 = vadd.f32 %v628_v61, %v600_v10  ;;  %v8388_v43 = vld [vmem:[#allocation38_spill] sm:$0xff]  ;;  %v8391_v17 = vld [vmem:[#allocation41_spill] sm:$0xff] }
  0xa1   : >> { %8374 = vst [vmem:[#allocation113_spill] sm:$0xff] %v5908_v59  ;;  %v643_v19 = vadd.f32 %v629_v23, %v601_v13  ;;  %v644_v58 = vadd.f32 %v630_v7, %v602_v31  ;;  %v645_v30 = vadd.f32 %v631_v57, %v603_v48  ;;  %v646_v59 = vadd.f32 %v632_v38, %v604_v54  ;;  %v8392_v23 = vld [vmem:[#allocation25_spill] sm:$0xff] }
  0xa2   : >> { %8375 = vst [vmem:[#allocation114_spill] sm:$0xff] %v5911_v47  ;;  %v647_v26 = vadd.f32 %v633_v33, %v605_v62  ;;  %v648_v6 = vadd.f32 %v634_v9, %v606_v39  ;;  %v649_v47 = vadd.f32 %v635_v3, %v607_v20  ;;  %v650_v51 = vadd.f32 %v636_v34, %v608_v25  ;;  %v8382_v3 = vld [vmem:[#allocation86_spill] sm:$0xff] }
  0xa3   : >> { %8376 = vst [vmem:[#allocation115_spill] sm:$0xff] %v5922_v45  ;;  %v651_v27 = vadd.f32 %v637_v63, %v609_v8  ;;  %v652_v45 = vadd.f32 %v638_v22, %v610_v1  ;;  %v655_v29 = vmul.f32 %v5219_v40, %v8379_v0  ;;  %v656_v31 = vmul.f32 %v5222_v41, %v8379_v0 }
  0xa4   : >> { %8377 = vst [vmem:[#allocation116_spill] sm:$0xff] %v5925_v11  ;;  %v653_v11 = vmul.f32 %v5207_v36, %v8379_v0  ;;  %v657_v62 = vmul.f32 %v5225_v42, %v8379_v0  ;;  %v658_v48 = vmul.f32 %v5234_v46, %v8379_v0  ;;  %v659_v54 = vmul.f32 %v8277_v56, %v8379_v0  ;;  %v8380_v46 = vld [vmem:[#allocation22_spill] sm:$0xff]  ;;  %v8381_v56 = vld [vmem:[#allocation23_spill] sm:$0xff] }
  0xa5   : >> { %8378 = vst [vmem:[#allocation117_spill] sm:$0xff] %v5928_v15  ;;  %v654_v15 = vmul.f32 %v5210_v37, %v8379_v0  ;;  %v660_v36 = vmul.f32 %v8278_v21, %v8379_v0  ;;  %v661_v37 = vmul.f32 %v8281_v60, %v8379_v0  ;;  %v662_v40 = vmul.f32 %v8282_v14, %v8379_v0 }
  0xa6   : >> { %v663_v41 = vmul.f32 %v8283_v4, %v8379_v0  ;;  %v664_v42 = vmul.f32 %v8284_v28, %v8379_v0  ;;  %v665_v55 = vmul.f32 %v8380_v46, %v8379_v0  ;;  %v666_v16 = vmul.f32 %v8381_v56, %v8379_v0 }
  0xa7   : >> { %v667_v10 = vadd.f32 %v653_v11, %v639_v44  ;;  %v668_v21 = vadd.f32 %v654_v15, %v640_v50  ;;  %v669_v13 = vadd.f32 %v655_v29, %v641_v24  ;;  %v670_v39 = vadd.f32 %v656_v31, %v642_v53  ;;  %v8383_v53 = vld [vmem:[#allocation33_spill] sm:$0xff] }
  0xa8   : >> { %v671_v60 = vadd.f32 %v657_v62, %v643_v19  ;;  %v672_v20 = vadd.f32 %v658_v48, %v644_v58  ;;  %v673_v25 = vadd.f32 %v659_v54, %v645_v30  ;;  %v674_v14 = vadd.f32 %v660_v36, %v646_v59  ;;  %v8384_v30 = vld [vmem:[#allocation34_spill] sm:$0xff]  ;;  %v8387_v50 = vld [vmem:[#allocation37_spill] sm:$0xff]  ;;  %v8389_v19 = vld [vmem:[#allocation39_spill] sm:$0xff] }
  0xa9   : >> { %v675_v63 = vadd.f32 %v661_v37, %v647_v26  ;;  %v676_v34 = vadd.f32 %v662_v40, %v648_v6  ;;  %v677_v4 = vadd.f32 %v663_v41, %v649_v47  ;;  %v678_v8 = vadd.f32 %v664_v42, %v650_v51  ;;  %v8385_v6 = vld [vmem:[#allocation35_spill] sm:$0xff]  ;;  %v8390_v59 = vld [vmem:[#allocation40_spill] sm:$0xff] }
  0xaa   : >> { %v679_v1 = vadd.f32 %v665_v55, %v651_v27  ;;  %v680_v28 = vadd.f32 %v666_v16, %v652_v45  ;;  %v681_v22 = vmul.f32 %v8382_v3, %v8286_v18  ;;  %v682_v49 = vmul.f32 %v8382_v3, %v8287_v2  ;;  %v8386_v27 = vld [vmem:[#allocation36_spill] sm:$0xff]  ;;  %v8393_v45 = vld [vmem:[#allocation26_spill] sm:$0xff]  ;;  %v8395_v55 = vld [vmem:[#allocation19_spill] sm:$0xff] }
  0xab   : >> { %v683_v24 = vmul.f32 %v8382_v3, %v8288_v35  ;;  %v684_v58 = vmul.f32 %v8382_v3, %v8383_v53  ;;  %v685_v26 = vmul.f32 %v8382_v3, %v8384_v30  ;;  %v686_v51 = vmul.f32 %v8382_v3, %v8385_v6  ;;  %v8394_v42 = vld [vmem:[#allocation24_spill] sm:$0xff] }
  0xac   : >> { %v687_v44 = vmul.f32 %v8382_v3, %v8386_v27  ;;  %v688_v18 = vmul.f32 %v8382_v3, %v8387_v50  ;;  %v689_v2 = vmul.f32 %v8382_v3, %v8388_v43  ;;  %v690_v35 = vmul.f32 %v8382_v3, %v8389_v19 }
  0xad   : >> { %v691_v47 = vmul.f32 %v8382_v3, %v8390_v59  ;;  %v692_v61 = vmul.f32 %v8382_v3, %v8391_v17  ;;  %v693_v7 = vmul.f32 %v8392_v23, %v8382_v3  ;;  %v694_v11 = vmul.f32 %v8393_v45, %v8382_v3 }
  0xae   : >> { %v695_v15 = vadd.f32 %v681_v22, %v667_v10  ;;  %v696_v57 = vadd.f32 %v682_v49, %v668_v21  ;;  %v697_v38 = vadd.f32 %v683_v24, %v669_v13  ;;  %v698_v33 = vadd.f32 %v684_v58, %v670_v39  ;;  %v8396_v10 = vld [vmem:[#allocation21_spill] sm:$0xff]  ;;  %v8397_v13 = vld [vmem:[#allocation28_spill] sm:$0xff]  ;;  %v8404_v22 = vld [vmem:[#allocation102_spill] sm:$0xff] }
  0xaf   : >> { %v699_v9 = vadd.f32 %v685_v26, %v671_v60  ;;  %v700_v29 = vadd.f32 %v686_v51, %v672_v20  ;;  %v701_v31 = vadd.f32 %v687_v44, %v673_v25  ;;  %v702_v62 = vadd.f32 %v688_v18, %v674_v14  ;;  %v8398_v60 = vld [vmem:[#allocation29_spill] sm:$0xff]  ;;  %v8399_v25 = vld [vmem:[#allocation99_spill] sm:$0xff]  ;;  %v8406_v58 = vld [vmem:[#allocation104_spill] sm:$0xff] }
  0xb0   : >> { %v703_v48 = vadd.f32 %v689_v2, %v675_v63  ;;  %v704_v54 = vadd.f32 %v690_v35, %v676_v34  ;;  %v705_v36 = vadd.f32 %v691_v47, %v677_v4  ;;  %v706_v37 = vadd.f32 %v692_v61, %v678_v8  ;;  %v8400_v63 = vld [vmem:[#allocation100_spill] sm:$0xff]  ;;  %v6015_v4 = vld [vmem:[%s5119_s2 + $0x211] sm:$0xff]  ;;  %v6018_v8 = vld [vmem:[%s5119_s2 + $0x219] sm:$0xff] }
  0xb1   : >> { %v707_v40 = vadd.f32 %v693_v7, %v679_v1  ;;  %v708_v41 = vadd.f32 %v694_v11, %v680_v28  ;;  %v723_v16 = vmul.f32 %v8395_v55, %v8394_v42  ;;  %v724_v21 = vmul.f32 %v8396_v10, %v8394_v42  ;;  %8401 = vst [vmem:[#allocation20_spill] sm:$0xff] %v6015_v4  ;;  %v8403_v1 = vld [vmem:[#allocation101_spill] sm:$0xff]  ;;  %v8405_v24 = vld [vmem:[#allocation103_spill] sm:$0xff]  ;;  %v8408_v51 = vld [vmem:[#allocation106_spill] sm:$0xff] }
  0xb2   : >> { %v725_v39 = vmul.f32 %v8397_v13, %v8394_v42  ;;  %v726_v20 = vmul.f32 %v8398_v60, %v8394_v42  ;;  %v727_v14 = vmul.f32 %v8399_v25, %v8394_v42  ;;  %v728_v34 = vmul.f32 %v8400_v63, %v8394_v42  ;;  %8402 = vst [vmem:[#allocation22_spill] sm:$0xff] %v6018_v8  ;;  %v8407_v26 = vld [vmem:[#allocation105_spill] sm:$0xff]  ;;  %v8422_v55 = vld [vmem:[#allocation32_spill] sm:$0xff] }
  0xb3   : >> { %v729_v28 = vmul.f32 %v8403_v1, %v8394_v42  ;;  %v730_v49 = vmul.f32 %v8404_v22, %v8394_v42  ;;  %v731_v53 = vmul.f32 %v8405_v24, %v8394_v42  ;;  %v732_v30 = vmul.f32 %v8406_v58, %v8394_v42  ;;  %v8442_v24 = vld [vmem:[#allocation47_spill] sm:$0xff]  ;;  %v8443_v58 = vld [vmem:[#allocation48_spill] sm:$0xff] }
  0xb4   : >> { %v733_v6 = vmul.f32 %v8407_v26, %v8394_v42  ;;  %v734_v27 = vmul.f32 %v8408_v51, %v8394_v42  ;;  %v735_v44 = vmul.f32 %v6015_v4, %v8394_v42  ;;  %v736_v50 = vmul.f32 %v6018_v8, %v8394_v42  ;;  %v8437_v26 = vld [vmem:[#allocation42_spill] sm:$0xff]  ;;  %v8438_v51 = vld [vmem:[#allocation43_spill] sm:$0xff] }
  0xb5   : >> { %v6036_v18 = vadd.f32 %v723_v16, %v695_v15  ;;  %v6038_v43 = vadd.f32 %v724_v21, %v696_v57  ;;  %v6040_v2 = vadd.f32 %v725_v39, %v697_v38  ;;  %v6042_v19 = vadd.f32 %v726_v20, %v698_v33  ;;  %v8419_v57 = vld [vmem:[#allocation27_spill] sm:$0xff] }
  0xb6   : >> { %v6044_v35 = vadd.f32 %v727_v14, %v699_v9  ;;  %v6046_v59 = vadd.f32 %v728_v34, %v700_v29  ;;  %v6048_v47 = vadd.f32 %v729_v28, %v701_v31  ;;  %v6050_v17 = vadd.f32 %v730_v49, %v702_v62  ;;  %v8420_v38 = vld [vmem:[#allocation31_spill] sm:$0xff]  ;;  %v8421_v9 = vld [vmem:[#allocation30_spill] sm:$0xff] }
  0xb7   : >> { %8409 = vst [vmem:[#allocation23_spill] sm:$0xff] %v6040_v2  ;;  %v6052_v61 = vadd.f32 %v731_v53, %v703_v48  ;;  %v6054_v7 = vadd.f32 %v732_v30, %v704_v54  ;;  %v6056_v11 = vadd.f32 %v733_v6, %v705_v36  ;;  %v6058_v15 = vadd.f32 %v734_v27, %v706_v37  ;;  %v8424_v48 = vld [vmem:[#allocation87_spill] sm:$0xff]  ;;  %v8425_v36 = vld [vmem:[#allocation88_spill] sm:$0xff]  ;;  %v8436_v30 = vld [vmem:[#allocation13_spill] sm:$0xff] }
  0xb8   : >> { %8410 = vst [vmem:[#allocation33_spill] sm:$0xff] %v6042_v19  ;;  %v6062_v33 = vadd.f32 %v8420_v38, %v8419_v57  ;;  %v6066_v29 = vadd.f32 %v8422_v55, %v8421_v9  ;;  %v6068_v31 = vadd.f32 %v735_v44, %v707_v40  ;;  %v6070_v62 = vadd.f32 %v736_v50, %v708_v41  ;;  %v8439_v44 = vld [vmem:[#allocation44_spill] sm:$0xff]  ;;  %v8440_v57 = vld [vmem:[#allocation45_spill] sm:$0xff]  ;;  %v8441_v9 = vld [vmem:[#allocation46_spill] sm:$0xff] }
  0xb9   : >> { %8411 = vst [vmem:[#allocation34_spill] sm:$0xff] %v6044_v35  ;;  %v765_v6 = vmul.f32 %v8437_v26, %v8436_v30  ;;  %v766_v27 = vmul.f32 %v8438_v51, %v8436_v30  ;;  %v767_v50 = vmul.f32 %v8439_v44, %v8436_v30  ;;  %v768_v38 = vmul.f32 %v8440_v57, %v8436_v30  ;;  %v8444_v26 = vld [vmem:[#allocation49_spill] sm:$0xff]  ;;  %v8445_v51 = vld [vmem:[#allocation50_spill] sm:$0xff]  ;;  %v8446_v44 = vld [vmem:[#allocation51_spill] sm:$0xff] }
  0xba   : >> { %8412 = vst [vmem:[#allocation35_spill] sm:$0xff] %v6046_v59  ;;  %v769_v55 = vmul.f32 %v8441_v9, %v8436_v30  ;;  %v770_v22 = vmul.f32 %v8442_v24, %v8436_v30  ;;  %v771_v1 = vmul.f32 %v8443_v58, %v8436_v30  ;;  %v772_v63 = vmul.f32 %v8444_v26, %v8436_v30  ;;  %v8447_v57 = vld [vmem:[#allocation52_spill] sm:$0xff]  ;;  %v8448_v9 = vld [vmem:[#allocation53_spill] sm:$0xff]  ;;  %v8449_v24 = vld [vmem:[#allocation54_spill] sm:$0xff] }
  0xbb   : >> { %8413 = vst [vmem:[#allocation36_spill] sm:$0xff] %v6048_v47  ;;  %v773_v25 = vmul.f32 %v8445_v51, %v8436_v30  ;;  %v774_v20 = vmul.f32 %v8446_v44, %v8436_v30  ;;  %v775_v60 = vmul.f32 %v8447_v57, %v8436_v30  ;;  %v776_v13 = vmul.f32 %v8448_v9, %v8436_v30  ;;  %v8450_v58 = vld [vmem:[#allocation55_spill] sm:$0xff]  ;;  %v8451_v54 = vld [vmem:[#allocation14_spill] sm:$0xff]  ;;  %v8452_v26 = vld [vmem:[#allocation56_spill] sm:$0xff] }
  0xbc   : >> { %8414 = vst [vmem:[#allocation37_spill] sm:$0xff] %v6050_v17  ;;  %v777_v10 = vmul.f32 %v8449_v24, %v8436_v30  ;;  %v778_v16 = vmul.f32 %v8450_v58, %v8436_v30  ;;  %v779_v8 = vmul.f32 %v8452_v26, %v8451_v54  ;;  %v8453_v51 = vld [vmem:[#allocation57_spill] sm:$0xff]  ;;  %v8454_v44 = vld [vmem:[#allocation58_spill] sm:$0xff]  ;;  %v8455_v57 = vld [vmem:[#allocation59_spill] sm:$0xff] }
  0xbd   : >> { %8415 = vst [vmem:[#allocation38_spill] sm:$0xff] %v6052_v61  ;;  %v780_v4 = vmul.f32 %v8453_v51, %v8451_v54  ;;  %v782_v53 = vmul.f32 %v8455_v57, %v8451_v54  ;;  %v8456_v9 = vld [vmem:[#allocation60_spill] sm:$0xff]  ;;  %v8457_v24 = vld [vmem:[#allocation61_spill] sm:$0xff]  ;;  %v8458_v58 = vld [vmem:[#allocation62_spill] sm:$0xff] }
  0xbe   : >> { %8416 = vst [vmem:[#allocation39_spill] sm:$0xff] %v6054_v7  ;;  %v784_v49 = vmul.f32 %v8457_v24, %v8451_v54  ;;  %v785_v30 = vmul.f32 %v8458_v58, %v8451_v54  ;;  %v8459_v26 = vld [vmem:[#allocation63_spill] sm:$0xff]  ;;  %v8460_v51 = vld [vmem:[#allocation64_spill] sm:$0xff]  ;;  %v8462_v57 = vld [vmem:[#allocation66_spill] sm:$0xff]  ;;  %v792_v58 = vmul.f32 %v8349_v32, %v8451_v54  ;;  %v793_v47 = vadd.f32 %v779_v8, %v765_v6 }
  0xbf   : >> { %8417 = vst [vmem:[#allocation40_spill] sm:$0xff] %v6056_v11  ;;  %v783_v11 = vmul.f32 %v8456_v9, %v8451_v54  ;;  %v786_v7 = vmul.f32 %v8459_v26, %v8451_v54  ;;  %v787_v28 = vmul.f32 %v8460_v51, %v8451_v54  ;;  %v789_v34 = vmul.f32 %v8462_v57, %v8451_v54  ;;  %v8463_v9 = vld [vmem:[#allocation67_spill] sm:$0xff]  ;;  %v8464_v24 = vld [vmem:[#allocation68_spill] sm:$0xff] }
  0xc0   : >> { %8418 = vst [vmem:[#allocation41_spill] sm:$0xff] %v6058_v15  ;;  %v781_v15 = vmul.f32 %v8454_v44, %v8451_v54  ;;  %v8461_v44 = vld [vmem:[#allocation65_spill] sm:$0xff]  ;;  %v790_v17 = vmul.f32 %v8463_v9, %v8451_v54  ;;  %v791_v14 = vmul.f32 %v8464_v24, %v8451_v54  ;;  %v794_v26 = vadd.f32 %v780_v4, %v766_v27  ;;  %v8465_v37 = vld [vmem:[#allocation15_spill] sm:$0xff]  ;;  %v8466_v4 = vld [vmem:[#allocation72_spill] sm:$0xff] }
  0xc1   : >> { %8423 = vst [vmem:[#allocation25_spill] sm:$0xff] %v6070_v62  ;;  %v788_v61 = vmul.f32 %v8461_v44, %v8451_v54  ;;  %v796_v59 = vadd.f32 %v782_v53, %v768_v38  ;;  %v797_v51 = vadd.f32 %v783_v11, %v769_v55  ;;  %v798_v40 = vadd.f32 %v784_v49, %v770_v22  ;;  %v8467_v11 = vld [vmem:[#allocation73_spill] sm:$0xff]  ;;  %v8476_v22 = vld [vmem:[#allocation82_spill] sm:$0xff]  ;;  %v8477_v53 = vld [vmem:[#allocation83_spill] sm:$0xff] }
  0xc2   : >> { %v795_v41 = vadd.f32 %v781_v15, %v767_v50  ;;  %v799_v35 = vadd.f32 %v785_v30, %v771_v1  ;;  %v800_v44 = vadd.f32 %v786_v7, %v772_v63  ;;  %v801_v39 = vadd.f32 %v787_v28, %v773_v25  ;;  %v8468_v7 = vld [vmem:[#allocation74_spill] sm:$0xff]  ;;  %v8474_v63 = vld [vmem:[#allocation80_spill] sm:$0xff]  ;;  %v8475_v1 = vld [vmem:[#allocation81_spill] sm:$0xff] }
  0xc3   : >> { %v802_v19 = vadd.f32 %v788_v61, %v774_v20  ;;  %v803_v57 = vadd.f32 %v789_v34, %v775_v60  ;;  %v804_v21 = vadd.f32 %v790_v17, %v776_v13  ;;  %v805_v2 = vadd.f32 %v791_v14, %v777_v10  ;;  %v8469_v61 = vld [vmem:[#allocation75_spill] sm:$0xff]  ;;  %v8571_v62 = vld [vmem:[#allocation70_spill] sm:$0xff] }
  0xc4   : >> { %v806_v9 = vadd.f32 %v792_v58, %v778_v16  ;;  %v807_v24 = vmul.f32 %v8351_v5, %v8465_v37  ;;  %v808_v32 = vmul.f32 %v8352_v12, %v8465_v37  ;;  %v809_v8 = vmul.f32 %v8466_v4, %v8465_v37  ;;  %v8470_v16 = vld [vmem:[#allocation76_spill] sm:$0xff]  ;;  %v8471_v5 = vld [vmem:[#allocation77_spill] sm:$0xff]  ;;  %v8472_v12 = vld [vmem:[#allocation78_spill] sm:$0xff] }
  0xc5   : >> { %v810_v15 = vmul.f32 %v8467_v11, %v8465_v37  ;;  %v811_v25 = vmul.f32 %v8468_v7, %v8465_v37  ;;  %v812_v17 = vmul.f32 %v8469_v61, %v8465_v37  ;;  %v813_v10 = vmul.f32 %v8470_v16, %v8465_v37  ;;  %v8473_v20 = vld [vmem:[#allocation79_spill] sm:$0xff] }
  0xc6   : >> { %v814_v13 = vmul.f32 %v8471_v5, %v8465_v37  ;;  %v815_v60 = vmul.f32 %v8472_v12, %v8465_v37  ;;  %v816_v14 = vmul.f32 %v8473_v20, %v8465_v37  ;;  %v817_v34 = vmul.f32 %v8474_v63, %v8465_v37 }
  0xc7   : >> { %v818_v28 = vmul.f32 %v8475_v1, %v8465_v37  ;;  %v819_v49 = vmul.f32 %v8476_v22, %v8465_v37  ;;  %v820_v30 = vmul.f32 %v8477_v53, %v8465_v37  ;;  %v821_v6 = vadd.f32 %v807_v24, %v793_v47  ;;  %v4904_v24 = vld [vmem:[%s5119_s2 + $0x18] sm:$0xff] }
  0xc8   : >> { %v822_v27 = vadd.f32 %v808_v32, %v794_v26  ;;  %v823_v50 = vadd.f32 %v809_v8, %v795_v41  ;;  %v824_v38 = vadd.f32 %v810_v15, %v796_v59  ;;  %v825_v55 = vadd.f32 %v811_v25, %v797_v51  ;;  %v8478_v26 = vld [vmem:[#allocation16_spill] sm:$0xff]  ;;  %v4905_v59 = vld [vmem:[%s5119_s2 + $0x20] sm:$0xff]  ;;  %v4907_v51 = vld [vmem:[%s5119_s2 + $0x38] sm:$0xff] }
  0xc9   : >> { %v826_v58 = vadd.f32 %v812_v17, %v798_v40  ;;  %v827_v4 = vadd.f32 %v813_v10, %v799_v35  ;;  %v828_v11 = vadd.f32 %v814_v13, %v800_v44  ;;  %v829_v7 = vadd.f32 %v815_v60, %v801_v39  ;;  %v4906_v35 = vld [vmem:[%s5119_s2 + $0x30] sm:$0xff]  ;;  %v4911_v8 = vld [vmem:[%s5119_s2 + $0x68] sm:$0xff]  ;;  %v4912_v25 = vld [vmem:[%s5119_s2 + $0x78] sm:$0xff] }
  0xca   : >> { %v830_v61 = vadd.f32 %v816_v14, %v802_v19  ;;  %v831_v16 = vadd.f32 %v817_v34, %v803_v57  ;;  %v832_v5 = vadd.f32 %v818_v28, %v804_v21  ;;  %v833_v12 = vadd.f32 %v819_v49, %v805_v2  ;;  %v4908_v21 = vld [vmem:[%s5119_s2 + $0x48] sm:$0xff]  ;;  %v4909_v44 = vld [vmem:[%s5119_s2 + $0x50] sm:$0xff]  ;;  %v4913_v10 = vld [vmem:[%s5119_s2 + $0x80] sm:$0xff] }
  0xcb   : >> { %v834_v47 = vadd.f32 %v820_v30, %v806_v9  ;;  %v835_v41 = vmul.f32 %v4904_v24, %v8478_v26  ;;  %v836_v40 = vmul.f32 %v4905_v59, %v8478_v26  ;;  %v837_v39 = vmul.f32 %v4906_v35, %v8478_v26  ;;  %v4910_v9 = vld [vmem:[%s5119_s2 + $0x60] sm:$0xff]  ;;  %v4914_v60 = vld [vmem:[%s5119_s2 + $0x90] sm:$0xff]  ;;  %v4915_v14 = vld [vmem:[%s5119_s2 + $0x98] sm:$0xff] }
  0xcc   : >> { %v838_v19 = vmul.f32 %v4907_v51, %v8478_v26  ;;  %v839_v2 = vmul.f32 %v4908_v21, %v8478_v26  ;;  %v840_v57 = vmul.f32 %v4909_v44, %v8478_v26  ;;  %v841_v32 = vmul.f32 %v4910_v9, %v8478_v26  ;;  %v8479_v34 = vld [vmem:[#allocation84_spill] sm:$0xff]  ;;  %v8480_v28 = vld [vmem:[#allocation85_spill] sm:$0xff] }
  0xcd   : >> { %v842_v15 = vmul.f32 %v4911_v8, %v8478_v26  ;;  %v843_v17 = vmul.f32 %v4912_v25, %v8478_v26  ;;  %v844_v13 = vmul.f32 %v4913_v10, %v8478_v26  ;;  %v845_v20 = vmul.f32 %v4914_v60, %v8478_v26  ;;  %v6264_v60 = vld [vmem:[%s5119_s2 + $0x200] sm:$0xff] }
  0xce   : >> { %v846_v63 = vmul.f32 %v4915_v14, %v8478_v26  ;;  %v847_v1 = vmul.f32 %v8479_v34, %v8478_v26  ;;  %v848_v22 = vmul.f32 %v8480_v28, %v8478_v26  ;;  %v849_v49 = vadd.f32 %v835_v41, %v821_v6  ;;  %v6209_v41 = vld [vmem:[%s5119_s2 + $0x180] sm:$0xff]  ;;  %8489 = vst [vmem:[#allocation101_spill] sm:$0xff] %v6264_v60 }
  0xcf   : >> { %v850_v53 = vadd.f32 %v836_v40, %v822_v27  ;;  %v851_v30 = vadd.f32 %v837_v39, %v823_v50  ;;  %v852_v24 = vadd.f32 %v838_v19, %v824_v38  ;;  %v853_v59 = vadd.f32 %v839_v2, %v825_v55  ;;  %v8481_v27 = vld [vmem:[#allocation17_spill] sm:$0xff]  ;;  %v6214_v38 = vld [vmem:[%s5119_s2 + $0x188] sm:$0xff]  ;;  %v6249_v2 = vld [vmem:[%s5119_s2 + $0x1e0] sm:$0xff] }
  0xd0   : >> { %v854_v35 = vadd.f32 %v840_v57, %v826_v58  ;;  %v855_v51 = vadd.f32 %v841_v32, %v827_v4  ;;  %v856_v21 = vadd.f32 %v842_v15, %v828_v11  ;;  %v857_v44 = vadd.f32 %v843_v17, %v829_v7  ;;  %v6219_v58 = vld [vmem:[%s5119_s2 + $0x198] sm:$0xff]  ;;  %v6224_v11 = vld [vmem:[%s5119_s2 + $0x1a0] sm:$0xff]  ;;  %v6244_v39 = vld [vmem:[%s5119_s2 + $0x1d0] sm:$0xff]  ;;  %8486 = vst [vmem:[#allocation29_spill] sm:$0xff] %v6249_v2 }
  0xd1   : >> { %v858_v9 = vadd.f32 %v844_v13, %v830_v61  ;;  %v859_v8 = vadd.f32 %v845_v20, %v831_v16  ;;  %v860_v25 = vadd.f32 %v846_v63, %v832_v5  ;;  %v861_v10 = vadd.f32 %v847_v1, %v833_v12  ;;  %v6229_v61 = vld [vmem:[%s5119_s2 + $0x1b0] sm:$0xff]  ;;  %v6234_v5 = vld [vmem:[%s5119_s2 + $0x1b8] sm:$0xff]  ;;  %8485 = vst [vmem:[#allocation28_spill] sm:$0xff] %v6244_v39  ;;  %v6254_v32 = vld [vmem:[%s5119_s2 + $0x1e8] sm:$0xff] }
  0xd2   : >> { %v862_v6 = vadd.f32 %v848_v22, %v834_v47  ;;  %v863_v50 = vmul.f32 %v6209_v41, %v8481_v27  ;;  %v864_v55 = vmul.f32 %v6214_v38, %v8481_v27  ;;  %v865_v4 = vmul.f32 %v6219_v58, %v8481_v27  ;;  %8482 = vst [vmem:[#allocation26_spill] sm:$0xff] %v6229_v61  ;;  %v6239_v47 = vld [vmem:[%s5119_s2 + $0x1c8] sm:$0xff]  ;;  %v6259_v17 = vld [vmem:[%s5119_s2 + $0x1f8] sm:$0xff] }
  0xd3   : >> { %v866_v7 = vmul.f32 %v6224_v11, %v8481_v27  ;;  %v867_v16 = vmul.f32 %v6229_v61, %v8481_v27  ;;  %8483 = vst [vmem:[#allocation19_spill] sm:$0xff] %v6234_v5  ;;  %v868_v12 = vmul.f32 %v6234_v5, %v8481_v27  ;;  %v869_v40 = vmul.f32 %v6239_v47, %v8481_v27 }
  0xd4   : >> { %8484 = vst [vmem:[#allocation21_spill] sm:$0xff] %v6239_v47  ;;  %v870_v19 = vmul.f32 %v6244_v39, %v8481_v27  ;;  %v871_v57 = vmul.f32 %v6249_v2, %v8481_v27  ;;  %v872_v15 = vmul.f32 %v6254_v32, %v8481_v27  ;;  %v873_v13 = vmul.f32 %v6259_v17, %v8481_v27 }
  0xd5   : >> { %8487 = vst [vmem:[#allocation99_spill] sm:$0xff] %v6254_v32  ;;  %v874_v20 = vmul.f32 %v6264_v60, %v8481_v27  ;;  %v875_v14 = vmul.f32 %v8380_v46, %v8481_v27  ;;  %v876_v63 = vmul.f32 %v8381_v56, %v8481_v27  ;;  %v877_v34 = vadd.f32 %v863_v50, %v849_v49  ;;  %v6273_v49 = vld [vmem:[%s5119_s2 + $0x19] sm:$0xff]  ;;  %v6308_v50 = vld [vmem:[%s5119_s2 + $0x69] sm:$0xff] }
  0xd6   : >> { %8488 = vst [vmem:[#allocation100_spill] sm:$0xff] %v6259_v17  ;;  %v878_v1 = vadd.f32 %v864_v55, %v850_v53  ;;  %v879_v28 = vadd.f32 %v865_v4, %v851_v30  ;;  %v880_v22 = vadd.f32 %v866_v7, %v852_v24  ;;  %v881_v32 = vadd.f32 %v867_v16, %v853_v59  ;;  %v6278_v30 = vld [vmem:[%s5119_s2 + $0x21] sm:$0xff]  ;;  %v6283_v59 = vld [vmem:[%s5119_s2 + $0x31] sm:$0xff]  ;;  %v6313_v4 = vld [vmem:[%s5119_s2 + $0x79] sm:$0xff] }
  0xd7   : >> { %v882_v17 = vadd.f32 %v868_v12, %v854_v35  ;;  %v883_v2 = vadd.f32 %v869_v40, %v855_v51  ;;  %v884_v39 = vadd.f32 %v870_v19, %v856_v21  ;;  %v885_v60 = vadd.f32 %v871_v57, %v857_v44  ;;  %8490 = vst [vmem:[#allocation102_spill] sm:$0xff] %v6273_v49  ;;  %v6288_v51 = vld [vmem:[%s5119_s2 + $0x39] sm:$0xff]  ;;  %v6293_v44 = vld [vmem:[%s5119_s2 + $0x49] sm:$0xff]  ;;  %v6318_v16 = vld [vmem:[%s5119_s2 + $0x81] sm:$0xff] }
  0xd8   : >> { %v886_v47 = vadd.f32 %v872_v15, %v858_v9  ;;  %v887_v46 = vadd.f32 %v873_v13, %v859_v8  ;;  %v888_v5 = vadd.f32 %v874_v20, %v860_v25  ;;  %v889_v61 = vadd.f32 %v875_v14, %v861_v10  ;;  %8491 = vst [vmem:[#allocation103_spill] sm:$0xff] %v6278_v30  ;;  %v6298_v8 = vld [vmem:[%s5119_s2 + $0x51] sm:$0xff]  ;;  %v6303_v10 = vld [vmem:[%s5119_s2 + $0x61] sm:$0xff]  ;;  %v6328_v57 = vld [vmem:[%s5119_s2 + $0x99] sm:$0xff] }
  0xd9   : >> { %v890_v56 = vadd.f32 %v876_v63, %v862_v6  ;;  %v891_v53 = vmul.f32 %v6273_v49, %v8372_v52  ;;  %v892_v24 = vmul.f32 %v6278_v30, %v8372_v52  ;;  %8492 = vst [vmem:[#allocation104_spill] sm:$0xff] %v6283_v59  ;;  %v893_v35 = vmul.f32 %v6283_v59, %v8372_v52  ;;  %v6323_v40 = vld [vmem:[%s5119_s2 + $0x91] sm:$0xff]  ;;  %v3833_v14 = vld [vmem:[%s5119_s2 + $0x2e8] sm:$0xff] }
  0xda   : >> { %8493 = vst [vmem:[#allocation105_spill] sm:$0xff] %v6288_v51  ;;  %v894_v21 = vmul.f32 %v6288_v51, %v8372_v52  ;;  %v895_v9 = vmul.f32 %v6293_v44, %v8372_v52  ;;  %v896_v25 = vmul.f32 %v6298_v8, %v8372_v52  ;;  %v897_v6 = vmul.f32 %v6303_v10, %v8372_v52  ;;  %v3834_v63 = vld [vmem:[%s5119_s2 + $0x2f0] sm:$0xff]  ;;  %v3840_v30 = vld [vmem:[%s5119_s2 + $0x338] sm:$0xff]  ;;  %v3844_v27 = vld [vmem:[%s5119_s2 + $0x368] sm:$0xff] }
  0xdb   : >> { %8494 = vst [vmem:[#allocation106_spill] sm:$0xff] %v6293_v44  ;;  %v898_v55 = vmul.f32 %v6308_v50, %v8372_v52  ;;  %v899_v7 = vmul.f32 %v6313_v4, %v8372_v52  ;;  %v900_v12 = vmul.f32 %v6318_v16, %v8372_v52  ;;  %v901_v19 = vmul.f32 %v6323_v40, %v8372_v52  ;;  %v3839_v59 = vld [vmem:[%s5119_s2 + $0x330] sm:$0xff] }
  0xdc   : >> { %8495 = vst [vmem:[#allocation27_spill] sm:$0xff] %v6298_v8  ;;  %v902_v15 = vmul.f32 %v6328_v57, %v8372_v52  ;;  %v903_v13 = vmul.f32 %v8392_v23, %v8372_v52  ;;  %v904_v20 = vmul.f32 %v8393_v45, %v8372_v52  ;;  %v3837_v8 = vld [vmem:[%s5119_s2 + $0x318] sm:$0xff]  ;;  %v909_v44 = vadd.f32 %v895_v9, %v881_v32  ;;  %v3838_v52 = vld [vmem:[%s5119_s2 + $0x320] sm:$0xff] }
  0xdd   : >> { %8496 = vst [vmem:[#allocation31_spill] sm:$0xff] %v6303_v10  ;;  %v3835_v10 = vld [vmem:[%s5119_s2 + $0x300] sm:$0xff]  ;;  %v910_v23 = vadd.f32 %v896_v25, %v882_v17  ;;  %v911_v51 = vadd.f32 %v897_v6, %v883_v2  ;;  %v912_v45 = vadd.f32 %v898_v55, %v884_v39  ;;  %v3845_v32 = vld [vmem:[%s5119_s2 + $0x378] sm:$0xff]  ;;  %v935_v2 = vmul.f32 %v3833_v14, %v8379_v0  ;;  %v6365_v55 = vld [vmem:[%s5119_s2 + $0x450] sm:$0xff] }
  0xde   : >> { %8497 = vst [vmem:[#allocation30_spill] sm:$0xff] %v6308_v50  ;;  %v907_v50 = vadd.f32 %v893_v35, %v879_v28  ;;  %v915_v28 = vadd.f32 %v901_v19, %v887_v46  ;;  %v3843_v35 = vld [vmem:[%s5119_s2 + $0x360] sm:$0xff]  ;;  %v918_v49 = vadd.f32 %v904_v20, %v890_v56  ;;  %v936_v39 = vmul.f32 %v3834_v63, %v8379_v0 }
  0xdf   : >> { %8498 = vst [vmem:[#allocation32_spill] sm:$0xff] %v6313_v4  ;;  %v906_v4 = vadd.f32 %v892_v24, %v878_v1  ;;  %v914_v1 = vadd.f32 %v900_v12, %v886_v47  ;;  %v3842_v24 = vld [vmem:[%s5119_s2 + $0x350] sm:$0xff]  ;;  %v3846_v17 = vld [vmem:[%s5119_s2 + $0x380] sm:$0xff]  ;;  %v937_v9 = vmul.f32 %v3835_v10, %v8379_v0  ;;  %v942_v46 = vmul.f32 %v3840_v30, %v8379_v0 }
  0xe0   : >> { %8499 = vst [vmem:[#allocation87_spill] sm:$0xff] %v6318_v16  ;;  %v905_v16 = vadd.f32 %v891_v53, %v877_v34  ;;  %v913_v34 = vadd.f32 %v899_v7, %v885_v60  ;;  %v916_v53 = vadd.f32 %v902_v15, %v888_v5  ;;  %v939_v5 = vmul.f32 %v3837_v8, %v8379_v0  ;;  %v6377_v15 = vld [vmem:[%s5119_s2 + $0x480] sm:$0xff] }
  0xe1   : >> { %8500 = vst [vmem:[#allocation88_spill] sm:$0xff] %v6323_v40  ;;  %v908_v40 = vadd.f32 %v894_v21, %v880_v22  ;;  %v3841_v22 = vld [vmem:[%s5119_s2 + $0x348] sm:$0xff]  ;;  %v917_v21 = vadd.f32 %v903_v13, %v889_v61  ;;  %v940_v60 = vmul.f32 %v3838_v52, %v8379_v0  ;;  %v941_v61 = vmul.f32 %v3839_v59, %v8379_v0  ;;  %v6368_v59 = vld [vmem:[%s5119_s2 + $0x458] sm:$0xff] }
  0xe2   : >> { %8501 = vst [vmem:[#allocation42_spill] sm:$0xff] %v6328_v57  ;;  %v3836_v57 = vld [vmem:[%s5119_s2 + $0x308] sm:$0xff]  ;;  %v943_v56 = vmul.f32 %v3841_v22, %v8379_v0  ;;  %v944_v25 = vmul.f32 %v3842_v24, %v8379_v0  ;;  %v945_v6 = vmul.f32 %v3843_v35, %v8379_v0  ;;  %v946_v10 = vmul.f32 %v3844_v27, %v8379_v0  ;;  %v6374_v27 = vld [vmem:[%s5119_s2 + $0x470] sm:$0xff] }
  0xe3   : >> { %v938_v47 = vmul.f32 %v3836_v57, %v8379_v0  ;;  %v947_v8 = vmul.f32 %v3845_v32, %v8379_v0  ;;  %v948_v52 = vmul.f32 %v3846_v17, %v8379_v0  ;;  %v949_v30 = vadd.f32 %v935_v2, %v905_v16  ;;  %v6371_v57 = vld [vmem:[%s5119_s2 + $0x468] sm:$0xff]  ;;  %8502 = vst [vmem:[#allocation43_spill] sm:$0xff] %v6377_v15  ;;  %v6389_v32 = vld [vmem:[%s5119_s2 + $0x4b0] sm:$0xff]  ;;  %v6392_v17 = vld [vmem:[%s5119_s2 + $0x4b8] sm:$0xff] }
  0xe4   : >> { %v950_v7 = vadd.f32 %v936_v39, %v906_v4  ;;  %v951_v12 = vadd.f32 %v937_v9, %v907_v50  ;;  %v953_v13 = vadd.f32 %v939_v5, %v909_v44  ;;  %v954_v20 = vadd.f32 %v940_v60, %v910_v23  ;;  %v6380_v16 = vld [vmem:[%s5119_s2 + $0x488] sm:$0xff]  ;;  %v6383_v50 = vld [vmem:[%s5119_s2 + $0x498] sm:$0xff]  ;;  %v6386_v4 = vld [vmem:[%s5119_s2 + $0x4a0] sm:$0xff]  ;;  %8506 = vst [vmem:[#allocation47_spill] sm:$0xff] %v6389_v32 }
  0xe5   : >> { %v952_v19 = vadd.f32 %v938_v47, %v908_v40  ;;  %v955_v14 = vadd.f32 %v941_v61, %v911_v51  ;;  %v956_v63 = vadd.f32 %v942_v46, %v912_v45  ;;  %8503 = vst [vmem:[#allocation44_spill] sm:$0xff] %v6380_v16  ;;  %v957_v40 = vadd.f32 %v943_v56, %v913_v34  ;;  %v6395_v44 = vld [vmem:[%s5119_s2 + $0x4c8] sm:$0xff]  ;;  %v6398_v2 = vld [vmem:[%s5119_s2 + $0x4d0] sm:$0xff]  ;;  %v6401_v45 = vld [vmem:[%s5119_s2 + $0x4e0] sm:$0xff] }
  0xe6   : >> { %8504 = vst [vmem:[#allocation45_spill] sm:$0xff] %v6383_v50  ;;  %v958_v22 = vadd.f32 %v944_v25, %v914_v1  ;;  %v959_v24 = vadd.f32 %v945_v6, %v915_v28  ;;  %v960_v35 = vadd.f32 %v946_v10, %v916_v53  ;;  %v961_v23 = vadd.f32 %v947_v8, %v917_v21  ;;  %v6404_v39 = vld [vmem:[%s5119_s2 + $0x4e8] sm:$0xff]  ;;  %v6438_v10 = vld [vmem:[%s5119_s2 + $0x2f1] sm:$0xff] }
  0xe7   : >> { %8505 = vst [vmem:[#allocation46_spill] sm:$0xff] %v6386_v4  ;;  %v962_v51 = vadd.f32 %v948_v52, %v918_v49  ;;  %v979_v34 = vmul.f32 %v6365_v55, %v8382_v3  ;;  %v980_v1 = vmul.f32 %v6368_v59, %v8382_v3  ;;  %v981_v28 = vmul.f32 %v6371_v57, %v8382_v3  ;;  %v6435_v6 = vld [vmem:[%s5119_s2 + $0x2e9] sm:$0xff] }
  0xe8   : >> { %8507 = vst [vmem:[#allocation48_spill] sm:$0xff] %v6392_v17  ;;  %v982_v49 = vmul.f32 %v6374_v27, %v8382_v3  ;;  %v983_v53 = vmul.f32 %v6377_v15, %v8382_v3  ;;  %v984_v21 = vmul.f32 %v6380_v16, %v8382_v3  ;;  %v985_v9 = vmul.f32 %v6383_v50, %v8382_v3  ;;  %v6462_v16 = vld [vmem:[%s5119_s2 + $0x351] sm:$0xff] }
  0xe9   : >> { %8508 = vst [vmem:[#allocation49_spill] sm:$0xff] %v6395_v44  ;;  %v986_v47 = vmul.f32 %v6386_v4, %v8382_v3  ;;  %v987_v5 = vmul.f32 %v6389_v32, %v8382_v3  ;;  %v988_v60 = vmul.f32 %v6392_v17, %v8382_v3  ;;  %v989_v61 = vmul.f32 %v6395_v44, %v8382_v3  ;;  %v6444_v32 = vld [vmem:[%s5119_s2 + $0x309] sm:$0xff] }
  0xea   : >> { %8509 = vst [vmem:[#allocation50_spill] sm:$0xff] %v6398_v2  ;;  %v990_v46 = vmul.f32 %v6398_v2, %v8382_v3  ;;  %v991_v56 = vmul.f32 %v6401_v45, %v8382_v3  ;;  %v992_v25 = vmul.f32 %v6404_v39, %v8382_v3  ;;  %v993_v8 = vadd.f32 %v979_v34, %v949_v30  ;;  %v6441_v2 = vld [vmem:[%s5119_s2 + $0x301] sm:$0xff] }
  0xeb   : >> { %8510 = vst [vmem:[#allocation51_spill] sm:$0xff] %v6401_v45  ;;  %v994_v52 = vadd.f32 %v980_v1, %v950_v7  ;;  %v995_v17 = vadd.f32 %v981_v28, %v951_v12  ;;  %v996_v44 = vadd.f32 %v982_v49, %v952_v19  ;;  %v6447_v45 = vld [vmem:[%s5119_s2 + $0x319] sm:$0xff]  ;;  %v997_v4 = vadd.f32 %v983_v53, %v953_v13  ;;  %v6450_v30 = vld [vmem:[%s5119_s2 + $0x321] sm:$0xff]  ;;  %v6453_v7 = vld [vmem:[%s5119_s2 + $0x331] sm:$0xff] }
  0xec   : >> { %8511 = vst [vmem:[#allocation52_spill] sm:$0xff] %v6404_v39  ;;  %v998_v3 = vadd.f32 %v984_v21, %v954_v20  ;;  %v999_v39 = vadd.f32 %v985_v9, %v955_v14  ;;  %v1000_v50 = vadd.f32 %v986_v47, %v956_v63  ;;  %v6456_v12 = vld [vmem:[%s5119_s2 + $0x339] sm:$0xff]  ;;  %v1001_v19 = vadd.f32 %v987_v5, %v957_v40  ;;  %v6459_v49 = vld [vmem:[%s5119_s2 + $0x349] sm:$0xff]  ;;  %v6465_v13 = vld [vmem:[%s5119_s2 + $0x361] sm:$0xff] }
  0xed   : >> { %8512 = vst [vmem:[#allocation53_spill] sm:$0xff] %v6435_v6  ;;  %v1002_v34 = vadd.f32 %v988_v60, %v958_v22  ;;  %v1003_v1 = vadd.f32 %v989_v61, %v959_v24  ;;  %v1004_v28 = vadd.f32 %v990_v46, %v960_v35  ;;  %v1005_v20 = vadd.f32 %v991_v56, %v961_v23  ;;  %v6468_v53 = vld [vmem:[%s5119_s2 + $0x369] sm:$0xff]  ;;  %v6471_v63 = vld [vmem:[%s5119_s2 + $0x379] sm:$0xff]  ;;  %v6474_v21 = vld [vmem:[%s5119_s2 + $0x381] sm:$0xff] }
  0xee   : >> { %8513 = vst [vmem:[#allocation54_spill] sm:$0xff] %v6438_v10  ;;  %v1006_v14 = vadd.f32 %v992_v25, %v962_v51  ;;  %v1021_v40 = vmul.f32 %v6435_v6, %v8394_v42  ;;  %v1022_v22 = vmul.f32 %v6438_v10, %v8394_v42  ;;  %v1023_v24 = vmul.f32 %v6441_v2, %v8394_v42 }
  0xef   : >> { %8514 = vst [vmem:[#allocation55_spill] sm:$0xff] %v6441_v2  ;;  %v1024_v35 = vmul.f32 %v6444_v32, %v8394_v42  ;;  %v1025_v23 = vmul.f32 %v6447_v45, %v8394_v42  ;;  %v1026_v51 = vmul.f32 %v6450_v30, %v8394_v42  ;;  %v1027_v9 = vmul.f32 %v6453_v7, %v8394_v42 }
  0xf0   : >> { %8515 = vst [vmem:[#allocation14_spill] sm:$0xff] %v6444_v32  ;;  %v1028_v47 = vmul.f32 %v6456_v12, %v8394_v42  ;;  %v1029_v5 = vmul.f32 %v6459_v49, %v8394_v42  ;;  %v1030_v60 = vmul.f32 %v6462_v16, %v8394_v42  ;;  %v1031_v61 = vmul.f32 %v6465_v13, %v8394_v42 }
  0xf1   : >> { %8516 = vst [vmem:[#allocation56_spill] sm:$0xff] %v6447_v45  ;;  %v1032_v46 = vmul.f32 %v6468_v53, %v8394_v42  ;;  %v1033_v56 = vmul.f32 %v6471_v63, %v8394_v42  ;;  %v1034_v25 = vmul.f32 %v6474_v21, %v8394_v42  ;;  %v1038_v45 = vadd.f32 %v1024_v35, %v996_v44 }
  0xf2   : >> { %8517 = vst [vmem:[#allocation57_spill] sm:$0xff] %v6450_v30  ;;  %v1037_v30 = vadd.f32 %v1023_v24, %v995_v17  ;;  %v1040_v32 = vadd.f32 %v1026_v51, %v998_v3  ;;  %v1041_v2 = vadd.f32 %v1027_v9, %v999_v39  ;;  %v1043_v10 = vadd.f32 %v1029_v5, %v1001_v19  ;;  %v8529_v39 = vld [vmem:[#allocation89_spill] sm:$0xff] }
  0xf3   : >> { %8518 = vst [vmem:[#allocation58_spill] sm:$0xff] %v6453_v7  ;;  %v1035_v7 = vadd.f32 %v1021_v40, %v993_v8  ;;  %v1044_v6 = vadd.f32 %v1030_v60, %v1002_v34  ;;  %v1046_v15 = vadd.f32 %v1032_v46, %v1004_v28  ;;  %v6508_v42 = vadd.f32 %v1033_v56, %v1005_v20  ;;  %v8530_v8 = vld [vmem:[#allocation23_spill] sm:$0xff]  ;;  %v8533_v34 = vld [vmem:[#allocation90_spill] sm:$0xff]  ;;  %v8550_v51 = vld [vmem:[#allocation37_spill] sm:$0xff] }
  0xf4   : >> { %8519 = vst [vmem:[#allocation59_spill] sm:$0xff] %v6456_v12  ;;  %v1036_v12 = vadd.f32 %v1022_v22, %v994_v52  ;;  %v6510_v17 = vadd.f32 %v1034_v25, %v1006_v14  ;;  %v8525_v3 = vmax.f32 %v8424_v48, %v6036_v18  ;;  %v8531_v52 = vmax.f32 %v8529_v39, %v8530_v8  ;;  %v8537_v18 = vld [vmem:[#allocation91_spill] sm:$0xff]  ;;  %v8538_v48 = vld [vmem:[#allocation34_spill] sm:$0xff]  ;;  %v8545_v22 = vld [vmem:[#allocation93_spill] sm:$0xff] }
  0xf5   : >> { %8520 = vst [vmem:[#allocation60_spill] sm:$0xff] %v6459_v49  ;;  %v1039_v49 = vadd.f32 %v1025_v23, %v997_v4  ;;  %v8527_v4 = vmax.f32 %v8425_v36, %v6038_v43  ;;  %v8541_v43 = vld [vmem:[#allocation92_spill] sm:$0xff]  ;;  %v8542_v36 = vld [vmem:[#allocation35_spill] sm:$0xff]  ;;  %v8549_v23 = vld [vmem:[#allocation94_spill] sm:$0xff] }
  0xf6   : >> { %8521 = vst [vmem:[#allocation61_spill] sm:$0xff] %v6462_v16  ;;  %v1042_v16 = vadd.f32 %v1028_v47, %v1000_v50  ;;  %v6515_v50 = vmax.f32 %v8525_v3, %v1035_v7  ;;  %v6525_v19 = vmax.f32 %v8531_v52, %v1037_v30  ;;  %v8539_v7 = vmax.f32 %v8537_v18, %v8538_v48  ;;  %v8546_v30 = vld [vmem:[#allocation36_spill] sm:$0xff]  ;;  %v8553_v47 = vld [vmem:[#allocation95_spill] sm:$0xff]  ;;  %v8561_v25 = vld [vmem:[#allocation97_spill] sm:$0xff] }
  0xf7   : >> { %8522 = vst [vmem:[#allocation62_spill] sm:$0xff] %v6465_v13  ;;  %v1045_v13 = vadd.f32 %v1031_v61, %v1003_v1  ;;  %v6520_v44 = vmax.f32 %v8527_v4, %v1036_v12  ;;  %v8534_v1 = vld [vmem:[#allocation33_spill] sm:$0xff]  ;;  %v8543_v12 = vmax.f32 %v8541_v43, %v8542_v36  ;;  %v8547_v24 = vmax.f32 %v8545_v22, %v8546_v30  ;;  %v8557_v61 = vld [vmem:[#allocation96_spill] sm:$0xff]  ;;  %v8558_v46 = vld [vmem:[#allocation39_spill] sm:$0xff] }
  0xf8   : >> { %8523 = vst [vmem:[#allocation63_spill] sm:$0xff] %v6468_v53  ;;  %v8535_v28 = vmax.f32 %v8533_v34, %v8534_v1  ;;  %v6535_v14 = vmax.f32 %v8539_v7, %v1039_v49  ;;  %v8554_v49 = vld [vmem:[#allocation38_spill] sm:$0xff]  ;;  %v8566_v8 = vld [vmem:[#allocation41_spill] sm:$0xff]  ;;  %v4944_v43 = vld [vmem:[%s5119_s2 + $0x468] sm:$0xff] }
  0xf9   : >> { %8524 = vst [vmem:[#allocation64_spill] sm:$0xff] %v6471_v63  ;;  %v6540_v40 = vmax.f32 %v8543_v12, %v1040_v32  ;;  %v6545_v35 = vmax.f32 %v8547_v24, %v1041_v2  ;;  %v8555_v5 = vmax.f32 %v8553_v47, %v8554_v49  ;;  %v8559_v32 = vmax.f32 %v8557_v61, %v8558_v46  ;;  %v8562_v2 = vld [vmem:[#allocation40_spill] sm:$0xff]  ;;  %v8565_v39 = vld [vmem:[#allocation98_spill] sm:$0xff]  ;;  %v4942_v18 = vld [vmem:[%s5119_s2 + $0x450] sm:$0xff] }
  0xfa   : >> { %8526 = vst [vmem:[#allocation65_spill] sm:$0xff] %v6515_v50  ;;  %v6530_v20 = vmax.f32 %v8535_v28, %v1038_v45  ;;  %v8551_v45 = vmax.f32 %v8549_v23, %v8550_v51  ;;  %v8563_v3 = vmax.f32 %v8561_v25, %v8562_v2  ;;  %v4940_v34 = vld [vmem:[%s5119_s2 + $0x438] sm:$0xff]  ;;  %v4941_v28 = vld [vmem:[%s5119_s2 + $0x440] sm:$0xff]  ;;  %v4945_v36 = vld [vmem:[%s5119_s2 + $0x470] sm:$0xff] }
  0xfb   : >> { %8528 = vst [vmem:[#allocation66_spill] sm:$0xff] %v6520_v44  ;;  %v6555_v60 = vmax.f32 %v8555_v5, %v1043_v10  ;;  %v6560_v56 = vmax.f32 %v8559_v32, %v1044_v6  ;;  %v8569_v10 = vld [vmem:[#allocation13_spill] sm:$0xff]  ;;  %v4946_v22 = vld [vmem:[%s5119_s2 + $0x480] sm:$0xff]  ;;  %v4947_v24 = vld [vmem:[%s5119_s2 + $0x488] sm:$0xff] }
  0xfc   : >> { %8532 = vst [vmem:[#allocation67_spill] sm:$0xff] %v6525_v19  ;;  %v6550_v9 = vmax.f32 %v8551_v45, %v1042_v16  ;;  %v6565_v4 = vmax.f32 %v8563_v3, %v1045_v13  ;;  %v8567_v16 = vmax.f32 %v8565_v39, %v8566_v8  ;;  %v1063_v1 = vmul.f32 %v4940_v34, %v8569_v10  ;;  %v4943_v13 = vld [vmem:[%s5119_s2 + $0x458] sm:$0xff]  ;;  %v4949_v47 = vld [vmem:[%s5119_s2 + $0x4a0] sm:$0xff]  ;;  %v4950_v5 = vld [vmem:[%s5119_s2 + $0x4b0] sm:$0xff] }
  0xfd   : >> { %8536 = vst [vmem:[#allocation68_spill] sm:$0xff] %v6530_v20  ;;  %v1064_v6 = vmul.f32 %v4941_v28, %v8569_v10  ;;  %v1065_v48 = vmul.f32 %v4942_v18, %v8569_v10  ;;  %v1066_v7 = vmul.f32 %v4943_v13, %v8569_v10  ;;  %v1068_v12 = vmul.f32 %v4945_v36, %v8569_v10  ;;  %v4948_v51 = vld [vmem:[%s5119_s2 + $0x498] sm:$0xff]  ;;  %v4952_v25 = vld [vmem:[%s5119_s2 + $0x4c8] sm:$0xff]  ;;  %v4953_v3 = vld [vmem:[%s5119_s2 + $0x4d0] sm:$0xff] }
  0xfe   : >> { %8540 = vst [vmem:[#allocation15_spill] sm:$0xff] %v6535_v14  ;;  %v6570_v52 = vmax.f32 %v8567_v16, %v1046_v15  ;;  %v1067_v15 = vmul.f32 %v4944_v43, %v8569_v10  ;;  %v1069_v30 = vmul.f32 %v4946_v22, %v8569_v10  ;;  %v1070_v23 = vmul.f32 %v4947_v24, %v8569_v10  ;;  %v4951_v46 = vld [vmem:[%s5119_s2 + $0x4b8] sm:$0xff]  ;;  %v4956_v18 = vld [vmem:[%s5119_s2 + $0x2e9] sm:$0xff]  ;;  %v4958_v22 = vld [vmem:[%s5119_s2 + $0x301] sm:$0xff] }
  0xff   : >> { %8544 = vst [vmem:[#allocation72_spill] sm:$0xff] %v6540_v40  ;;  %v1071_v45 = vmul.f32 %v4948_v51, %v8569_v10  ;;  %v1072_v49 = vmul.f32 %v4949_v47, %v8569_v10  ;;  %v1073_v61 = vmul.f32 %v4950_v5, %v8569_v10  ;;  %v1074_v32 = vmul.f32 %v4951_v46, %v8569_v10  ;;  %v4954_v8 = vld [vmem:[%s5119_s2 + $0x2d1] sm:$0xff]  ;;  %v4955_v34 = vld [vmem:[%s5119_s2 + $0x2d9] sm:$0xff]  ;;  %v4959_v24 = vld [vmem:[%s5119_s2 + $0x309] sm:$0xff] }
 0x100   : >> { %8548 = vst [vmem:[#allocation73_spill] sm:$0xff] %v6545_v35  ;;  %v1075_v2 = vmul.f32 %v4952_v25, %v8569_v10  ;;  %v1076_v39 = vmul.f32 %v4953_v3, %v8569_v10  ;;  %v1077_v16 = vmul.f32 %v4954_v8, %v8451_v54  ;;  %v1078_v28 = vmul.f32 %v4955_v34, %v8451_v54  ;;  %v4957_v43 = vld [vmem:[%s5119_s2 + $0x2f1] sm:$0xff]  ;;  %v4960_v47 = vld [vmem:[%s5119_s2 + $0x319] sm:$0xff]  ;;  %v4961_v46 = vld [vmem:[%s5119_s2 + $0x321] sm:$0xff] }
 0x101   : >> { %8552 = vst [vmem:[#allocation74_spill] sm:$0xff] %v6550_v9  ;;  %v1079_v13 = vmul.f32 %v4956_v18, %v8451_v54  ;;  %v1080_v36 = vmul.f32 %v4957_v43, %v8451_v54  ;;  %v1081_v10 = vmul.f32 %v4958_v22, %v8451_v54  ;;  %v1082_v51 = vmul.f32 %v4959_v24, %v8451_v54  ;;  %v4962_v3 = vld [vmem:[%s5119_s2 + $0x331] sm:$0xff]  ;;  %v4963_v34 = vld [vmem:[%s5119_s2 + $0x339] sm:$0xff]  ;;  %v4964_v43 = vld [vmem:[%s5119_s2 + $0x349] sm:$0xff] }
 0x102   : >> { %8556 = vst [vmem:[#allocation75_spill] sm:$0xff] %v6555_v60  ;;  %v1083_v5 = vmul.f32 %v4960_v47, %v8451_v54  ;;  %v1084_v25 = vmul.f32 %v4961_v46, %v8451_v54  ;;  %v1085_v8 = vmul.f32 %v4962_v3, %v8451_v54  ;;  %v1086_v18 = vmul.f32 %v4963_v34, %v8451_v54  ;;  %v4965_v22 = vld [vmem:[%s5119_s2 + $0x351] sm:$0xff] }
 0x103   : >> { %8560 = vst [vmem:[#allocation76_spill] sm:$0xff] %v6560_v56  ;;  %v1087_v63 = vmul.f32 %v4964_v43, %v8451_v54  ;;  %v1088_v53 = vmul.f32 %v4965_v22, %v8451_v54  ;;  %v1091_v56 = vadd.f32 %v1077_v16, %v1063_v1  ;;  %v1092_v46 = vadd.f32 %v1078_v28, %v1064_v6  ;;  %v8570_v50 = vld [vmem:[#allocation69_spill] sm:$0xff]  ;;  %v8573_v6 = vld [vmem:[#allocation107_spill] sm:$0xff]  ;;  %v8582_v28 = vld [vmem:[#allocation116_spill] sm:$0xff] }
 0x104   : >> { %8564 = vst [vmem:[#allocation77_spill] sm:$0xff] %v6565_v4  ;;  %v4967_v4 = vld [vmem:[%s5119_s2 + $0x369] sm:$0xff]  ;;  %v1093_v60 = vadd.f32 %v1079_v13, %v1065_v48  ;;  %v1094_v9 = vadd.f32 %v1080_v36, %v1066_v7  ;;  %v1095_v3 = vadd.f32 %v1081_v10, %v1067_v15  ;;  %v1096_v35 = vadd.f32 %v1082_v51, %v1068_v12  ;;  %v8576_v12 = vld [vmem:[#allocation110_spill] sm:$0xff] }
 0x105   : >> { %8568 = vst [vmem:[#allocation78_spill] sm:$0xff] %v6570_v52  ;;  %v4966_v52 = vld [vmem:[%s5119_s2 + $0x361] sm:$0xff]  ;;  %v1090_v47 = vmul.f32 %v4967_v4, %v8451_v54  ;;  %v1097_v40 = vadd.f32 %v1083_v5, %v1069_v30  ;;  %v1098_v34 = vadd.f32 %v1084_v25, %v1070_v23  ;;  %v1099_v14 = vadd.f32 %v1085_v8, %v1071_v45  ;;  %v8583_v36 = vld [vmem:[#allocation117_spill] sm:$0xff] }
 0x106   : >> { %v1089_v24 = vmul.f32 %v4966_v52, %v8451_v54  ;;  %v1100_v20 = vadd.f32 %v1086_v18, %v1072_v49  ;;  %v1101_v43 = vadd.f32 %v1087_v63, %v1073_v61  ;;  %v1102_v19 = vadd.f32 %v1088_v53, %v1074_v32  ;;  %v8572_v4 = vld [vmem:[#allocation71_spill] sm:$0xff]  ;;  %v8574_v7 = vld [vmem:[#allocation108_spill] sm:$0xff]  ;;  %v8575_v63 = vld [vmem:[#allocation109_spill] sm:$0xff] }
 0x107   : >> { %v1104_v22 = vadd.f32 %v1090_v47, %v1076_v39  ;;  %v1105_v52 = vmul.f32 %v8570_v50, %v8465_v37  ;;  %v1106_v54 = vmul.f32 %v8571_v62, %v8465_v37  ;;  %v1107_v1 = vmul.f32 %v8572_v4, %v8465_v37  ;;  %v8577_v50 = vld [vmem:[#allocation111_spill] sm:$0xff]  ;;  %v8578_v62 = vld [vmem:[#allocation112_spill] sm:$0xff]  ;;  %v8579_v49 = vld [vmem:[#allocation113_spill] sm:$0xff] }
 0x108   : >> { %v1103_v44 = vadd.f32 %v1089_v24, %v1075_v2  ;;  %v1108_v48 = vmul.f32 %v8573_v6, %v8465_v37  ;;  %v1109_v15 = vmul.f32 %v8574_v7, %v8465_v37  ;;  %v1110_v53 = vmul.f32 %v8575_v63, %v8465_v37  ;;  %v8580_v32 = vld [vmem:[#allocation114_spill] sm:$0xff]  ;;  %v8581_v39 = vld [vmem:[#allocation115_spill] sm:$0xff] }
 0x109   : >> { %v1111_v30 = vmul.f32 %v8576_v12, %v8465_v37  ;;  %v1112_v23 = vmul.f32 %v8577_v50, %v8465_v37  ;;  %v1113_v45 = vmul.f32 %v8578_v62, %v8465_v37  ;;  %v1114_v61 = vmul.f32 %v8579_v49, %v8465_v37 }
 0x10a   : >> { %v1115_v2 = vmul.f32 %v8580_v32, %v8465_v37  ;;  %v1116_v16 = vmul.f32 %v8581_v39, %v8465_v37  ;;  %v1117_v13 = vmul.f32 %v8582_v28, %v8465_v37  ;;  %v1118_v10 = vmul.f32 %v8583_v36, %v8465_v37 }
 0x10b   : >> { %v1119_v51 = vadd.f32 %v1105_v52, %v1091_v56  ;;  %v1120_v5 = vadd.f32 %v1106_v54, %v1092_v46  ;;  %v1121_v25 = vadd.f32 %v1107_v1, %v1093_v60  ;;  %v1122_v8 = vadd.f32 %v1108_v48, %v1094_v9  ;;  %v4968_v52 = vld [vmem:[%s5119_s2 + $0x210] sm:$0xff]  ;;  %v4969_v1 = vld [vmem:[%s5119_s2 + $0x218] sm:$0xff] }
 0x10c   : >> { %v1123_v18 = vadd.f32 %v1109_v15, %v1095_v3  ;;  %v1124_v24 = vadd.f32 %v1110_v53, %v1096_v35  ;;  %v1125_v47 = vadd.f32 %v1111_v30, %v1097_v40  ;;  %v1126_v4 = vadd.f32 %v1112_v23, %v1098_v34  ;;  %v8586_v35 = vld [vmem:[#allocation21_spill] sm:$0xff] }
 0x10d   : >> { %v1127_v6 = vadd.f32 %v1113_v45, %v1099_v14  ;;  %v1128_v7 = vadd.f32 %v1114_v61, %v1100_v20  ;;  %v1129_v63 = vadd.f32 %v1115_v2, %v1101_v43  ;;  %v1130_v12 = vadd.f32 %v1116_v16, %v1102_v19  ;;  %v8584_v20 = vld [vmem:[#allocation26_spill] sm:$0xff]  ;;  %v8585_v19 = vld [vmem:[#allocation19_spill] sm:$0xff]  ;;  %v8591_v43 = vld [vmem:[#allocation101_spill] sm:$0xff] }
 0x10e   : >> { %v1131_v50 = vadd.f32 %v1117_v13, %v1103_v44  ;;  %v1132_v62 = vadd.f32 %v1118_v10, %v1104_v22  ;;  %v1133_v49 = vmul.f32 %v6209_v41, %v8478_v26  ;;  %v1134_v37 = vmul.f32 %v6214_v38, %v8478_v26  ;;  %v8587_v41 = vld [vmem:[#allocation28_spill] sm:$0xff]  ;;  %v8588_v38 = vld [vmem:[#allocation29_spill] sm:$0xff] }
 0x10f   : >> { %v1135_v9 = vmul.f32 %v6219_v58, %v8478_v26  ;;  %v1136_v40 = vmul.f32 %v6224_v11, %v8478_v26  ;;  %v1137_v14 = vmul.f32 %v8584_v20, %v8478_v26  ;;  %v1138_v44 = vmul.f32 %v8585_v19, %v8478_v26  ;;  %v8589_v58 = vld [vmem:[#allocation99_spill] sm:$0xff]  ;;  %v8590_v11 = vld [vmem:[#allocation100_spill] sm:$0xff]  ;;  %v8592_v20 = vld [vmem:[#allocation17_spill] sm:$0xff] }
 0x110   : >> { %v1139_v60 = vmul.f32 %v8586_v35, %v8478_v26  ;;  %v1140_v56 = vmul.f32 %v8587_v41, %v8478_v26  ;;  %v1141_v46 = vmul.f32 %v8588_v38, %v8478_v26  ;;  %v1142_v3 = vmul.f32 %v8589_v58, %v8478_v26  ;;  %v8593_v19 = vld [vmem:[#allocation102_spill] sm:$0xff]  ;;  %v4970_v41 = vld [vmem:[%s5119_s2 + $0xa9] sm:$0xff] }
 0x111   : >> { %v1143_v34 = vmul.f32 %v8590_v11, %v8478_v26  ;;  %v1144_v22 = vmul.f32 %v8591_v43, %v8478_v26  ;;  %v1145_v54 = vmul.f32 %v4968_v52, %v8478_v26  ;;  %v1146_v48 = vmul.f32 %v4969_v1, %v8478_v26  ;;  %v8594_v26 = vld [vmem:[#allocation103_spill] sm:$0xff]  ;;  %v4971_v38 = vld [vmem:[%s5119_s2 + $0xb1] sm:$0xff] }
 0x112   : >> { %v1147_v15 = vadd.f32 %v1133_v49, %v1119_v51  ;;  %v1148_v53 = vadd.f32 %v1134_v37, %v1120_v5  ;;  %v1149_v30 = vadd.f32 %v1135_v9, %v1121_v25  ;;  %v1150_v23 = vadd.f32 %v1136_v40, %v1122_v8  ;;  %v8595_v5 = vld [vmem:[#allocation104_spill] sm:$0xff]  ;;  %v8596_v8 = vld [vmem:[#allocation105_spill] sm:$0xff]  ;;  %v8602_v37 = vld [vmem:[#allocation87_spill] sm:$0xff] }
 0x113   : >> { %v1151_v45 = vadd.f32 %v1137_v14, %v1123_v18  ;;  %v1152_v61 = vadd.f32 %v1138_v44, %v1124_v24  ;;  %v1153_v32 = vadd.f32 %v1139_v60, %v1125_v47  ;;  %v1154_v2 = vadd.f32 %v1140_v56, %v1126_v4  ;;  %v8597_v24 = vld [vmem:[#allocation106_spill] sm:$0xff]  ;;  %v8598_v4 = vld [vmem:[#allocation27_spill] sm:$0xff]  ;;  %v8603_v40 = vld [vmem:[#allocation88_spill] sm:$0xff] }
 0x114   : >> { %v1155_v39 = vadd.f32 %v1141_v46, %v1127_v6  ;;  %v1156_v16 = vadd.f32 %v1142_v3, %v1128_v7  ;;  %v1157_v28 = vadd.f32 %v1143_v34, %v1129_v63  ;;  %v1158_v13 = vadd.f32 %v1144_v22, %v1130_v12  ;;  %v8599_v7 = vld [vmem:[#allocation31_spill] sm:$0xff]  ;;  %v8600_v12 = vld [vmem:[#allocation30_spill] sm:$0xff] }
 0x115   : >> { %v1159_v36 = vadd.f32 %v1145_v54, %v1131_v50  ;;  %v1160_v10 = vadd.f32 %v1146_v48, %v1132_v62  ;;  %v1161_v35 = vmul.f32 %v8593_v19, %v8592_v20  ;;  %v1162_v51 = vmul.f32 %v8594_v26, %v8592_v20  ;;  %v8601_v62 = vld [vmem:[#allocation32_spill] sm:$0xff]  ;;  %v8604_v44 = vld [vmem:[#allocation42_spill] sm:$0xff] }
 0x116   : >> { %v1163_v25 = vmul.f32 %v8595_v5, %v8592_v20  ;;  %v1164_v18 = vmul.f32 %v8596_v8, %v8592_v20  ;;  %v1165_v47 = vmul.f32 %v8597_v24, %v8592_v20  ;;  %v1166_v6 = vmul.f32 %v8598_v4, %v8592_v20  ;;  %v4980_v8 = vld [vmem:[%s5119_s2 + $0x1e1] sm:$0xff]  ;;  %v4981_v24 = vld [vmem:[%s5119_s2 + $0x1e9] sm:$0xff]  ;;  %v4982_v4 = vld [vmem:[%s5119_s2 + $0x1f9] sm:$0xff] }
 0x117   : >> { %v1167_v63 = vmul.f32 %v8599_v7, %v8592_v20  ;;  %v1168_v50 = vmul.f32 %v8600_v12, %v8592_v20  ;;  %v1169_v49 = vmul.f32 %v8601_v62, %v8592_v20  ;;  %v1170_v9 = vmul.f32 %v8602_v37, %v8592_v20  ;;  %v4983_v7 = vld [vmem:[%s5119_s2 + $0x201] sm:$0xff]  ;;  %v8607_v62 = vld [vmem:[#allocation22_spill] sm:$0xff] }
 0x118   : >> { %v1171_v14 = vmul.f32 %v8603_v40, %v8592_v20  ;;  %v1172_v60 = vmul.f32 %v8604_v44, %v8592_v20  ;;  %v1173_v56 = vmul.f32 %v4970_v41, %v8592_v20  ;;  %v1174_v46 = vmul.f32 %v4971_v38, %v8592_v20  ;;  %v4972_v20 = vld [vmem:[%s5119_s2 + $0x181] sm:$0xff] }
 0x119   : >> { %v1175_v58 = vadd.f32 %v1161_v35, %v1147_v15  ;;  %v1176_v3 = vadd.f32 %v1162_v51, %v1148_v53  ;;  %v1177_v11 = vadd.f32 %v1163_v25, %v1149_v30  ;;  %v1178_v34 = vadd.f32 %v1164_v18, %v1150_v23  ;;  %v8605_v53 = vld [vmem:[#allocation18_spill] sm:$0xff]  ;;  %v4973_v23 = vld [vmem:[%s5119_s2 + $0x189] sm:$0xff] }
 0x11a   : >> { %v1179_v43 = vadd.f32 %v1165_v47, %v1151_v45  ;;  %v1180_v22 = vadd.f32 %v1166_v6, %v1152_v61  ;;  %v1181_v52 = vadd.f32 %v1167_v63, %v1153_v32  ;;  %v1182_v54 = vadd.f32 %v1168_v50, %v1154_v2  ;;  %v4974_v61 = vld [vmem:[%s5119_s2 + $0x199] sm:$0xff]  ;;  %v4975_v2 = vld [vmem:[%s5119_s2 + $0x1a1] sm:$0xff]  ;;  %v4979_v51 = vld [vmem:[%s5119_s2 + $0x1d1] sm:$0xff] }
 0x11b   : >> { %v1183_v1 = vadd.f32 %v1169_v49, %v1155_v39  ;;  %v1184_v48 = vadd.f32 %v1170_v9, %v1156_v16  ;;  %v1185_v19 = vadd.f32 %v1171_v14, %v1157_v28  ;;  %v1186_v26 = vadd.f32 %v1172_v60, %v1158_v13  ;;  %v4976_v16 = vld [vmem:[%s5119_s2 + $0x1b1] sm:$0xff]  ;;  %v4977_v13 = vld [vmem:[%s5119_s2 + $0x1b9] sm:$0xff]  ;;  %v8606_v12 = vld [vmem:[#allocation20_spill] sm:$0xff] }
 0x11c   : >> { %v1187_v5 = vadd.f32 %v1173_v56, %v1159_v36  ;;  %v1188_v15 = vadd.f32 %v1174_v46, %v1160_v10  ;;  %v1189_v30 = vmul.f32 %v4972_v20, %v8605_v53  ;;  %v1190_v45 = vmul.f32 %v4973_v23, %v8605_v53  ;;  %v4978_v10 = vld [vmem:[%s5119_s2 + $0x1c9] sm:$0xff] }
 0x11d   : >> { %v1191_v32 = vmul.f32 %v4974_v61, %v8605_v53  ;;  %v1192_v39 = vmul.f32 %v4975_v2, %v8605_v53  ;;  %v1193_v28 = vmul.f32 %v4976_v16, %v8605_v53  ;;  %v1194_v36 = vmul.f32 %v4977_v13, %v8605_v53 }
 0x11e   : >> { %v1195_v35 = vmul.f32 %v4978_v10, %v8605_v53  ;;  %v1196_v25 = vmul.f32 %v4979_v51, %v8605_v53  ;;  %v1197_v18 = vmul.f32 %v4980_v8, %v8605_v53  ;;  %v1198_v47 = vmul.f32 %v4981_v24, %v8605_v53 }
 0x11f   : >> { %v1199_v6 = vmul.f32 %v4982_v4, %v8605_v53  ;;  %v1200_v63 = vmul.f32 %v4983_v7, %v8605_v53  ;;  %v1201_v50 = vmul.f32 %v8606_v12, %v8605_v53  ;;  %v1202_v49 = vmul.f32 %v8607_v62, %v8605_v53  ;;  %v8619_v12 = vld [vmem:[#allocation53_spill] sm:$0xff] }
 0x120   : >> { %v1203_v37 = vadd.f32 %v1189_v30, %v1175_v58  ;;  %v1204_v9 = vadd.f32 %v1190_v45, %v1176_v3  ;;  %v1205_v40 = vadd.f32 %v1191_v32, %v1177_v11  ;;  %v1206_v14 = vadd.f32 %v1192_v39, %v1178_v34  ;;  %v8608_v11 = vld [vmem:[#allocation43_spill] sm:$0xff]  ;;  %v8617_v32 = vld [vmem:[#allocation52_spill] sm:$0xff] }
 0x121   : >> { %v1207_v44 = vadd.f32 %v1193_v28, %v1179_v43  ;;  %v1208_v60 = vadd.f32 %v1194_v36, %v1180_v22  ;;  %v1209_v41 = vadd.f32 %v1195_v35, %v1181_v52  ;;  %v1210_v56 = vadd.f32 %v1196_v25, %v1182_v54  ;;  %v8609_v43 = vld [vmem:[#allocation44_spill] sm:$0xff]  ;;  %v8610_v52 = vld [vmem:[#allocation45_spill] sm:$0xff]  ;;  %v8616_v30 = vld [vmem:[#allocation51_spill] sm:$0xff] }
 0x122   : >> { %v1211_v38 = vadd.f32 %v1197_v18, %v1183_v1  ;;  %v1212_v46 = vadd.f32 %v1198_v47, %v1184_v48  ;;  %v1213_v20 = vadd.f32 %v1199_v6, %v1185_v19  ;;  %v1214_v23 = vadd.f32 %v1200_v63, %v1186_v26  ;;  %v8618_v63 = vld [vmem:[#allocation86_spill] sm:$0xff] }
 0x123   : >> { %v1215_v61 = vadd.f32 %v1201_v50, %v1187_v5  ;;  %v1216_v2 = vadd.f32 %v1202_v49, %v1188_v15  ;;  %v1217_v16 = vmul.f32 %v6365_v55, %v8379_v0  ;;  %v1218_v53 = vmul.f32 %v6368_v59, %v8379_v0  ;;  %v8611_v55 = vld [vmem:[#allocation46_spill] sm:$0xff]  ;;  %v8612_v59 = vld [vmem:[#allocation47_spill] sm:$0xff] }
 0x124   : >> { %v1219_v58 = vmul.f32 %v6371_v57, %v8379_v0  ;;  %v1220_v3 = vmul.f32 %v6374_v27, %v8379_v0  ;;  %v1221_v34 = vmul.f32 %v8608_v11, %v8379_v0  ;;  %v1222_v22 = vmul.f32 %v8609_v43, %v8379_v0  ;;  %v8613_v57 = vld [vmem:[#allocation48_spill] sm:$0xff]  ;;  %v8614_v27 = vld [vmem:[#allocation49_spill] sm:$0xff]  ;;  %v8615_v5 = vld [vmem:[#allocation50_spill] sm:$0xff] }
 0x125   : >> { %v1223_v54 = vmul.f32 %v8610_v52, %v8379_v0  ;;  %v1224_v1 = vmul.f32 %v8611_v55, %v8379_v0  ;;  %v1225_v48 = vmul.f32 %v8612_v59, %v8379_v0  ;;  %v1226_v19 = vmul.f32 %v8613_v57, %v8379_v0  ;;  %v8621_v49 = vld [vmem:[#allocation55_spill] sm:$0xff]  ;;  %v3876_v52 = vld [vmem:[%s5119_s2 + $0x451] sm:$0xff]  ;;  %v3878_v57 = vld [vmem:[%s5119_s2 + $0x469] sm:$0xff] }
 0x126   : >> { %v1227_v26 = vmul.f32 %v8614_v27, %v8379_v0  ;;  %v1228_v15 = vmul.f32 %v8615_v5, %v8379_v0  ;;  %v1229_v45 = vmul.f32 %v8616_v30, %v8379_v0  ;;  %v1230_v39 = vmul.f32 %v8617_v32, %v8379_v0  ;;  %v8620_v0 = vld [vmem:[#allocation54_spill] sm:$0xff]  ;;  %v3880_v27 = vld [vmem:[%s5119_s2 + $0x481] sm:$0xff]  ;;  %v3881_v30 = vld [vmem:[%s5119_s2 + $0x489] sm:$0xff] }
 0x127   : >> { %v1231_v28 = vadd.f32 %v1217_v16, %v1203_v37  ;;  %v1232_v13 = vadd.f32 %v1218_v53, %v1204_v9  ;;  %v1233_v36 = vadd.f32 %v1219_v58, %v1205_v40  ;;  %v1234_v10 = vadd.f32 %v1220_v3, %v1206_v14  ;;  %v8622_v9 = vld [vmem:[#allocation14_spill] sm:$0xff]  ;;  %v8623_v14 = vld [vmem:[#allocation56_spill] sm:$0xff]  ;;  %v8630_v3 = vld [vmem:[#allocation63_spill] sm:$0xff] }
 0x128   : >> { %v1235_v35 = vadd.f32 %v1221_v34, %v1207_v44  ;;  %v1236_v51 = vadd.f32 %v1222_v22, %v1208_v60  ;;  %v1237_v25 = vadd.f32 %v1223_v54, %v1209_v41  ;;  %v1238_v8 = vadd.f32 %v1224_v1, %v1210_v56  ;;  %v8624_v60 = vld [vmem:[#allocation57_spill] sm:$0xff]  ;;  %v8625_v56 = vld [vmem:[#allocation58_spill] sm:$0xff]  ;;  %v8631_v34 = vld [vmem:[#allocation64_spill] sm:$0xff] }
 0x129   : >> { %v1239_v18 = vadd.f32 %v1225_v48, %v1211_v38  ;;  %v1240_v24 = vadd.f32 %v1226_v19, %v1212_v46  ;;  %v1241_v47 = vadd.f32 %v1227_v26, %v1213_v20  ;;  %v1242_v4 = vadd.f32 %v1228_v15, %v1214_v23  ;;  %v8626_v46 = vld [vmem:[#allocation59_spill] sm:$0xff]  ;;  %v8627_v23 = vld [vmem:[#allocation60_spill] sm:$0xff]  ;;  %v8629_v53 = vld [vmem:[#allocation62_spill] sm:$0xff] }
 0x12a   : >> { %v1243_v6 = vadd.f32 %v1229_v45, %v1215_v61  ;;  %v1244_v7 = vadd.f32 %v1230_v39, %v1216_v2  ;;  %v1245_v50 = vmul.f32 %v8619_v12, %v8618_v63  ;;  %v1246_v62 = vmul.f32 %v8620_v0, %v8618_v63  ;;  %v8628_v2 = vld [vmem:[#allocation61_spill] sm:$0xff]  ;;  %v3877_v54 = vld [vmem:[%s5119_s2 + $0x459] sm:$0xff]  ;;  %v3883_v32 = vld [vmem:[%s5119_s2 + $0x4a1] sm:$0xff] }
 0x12b   : >> { %v1247_v37 = vmul.f32 %v8621_v49, %v8618_v63  ;;  %v1248_v40 = vmul.f32 %v8622_v9, %v8618_v63  ;;  %v1249_v44 = vmul.f32 %v8623_v14, %v8618_v63  ;;  %v1250_v41 = vmul.f32 %v8624_v60, %v8618_v63  ;;  %v3879_v19 = vld [vmem:[%s5119_s2 + $0x471] sm:$0xff]  ;;  %v3882_v45 = vld [vmem:[%s5119_s2 + $0x499] sm:$0xff]  ;;  %v3886_v12 = vld [vmem:[%s5119_s2 + $0x4c9] sm:$0xff] }
 0x12c   : >> { %v1251_v38 = vmul.f32 %v8625_v56, %v8618_v63  ;;  %v1252_v20 = vmul.f32 %v8626_v46, %v8618_v63  ;;  %v1253_v61 = vmul.f32 %v8627_v23, %v8618_v63  ;;  %v1254_v16 = vmul.f32 %v8628_v2, %v8618_v63  ;;  %v3887_v0 = vld [vmem:[%s5119_s2 + $0x4d1] sm:$0xff] }
 0x12d   : >> { %v1255_v58 = vmul.f32 %v8629_v53, %v8618_v63  ;;  %v1256_v11 = vmul.f32 %v8630_v3, %v8618_v63  ;;  %v1257_v43 = vmul.f32 %v8631_v34, %v8618_v63  ;;  %v1258_v22 = vmul.f32 %v6474_v21, %v8618_v63  ;;  %v3885_v63 = vld [vmem:[%s5119_s2 + $0x4b9] sm:$0xff] }
 0x12e   : >> { %v1259_v55 = vadd.f32 %v1245_v50, %v1231_v28  ;;  %v1260_v1 = vadd.f32 %v1246_v62, %v1232_v13  ;;  %v1261_v59 = vadd.f32 %v1247_v37, %v1233_v36  ;;  %v1262_v48 = vadd.f32 %v1248_v40, %v1234_v10  ;;  %v3884_v10 = vld [vmem:[%s5119_s2 + $0x4b1] sm:$0xff]  ;;  %v3889_v62 = vld [vmem:[%s5119_s2 + $0x4e9] sm:$0xff] }
 0x12f   : >> { %v1263_v26 = vadd.f32 %v1249_v44, %v1235_v35  ;;  %v1264_v5 = vadd.f32 %v1250_v41, %v1236_v51  ;;  %v1265_v21 = vadd.f32 %v1251_v38, %v1237_v25  ;;  %v1266_v15 = vadd.f32 %v1252_v20, %v1238_v8  ;;  %v3888_v51 = vld [vmem:[%s5119_s2 + $0x4e1] sm:$0xff]  ;;  %s6865_s2 = sadd.s32 %s4635_s24, %s8199_s10  ;;  %s1426_s24 = sadd.s32 %s4641_s14, %s8199_s10 }
 0x130   : >> { %v1267_v39 = vadd.f32 %v1253_v61, %v1239_v18  ;;  %v1268_v28 = vadd.f32 %v1254_v16, %v1240_v24  ;;  %v1269_v13 = vadd.f32 %v1255_v58, %v1241_v47  ;;  %v1270_v36 = vadd.f32 %v1256_v11, %v1242_v4  ;;  %v8632_v25 = vld [vmem:[#allocation24_spill] sm:$0xff]  ;;  %s1400_s12 = sshra.s32 %s6865_s2, 3  ;;  %s1427_s11 = sshra.s32 %s1426_s24, 3 }
 0x131   : >> { %v1271_v50 = vadd.f32 %v1257_v43, %v1243_v6  ;;  %v1272_v35 = vadd.f32 %v1258_v22, %v1244_v7  ;;  %v1287_v49 = vmul.f32 %v3876_v52, %v8632_v25  ;;  %v1288_v8 = vmul.f32 %v3877_v54, %v8632_v25  ;;  %v8634_v43 = vld [vmem:[#allocation25_spill] sm:$0xff]  ;;  %s3898_s2 = sshll.u32 %s1409_s29, 2  ;;  %s3900_s14 = sshll.u32 %s1418_s8, 2 }
 0x132   : >> { %v1289_v37 = vmul.f32 %v3878_v57, %v8632_v25  ;;  %v1290_v18 = vmul.f32 %v3879_v19, %v8632_v25  ;;  %v1291_v24 = vmul.f32 %v3880_v27, %v8632_v25  ;;  %v1292_v47 = vmul.f32 %v3881_v30, %v8632_v25  ;;  %v8638_v19 = vld [vmem:[#allocation67_spill] sm:$0xff]  ;;  %s3902_s10 = sshll.u32 %s1427_s11, 2  ;;  %s1421_s24 = scalar_lea.vmem [#allocation2], %s3900_s14 }
 0x133   : >> { %v1293_v4 = vmul.f32 %v3882_v45, %v8632_v25  ;;  %v1294_v6 = vmul.f32 %v3883_v32, %v8632_v25  ;;  %v1295_v7 = vmul.f32 %v3884_v10, %v8632_v25  ;;  %v1296_v9 = vmul.f32 %v3885_v63, %v8632_v25  ;;  %v8645_v45 = vld [vmem:[#allocation75_spill] sm:$0xff]  ;;  %v8648_v10 = vld [vmem:[#allocation78_spill] sm:$0xff]  ;;  %s1430_s29 = scalar_lea.vmem [#allocation2], %s3902_s10 }
 0x134   : >> { %v1297_v40 = vmul.f32 %v3886_v12, %v8632_v25  ;;  %v1298_v14 = vmul.f32 %v3887_v0, %v8632_v25  ;;  %v1299_v44 = vmul.f32 %v3888_v51, %v8632_v25  ;;  %v1300_v60 = vmul.f32 %v3889_v62, %v8632_v25 }
 0x135   : >> { %v1301_v41 = vadd.f32 %v1287_v49, %v1259_v55  ;;  %v1302_v56 = vadd.f32 %v1288_v8, %v1260_v1  ;;  %v1303_v38 = vadd.f32 %v1289_v37, %v1261_v59  ;;  %v1304_v46 = vadd.f32 %v1290_v18, %v1262_v48  ;;  %v8636_v1 = vld [vmem:[#allocation65_spill] sm:$0xff]  ;;  %v8637_v48 = vld [vmem:[#allocation66_spill] sm:$0xff] }
 0x136   : >> { %v1305_v20 = vadd.f32 %v1291_v24, %v1263_v26  ;;  %v1306_v23 = vadd.f32 %v1292_v47, %v1264_v5  ;;  %v1307_v61 = vadd.f32 %v1293_v4, %v1265_v21  ;;  %v1308_v2 = vadd.f32 %v1294_v6, %v1266_v15  ;;  %v8639_v26 = vld [vmem:[#allocation68_spill] sm:$0xff]  ;;  %v8643_v5 = vld [vmem:[#allocation73_spill] sm:$0xff]  ;;  %v8644_v15 = vld [vmem:[#allocation74_spill] sm:$0xff] }
 0x137   : >> { %v1309_v16 = vadd.f32 %v1295_v7, %v1267_v39  ;;  %v1310_v53 = vadd.f32 %v1296_v9, %v1268_v28  ;;  %v1311_v58 = vadd.f32 %v1297_v40, %v1269_v13  ;;  %v1312_v3 = vadd.f32 %v1298_v14, %v1270_v36  ;;  %v8646_v39 = vld [vmem:[#allocation76_spill] sm:$0xff]  ;;  %v8647_v13 = vld [vmem:[#allocation77_spill] sm:$0xff] }
 0x138   : >> { %v8633_v11 = vmax.f32 %v6062_v33, %v6068_v31  ;;  %v8635_v22 = vmax.f32 %v6066_v29, %v8634_v43  ;;  %v1313_v54 = vadd.f32 %v1299_v44, %v1271_v50  ;;  %v1314_v55 = vadd.f32 %v1300_v60, %v1272_v35  ;;  %v8642_v31 = vld [vmem:[#allocation72_spill] sm:$0xff] }
 0x139   : >> { %v1315_v59 = vmax.f32 %v8636_v1, %v1301_v41  ;;  %v1316_v57 = vmax.f32 %v8637_v48, %v1302_v56  ;;  %v1317_v27 = vmax.f32 %v8638_v19, %v1303_v38  ;;  %v1318_v33 = vmax.f32 %v8639_v26, %v1304_v46 }
 0x13a   : >> { %v1061_v34 = vmax.f32 %v8633_v11, %v6508_v42  ;;  %v1062_v52 = vmax.f32 %v8635_v22, %v6510_v17  ;;  %v8641_v42 = vld [vmem:[#allocation15_spill] sm:$0xff]  ;;  %v1320_v17 = vmax.f32 %v8642_v31, %v1306_v23  ;;  %v1321_v21 = vmax.f32 %v8643_v5, %v1307_v61 }
 0x13b   : >> { %v1319_v29 = vmax.f32 %v8641_v42, %v1305_v20  ;;  %v1322_v30 = vmax.f32 %v8644_v15, %v1308_v2  ;;  %v1323_v32 = vmax.f32 %v8645_v45, %v1309_v16  ;;  %v1324_v28 = vmax.f32 %v8646_v39, %v1310_v53 }
 0x13c   : >> { %v1325_v36 = vmax.f32 %v8647_v13, %v1311_v58  ;;  %v1326_v63 = vmax.f32 %v8648_v10, %v1312_v3  ;;  %v1327_v12 = vmax.f32 %v1061_v34, %v1313_v54  ;;  %v1328_v50 = vmax.f32 %v1062_v52, %v1314_v55 }
 0x13d   : >> { %v1329_v35 = vstv %s8640_s1  ;;  %s3896_s1 = sshll.u32 %s1400_s12, 2  ;;  %s1412_s12 = scalar_lea.vmem [#allocation2], %s3898_s2 }
 0x13e   : >> { %v1330_v0 = vadd.f32 %v1329_v35, %v1315_v59  ;;  %v1331_v51 = vadd.f32 %v1329_v35, %v1316_v57  ;;  %v1332_v62 = vadd.f32 %v1329_v35, %v1317_v27  ;;  %v1333_v25 = vadd.f32 %v1329_v35, %v1318_v33  ;;  %s1403_s22 = scalar_lea.vmem [#allocation2], %s3896_s1 }
 0x13f   : >> { %v1334_v49 = vadd.f32 %v1329_v35, %v1319_v29  ;;  %v1335_v8 = vadd.f32 %v1329_v35, %v1320_v17  ;;  %v1336_v37 = vadd.f32 %v1329_v35, %v1321_v21  ;;  %v1337_v18 = vadd.f32 %v1329_v35, %v1322_v30 }
 0x140   : >> { %v1338_v24 = vadd.f32 %v1329_v35, %v1323_v32  ;;  %v1339_v47 = vadd.f32 %v1329_v35, %v1324_v28  ;;  %v1340_v4 = vadd.f32 %v1329_v35, %v1325_v36  ;;  %v1341_v6 = vadd.f32 %v1329_v35, %v1326_v63 }
 0x141   : >> { %v1342_v7 = vadd.f32 %v1329_v35, %v1327_v12  ;;  %v1343_v9 = vadd.f32 %v1329_v35, %v1328_v50  ;;  %v1344_v40 = vmax.f32 %v1330_v0, 0.0  ;;  %v1345_v14 = vmax.f32 %v1331_v51, 0.0 }
 0x142   : >> { %v1346_v44 = vmax.f32 %v1332_v62, 0.0  ;;  %v1347_v60 = vmax.f32 %v1333_v25, 0.0  ;;  %v1348_v41 = vmax.f32 %v1334_v49, 0.0  ;;  %v1349_v56 = vmax.f32 %v1335_v8, 0.0 }
 0x143   : >> { %v1350_v38 = vmax.f32 %v1336_v37, 0.0  ;;  %v1351_v46 = vmax.f32 %v1337_v18, 0.0  ;;  %v1352_v20 = vmax.f32 %v1338_v24, 0.0  ;;  %v1353_v23 = vmax.f32 %v1339_v47, 0.0 }
 0x144   : >> { %v1354_v61 = vmax.f32 %v1340_v4, 0.0  ;;  %v1355_v2 = vmax.f32 %v1341_v6, 0.0  ;;  %v1356_v16 = vmax.f32 %v1342_v7, 0.0  ;;  %v1357_v53 = vmax.f32 %v1343_v9, 0.0 }
 0x145   : >> { %v4823_v58 = vpack.c.bf16 %v1345_v14, %v1344_v40  ;;  %v4828_v3 = vpack.c.bf16 %v1347_v60, %v1346_v44  ;;  %v4833_v11 = vpack.c.bf16 %v1349_v56, %v1348_v41  ;;  %v4838_v34 = vpack.c.bf16 %v1351_v46, %v1350_v38 }
 0x146   : >> { %v4843_v43 = vpack.c.bf16 %v1353_v23, %v1352_v20  ;;  %v4848_v22 = vpack.c.bf16 %v1355_v2, %v1354_v61  ;;  %v4853_v52 = vpack.c.bf16 %v1357_v53, %v1356_v16 }
 0x147   : >> { %4824 = vst [vmem:[%s1377_s20] sm:$0xff] %v4823_v58  }
 0x148   : >> { %4829 = vst [vmem:[%s1385_s13] sm:$0xff] %v4828_v3  }
 0x149   : >> { %4834 = vst [vmem:[%s1394_s0] sm:$0xff] %v4833_v11   ;;  %82 = sbr.rel (!%p80_p0) target bundleno = 28 (0x1c), region = 85 }
 0x14a   : >> { %4839 = vst [vmem:[%s1403_s22] sm:$0xff] %v4838_v34  }
 0x14b   : >> { %4844 = vst [vmem:[%s1412_s12] sm:$0xff] %v4843_v43  }
 0x14c   : >> { %4849 = vst [vmem:[%s1421_s24] sm:$0xff] %v4848_v22  }
 0x14d   : >> { %4854 = vst [vmem:[%s1430_s29] sm:$0xff] %v4853_v52  }
 0x14e   :  { %56 = sbr.rel (!%p54_p1) target bundleno = 13 (0xd), region = 96  ;;  %v1713_v54 = vld [vmem:[%s7939_s4 + $0x78] sm:$0xff] (%p54_p1)  ;;  %v5033_v1 = vmov (%p54_p1), 0   ;;  %v1711_v48 = vld [vmem:[%s7939_s4 + $0x68] sm:$0xff] (%p54_p1)  ;;  %v1712_v27 = vld [vmem:[%s7939_s4 + $0x70] sm:$0xff] (%p54_p1)  ;;  %vm2839_vm0 = vcmask (%p54_p1), 785408  }
 0x14f   :  { %4984 = vset.pattern.permute.xlu0 (%p54_p1), %v5033_v1  ;;  %4985 = vset.pattern.permute.xlu1 (%p54_p1), %v5033_v1  ;;  %v1709_v57 = vld [vmem:[%s7939_s4 + $0x58] sm:$0xff] (%p54_p1)  ;;  %v1710_v26 = vld [vmem:[%s7939_s4 + $0x60] sm:$0xff] (%p54_p1)  ;;  %v1708_v42 = vld [vmem:[%s7939_s4 + $0x50] sm:$0xff] (%p54_p1)  ;;  %vm3577_vm1 = vcmask (%p54_p1), 588800  }
 0x150   :  { %1800 = vperm.xlu0 (%p54_p1), %4984, %v1713_v54   ;;  %1790 = vperm.xlu1 (%p54_p1), %4985, %v1711_v48   ;;  %v1722_v31 = vld [vmem:[%s7939_s4 + $0xc0] sm:$0xff] (%p54_p1)  ;;  %v1707_v17 = vld [vmem:[%s7939_s4 + $0x48] sm:$0xff] (%p54_p1)  ;;  %v1721_v21 = vld [vmem:[%s7939_s4 + $0xb8] sm:$0xff] (%p54_p1) }
 0x151   :  { %4986 = vset.pattern.permute.xlu2 (%p54_p1), %v5033_v1  ;;  %v1706_v30 = vld [vmem:[%s7939_s4 + $0x40] sm:$0xff] (%p54_p1)  ;;  %v1720_v39 = vld [vmem:[%s7939_s4 + $0xb0] sm:$0xff] (%p54_p1)  ;;  %v1705_v12 = vld [vmem:[%s7939_s4 + $0x38] sm:$0xff] (%p54_p1) }
 0x152   :  { %1780 = vperm.xlu2 (%p54_p1), %4986, %v1709_v57   ;;  %v3905_v32 = vld [vmem:[%s7938_s3] sm:$0xf] (%p54_p1)  ;;  %v4646_v28 = vld [vmem:[%s7938_s3 + $0x20] sm:$0xf0] (%p54_p1)  ;;  %v4121_v10 = vld [vmem:[%s7938_s3 + $0x1b0] sm:$0xf] (%p54_p1) }
 0x153   :  { %v4049_v13 = vld [vmem:[%s7938_s3 + $0x120] sm:$0xf]  ;;  %v4682_v36 = vld [vmem:[%s7938_s3 + $0x140] sm:$0xf0]  ;;  %v4700_v63 = vld [vmem:[%s7938_s3 + $0x1d0] sm:$0xf0]  ;;  %v3906_v51 = vor.u32 %v4646_v28, %v3905_v32 }
 0x154   :  { %v4757_v55 = vld [vmem:[#allocation2 + $0x38] sm:$0xff]  ;;  %v4756_v59 = vld [vmem:[#allocation2 + $0x30] sm:$0xff]  ;;  %v4755_v19 = vld [vmem:[#allocation2 + $0x28] sm:$0xff]  ;;  %v4050_v25 = vor.u32 %v4682_v36, %v4049_v13  ;;  %v4122_v8 = vor.u32 %v4700_v63, %v4121_v10 }
 0x155   :  { %2879 = vmatpush.bf16.msra.mxu0 %v4757_v55  ;;  %4861 = vmatpush.bf16.msra.mxu1 %v4757_v55  ;;  %v4754_v33 = vld [vmem:[#allocation2 + $0x20] sm:$0xff]  ;;  %v4753_v29 = vld [vmem:[#allocation2 + $0x18] sm:$0xff]  ;;  %v4752_v5 = vld [vmem:[#allocation2 + $0x10] sm:$0xff] }
 0x156   :  { %4862 = vmatpush.bf16.msra.mxu2 %v4757_v55  ;;  %4863 = vmatpush.bf16.msra.mxu3 %v4757_v55  ;;  %v4751_v15 = vld [vmem:[#allocation2 + $0x8] sm:$0xff]  ;;  %v4750_v45 = vld [vmem:[#allocation2] sm:$0xff]  ;;  %v4765_v0 = vld [vmem:[#allocation2 + $0x78] sm:$0xff] }
 0x157   :  { %v4229_v50 = vld [vmem:[%s7938_s3 + $0x288] sm:$0xf]  ;;  %v4727_v35 = vld [vmem:[%s7938_s3 + $0x2a8] sm:$0xf0]  ;;  %v4773_v62 = vld [vmem:[#allocation2 + $0xb8] sm:$0xff] }
 0x158   :  { %1795 = vperm.xlu0 %4984, %v1712_v27   ;;  %1785 = vperm.xlu1 %4985, %v1710_v26   ;;  %v1719_v49 = vld [vmem:[%s7939_s4 + $0xa8] sm:$0xff]  ;;  %v4230_v37 = vor.u32 %v4727_v35, %v4229_v50  ;;  %v4764_v18 = vld [vmem:[#allocation2 + $0x70] sm:$0xff]  ;;  %v1718_v4 = vld [vmem:[%s7939_s4 + $0xa0] sm:$0xff] }
 0x159   :  { %2880 = vmatpush.bf16.msra.mxu0 %v4756_v59  ;;  %4864 = vmatpush.bf16.msra.mxu1 %v4756_v59  ;;  %v1704_v24 = vld [vmem:[%s7939_s4 + $0x30] sm:$0xff]  ;;  %v4781_v6 = vld [vmem:[#allocation2 + $0xf8] sm:$0xff]  ;;  %v4763_v9 = vld [vmem:[#allocation2 + $0x68] sm:$0xff] }
 0x15a   :  { %4865 = vmatpush.bf16.msra.mxu2 %v4756_v59  ;;  %4866 = vmatpush.bf16.msra.mxu3 %v4756_v59  ;;  %v4772_v47 = vld [vmem:[#allocation2 + $0xb0] sm:$0xff]  ;;  %v4789_v7 = vld [vmem:[#allocation2 + $0x138] sm:$0xff]  ;;  %v4771_v40 = vld [vmem:[#allocation2 + $0xa8] sm:$0xff] }
 0x15b   :  { %1775 = vperm.xlu2 %4986, %v1708_v42   ;;  %v4780_v14 = vld [vmem:[#allocation2 + $0xf0] sm:$0xff]  ;;  %v1703_v60 = vld [vmem:[%s7939_s4 + $0x28] sm:$0xff]  ;;  %v4762_v41 = vld [vmem:[#allocation2 + $0x60] sm:$0xff] }
 0x15c   :  { %v4788_v44 = vld [vmem:[#allocation2 + $0x130] sm:$0xff]  ;;  %v3941_v56 = vld [vmem:[%s7938_s3 + $0x48] sm:$0xf]  ;;  %v4655_v38 = vld [vmem:[%s7938_s3 + $0x68] sm:$0xf0] }
 0x15d   :  { %2881 = vmatpush.bf16.msra.mxu0 %v4755_v19  ;;  %4867 = vmatpush.bf16.msra.mxu1 %v4755_v19  ;;  %v1717_v46 = vld [vmem:[%s7939_s4 + $0x98] sm:$0xff]  ;;  %v4770_v20 = vld [vmem:[#allocation2 + $0xa0] sm:$0xff]  ;;  %v4779_v23 = vld [vmem:[#allocation2 + $0xe8] sm:$0xff]  ;;  %v3942_v22 = vor.u32 %v4655_v38, %v3941_v56 }
 0x15e   :  { %4868 = vmatpush.bf16.msra.mxu2 %v4755_v19  ;;  %4869 = vmatpush.bf16.msra.mxu3 %v4755_v19  ;;  %v4085_v61 = vld [vmem:[%s7938_s3 + $0x168] sm:$0xf]  ;;  %v4691_v2 = vld [vmem:[%s7938_s3 + $0x188] sm:$0xf0]  ;;  %v4157_v53 = vld [vmem:[%s7938_s3 + $0x1f8] sm:$0xf] }
 0x15f   :  { %v4787_v16 = vld [vmem:[#allocation2 + $0x128] sm:$0xff]  ;;  %v4709_v58 = vld [vmem:[%s7938_s3 + $0x218] sm:$0xf0]  ;;  %v1702_v3 = vld [vmem:[%s7939_s4 + $0x20] sm:$0xff]  ;;  %v4086_v54 = vor.u32 %v4691_v2, %v4085_v61 }
 0x160   :  { %1845 = vperm.xlu0 %4984, %v1722_v31   ;;  %1770 = vperm.xlu1 %4985, %v1707_v17   ;;  %v4265_v11 = vld [vmem:[%s7938_s3 + $0x2d0] sm:$0xf]  ;;  %v4736_v34 = vld [vmem:[%s7938_s3 + $0x2f0] sm:$0xf0]  ;;  %v4761_v43 = vld [vmem:[#allocation2 + $0x58] sm:$0xff]  ;;  %v4158_v1 = vor.u32 %v4709_v58, %v4157_v53 }
 0x161   :  { %2882 = vmatpush.bf16.msra.mxu0 %v4754_v33  ;;  %4870 = vmatpush.bf16.msra.mxu1 %v4754_v33  ;;  %v4769_v52 = vld [vmem:[#allocation2 + $0x98] sm:$0xff]  ;;  %v1716_v55 = vld [vmem:[%s7939_s4 + $0x90] sm:$0xff]  ;;  %v4266_v59 = vor.u32 %v4736_v34, %v4265_v11  ;;  %v4778_v27 = vld [vmem:[#allocation2 + $0xe0] sm:$0xff] }
 0x162   :  { %4871 = vmatpush.bf16.msra.mxu2 %v4754_v33  ;;  %4872 = vmatpush.bf16.msra.mxu3 %v4754_v33  ;;  %v4760_v48 = vld [vmem:[#allocation2 + $0x50] sm:$0xff]  ;;  %v1701_v57 = vld [vmem:[%s7939_s4 + $0x18] sm:$0xff]  ;;  %v4786_v26 = vld [vmem:[#allocation2 + $0x120] sm:$0xff] }
 0x163   :  { %1840 = vperm.xlu2 %4986, %v1721_v21   ;;  %v4768_v19 = vld [vmem:[#allocation2 + $0x90] sm:$0xff]  ;;  %v1715_v33 = vld [vmem:[%s7939_s4 + $0x88] sm:$0xff]  ;;  %v4777_v31 = vld [vmem:[#allocation2 + $0xd8] sm:$0xff] }
 0x164   :  { %v4759_v42 = vld [vmem:[#allocation2 + $0x48] sm:$0xff]  ;;  %v4785_v17 = vld [vmem:[#allocation2 + $0x118] sm:$0xff]  ;;  %v4758_v21 = vld [vmem:[#allocation2 + $0x40] sm:$0xff] }
 0x165   :  { %2883 = vmatpush.bf16.msra.mxu0 %v4753_v29  ;;  %4873 = vmatpush.bf16.msra.mxu1 %v4753_v29  ;;  %v1714_v32 = vld [vmem:[%s7939_s4 + $0x80] sm:$0xff]  ;;  %v4784_v13 = vld [vmem:[#allocation2 + $0x110] sm:$0xff]  ;;  %v3907_v10 = vld [vmem:[%s7938_s3 + $0x24] sm:$0xf0] }
 0x166   :  { %4874 = vmatpush.bf16.msra.mxu2 %v4753_v29  ;;  %4875 = vmatpush.bf16.msra.mxu3 %v4753_v29  ;;  %v4767_v29 = vld [vmem:[#allocation2 + $0x88] sm:$0xff]  ;;  %v4193_v28 = vld [vmem:[%s7938_s3 + $0x240] sm:$0xf]  ;;  %v4642_v36 = vld [vmem:[%s7938_s3 + $0x4] sm:$0xf] }
 0x167   :  { %v1699_v63 = vld [vmem:[%s7939_s4 + $0x8] sm:$0xff]  ;;  %v4301_v50 = vld [vmem:[%s7938_s3 + $0x318] sm:$0xf]  ;;  %v4745_v35 = vld [vmem:[%s7938_s3 + $0x338] sm:$0xf0] }
 0x168   :  { %1765 = vperm.xlu0 %4984, %v1706_v30   ;;  %1835 = vperm.xlu1 %4985, %v1720_v39   ;;  %v4766_v30 = vld [vmem:[#allocation2 + $0x80] sm:$0xff]  ;;  %v4664_v39 = vld [vmem:[%s7938_s3 + $0xb0] sm:$0xf0]  ;;  %v3979_v61 = vld [vmem:[%s7938_s3 + $0xb4] sm:$0xf0] }
 0x169   :  { %2884 = vmatpush.bf16.msra.mxu0 %v4752_v5  ;;  %4876 = vmatpush.bf16.msra.mxu1 %v4752_v5  ;;  %v3949_v2 = vld [vmem:[%s7938_s3 + $0x50] sm:$0xf]  ;;  %v4643_v53 = vld [vmem:[%s7938_s3 + $0xc] sm:$0xf] }
 0x16a   :  { %4877 = vmatpush.bf16.msra.mxu2 %v4752_v5  ;;  %4878 = vmatpush.bf16.msra.mxu3 %v4752_v5  ;;  %v1700_v5 = vld [vmem:[%s7939_s4 + $0x10] sm:$0xff] }
 0x16b   :  { %1760 = vperm.xlu2 %4986, %v1705_v12   ;;  %v4718_v12 = vld [vmem:[%s7938_s3 + $0x260] sm:$0xf0]  ;;  %v3915_v58 = vld [vmem:[%s7938_s3 + $0x2c] sm:$0xf0] }
 0x16d   :  { %2885 = vmatpush.bf16.msra.mxu0 %v4751_v15  ;;  %4879 = vmatpush.bf16.msra.mxu1 %v4751_v15 }
 0x16e   :  { %4880 = vmatpush.bf16.msra.mxu2 %v4751_v15  ;;  %4881 = vmatpush.bf16.msra.mxu3 %v4751_v15  ;;  %v3977_v15 = vld [vmem:[%s7938_s3 + $0x90] sm:$0xf] }
 0x170   :  { %1830 = vperm.xlu0 %4984, %v1719_v49   ;;  %1755 = vperm.xlu1 %4985, %v1704_v24   ;;  %v4194_v49 = vor.u32 %v4718_v12, %v4193_v28  ;;  %v4782_v24 = vld [vmem:[#allocation2 + $0x100] sm:$0xff] }
 0x171   :  { %2886 = vmatpush.bf16.msra.mxu0 %v4750_v45  ;;  %4882 = vmatpush.bf16.msra.mxu1 %v4750_v45  ;;  %v3987_v28 = vld [vmem:[%s7938_s3 + $0xbc] sm:$0xf0] }
 0x172   :  { %4883 = vmatpush.bf16.msra.mxu2 %v4750_v45  ;;  %4884 = vmatpush.bf16.msra.mxu3 %v4750_v45  ;;  %v4776_v45 = vld [vmem:[#allocation2 + $0xd0] sm:$0xff] }
 0x173   :  { %1825 = vperm.xlu2 %4986, %v1718_v4   ;;  %v4013_v4 = vld [vmem:[%s7938_s3 + $0xd8] sm:$0xf] }
 0x174   :  { %2887 = vmatmul.bf16.vlgmr.msra.gmra.mxu0 %v3906_v51  ;;  %2907 = vmatmul.bf16.vlgmr.msra.gmra.mxu1 %v4050_v25  ;;  %v4775_v51 = vld [vmem:[#allocation2 + $0xc8] sm:$0xff]  ;;  %v1698_v25 = vld [vmem:[%s7939_s4] sm:$0xff] }
 0x175   :  { %2952 = vmatpush.bf16.msrb.mxu1 %v4765_v0  ;;  %2917 = vmatmul.bf16.vlgmr.msra.gmra.mxu2 %v4122_v8  ;;  %v3978_v0 = vor.u32 %v4664_v39, %v3977_v15  ;;  %v4302_v8 = vor.u32 %v4745_v35, %v4301_v50  ;;  %v4051_v15 = vld [vmem:[%s7938_s3 + $0x144] sm:$0xf0]  ;;  %v4661_v39 = vld [vmem:[%s7938_s3 + $0x9c] sm:$0xf] }
 0x176   :  { %3025 = vmatpush.bf16.msrb.mxu2 %v4773_v62  ;;  %2932 = vmatmul.bf16.vlgmr.msra.gmra.mxu3 %v4230_v37  ;;  %v3910_v62 = vor.u32 %v4642_v36, %v3907_v10  ;;  %v4783_v37 = vld [vmem:[#allocation2 + $0x108] sm:$0xff] }
 0x177   :  { %3098 = vmatpush.bf16.msrb.mxu3 %v4781_v6  ;;  %3171 = vmatpush.bf16.msrb.mxu0 %v4789_v7  ;;  %v4673_v6 = vld [vmem:[%s7938_s3 + $0xf8] sm:$0xf0] }
 0x178   :  { %1750 = vperm.xlu0 %4984, %v1703_v60   ;;  %1820 = vperm.xlu1 %4985, %v1717_v46   ;;  %v4014_v60 = vor.u32 %v4673_v6, %v4013_v4  ;;  %v3921_v46 = vld [vmem:[%s7938_s3 + $0x10] sm:$0xf] }
 0x179   :  { %2953 = vmatpush.bf16.msrb.mxu1 %v4764_v18  ;;  %v4774_v18 = vld [vmem:[#allocation2 + $0xc0] sm:$0xff] }
 0x17a   :  { %3026 = vmatpush.bf16.msrb.mxu2 %v4772_v47  ;;  %v7038_v47 = vld [vmem:[%s7938_s3 + $0x360] sm:$0xff] }
 0x17b   :  { %3099 = vmatpush.bf16.msrb.mxu3 %v4780_v14  ;;  %3172 = vmatpush.bf16.msrb.mxu0 %v4788_v44  ;;  %v2189_v7 = vunpack.c.l.b16 %v7038_v47  ;;  %v3913_v14 = vld [vmem:[%s7938_s3 + $0x8] sm:$0xf]  ;;  %v4647_v44 = vld [vmem:[%s7938_s3 + $0x28] sm:$0xf0] }
 0x17c   :  { %1745 = vperm.xlu2 %4986, %v1702_v3   ;;  %v3914_v38 = vor.u32 %v4647_v44, %v3913_v14 }
 0x17d   :  { %2954 = vmatpush.bf16.msrb.mxu1 %v4763_v9  ;;  %v4651_v9 = vld [vmem:[%s7938_s3 + $0x4c] sm:$0xf]  ;;  %v2306_v56 = vpack.c.b16 %v2189_v7, %v2189_v7 }
 0x17e   :  { %3027 = vmatpush.bf16.msrb.mxu2 %v4771_v40  ;;  %v3943_v40 = vld [vmem:[%s7938_s3 + $0x6c] sm:$0xf0] }
 0x17f   :  { %3100 = vmatpush.bf16.msrb.mxu3 %v4779_v23  ;;  %3173 = vmatpush.bf16.msrb.mxu0 %v4787_v16  ;;  %v4660_v23 = vld [vmem:[%s7938_s3 + $0x94] sm:$0xf] }
 0x180   :  { %1815 = vperm.xlu0 %4984, %v1716_v55   ;;  %1740 = vperm.xlu1 %4985, %v1701_v57   ;;  %v4656_v16 = vld [vmem:[%s7938_s3 + $0x70] sm:$0xf0]  ;;  %v3982_v11 = vor.u32 %v4660_v23, %v3979_v61  ;;  %v4015_v55 = vld [vmem:[%s7938_s3 + $0xfc] sm:$0xf0]  ;;  %v3951_v57 = vld [vmem:[%s7938_s3 + $0x74] sm:$0xf0] }
 0x181   :  { %2955 = vmatpush.bf16.msrb.mxu1 %v4762_v41  ;;  %v3946_v41 = vor.u32 %v4651_v9, %v3943_v40  ;;  %v3950_v34 = vor.u32 %v4656_v16, %v3949_v2  ;;  %v4093_v23 = vld [vmem:[%s7938_s3 + $0x170] sm:$0xf]  ;;  %v4692_v2 = vld [vmem:[%s7938_s3 + $0x190] sm:$0xf0]  ;;  %v4679_v16 = vld [vmem:[%s7938_s3 + $0x12c] sm:$0xf] }
 0x182   :  { %3028 = vmatpush.bf16.msrb.mxu2 %v4770_v20  ;;  %v4648_v20 = vld [vmem:[%s7938_s3 + $0x30] sm:$0xf0] }
 0x183   :  { %3101 = vmatpush.bf16.msrb.mxu3 %v4778_v27  ;;  %3174 = vmatpush.bf16.msrb.mxu0 %v4786_v26  ;;  %v3922_v3 = vor.u32 %v4648_v20, %v3921_v46  ;;  %v4696_v46 = vld [vmem:[%s7938_s3 + $0x1b4] sm:$0xf]  ;;  %v4123_v20 = vld [vmem:[%s7938_s3 + $0x1d4] sm:$0xf0] }
 0x184   :  { %2892 = vmatmul.bf16.gmra.mxu0 %v3942_v22  ;;  %2912 = vmatmul.bf16.gmra.mxu1 %v4086_v54  ;;  %v3957_v22 = vld [vmem:[%s7938_s3 + $0x58] sm:$0xf]  ;;  %v4669_v54 = vld [vmem:[%s7938_s3 + $0xdc] sm:$0xf] }
 0x185   :  { %2956 = vmatpush.bf16.msrb.mxu1 %v4761_v43  ;;  %2922 = vmatmul.bf16.gmra.mxu2 %v4158_v1  ;;  %v3918_v43 = vor.u32 %v4643_v53, %v3915_v58  ;;  %v3985_v1 = vld [vmem:[%s7938_s3 + $0x98] sm:$0xf]  ;;  %v4018_v27 = vor.u32 %v4669_v54, %v4015_v55  ;;  %v4059_v53 = vld [vmem:[%s7938_s3 + $0x14c] sm:$0xf0] }
 0x186   :  { %3029 = vmatpush.bf16.msrb.mxu2 %v4769_v52  ;;  %2937 = vmatmul.bf16.gmra.mxu3 %v4266_v59  ;;  %v4657_v52 = vld [vmem:[%s7938_s3 + $0x78] sm:$0xf0] }
 0x187   :  { %1810 = vperm.xlu2 %4986, %v1715_v33   ;;  %3102 = vmatpush.bf16.msrb.mxu3 %v4777_v31  ;;  %v4665_v59 = vld [vmem:[%s7938_s3 + $0xb8] sm:$0xf0]  ;;  %v4666_v31 = vld [vmem:[%s7938_s3 + $0xc0] sm:$0xf0] }
 0x188   :  { %1735 = vperm.xlu0 %4984, %v1700_v5   ;;  %3175 = vmatpush.bf16.msrb.mxu0 %v4785_v17  ;;  %v3986_v26 = vor.u32 %v4665_v59, %v3985_v1 }
 0x189   :  { %2957 = vmatpush.bf16.msrb.mxu1 %v4760_v48  ;;  %1805 = vperm.xlu1 %4985, %v1714_v32   ;;  %v4652_v48 = vld [vmem:[%s7938_s3 + $0x54] sm:$0xf]  ;;  %v4674_v32 = vld [vmem:[%s7938_s3 + $0x100] sm:$0xf0] }
 0x18a   :  { %3030 = vmatpush.bf16.msrb.mxu2 %v4768_v19  ;;  %v3958_v19 = vor.u32 %v4657_v52, %v3957_v22  ;;  %v3954_v33 = vor.u32 %v4652_v48, %v3951_v57  ;;  %v4062_v22 = vor.u32 %v4679_v16, %v4059_v53  ;;  %v4697_v16 = vld [vmem:[%s7938_s3 + $0x1bc] sm:$0xf]  ;;  %v4131_v53 = vld [vmem:[%s7938_s3 + $0x1dc] sm:$0xf0] }
 0x18b   :  { %3103 = vmatpush.bf16.msrb.mxu3 %v4776_v45 }
 0x18c   :  { %3176 = vmatpush.bf16.msrb.mxu0 %v4784_v13 }
 0x18d   :  { %2958 = vmatpush.bf16.msrb.mxu1 %v4759_v42 }
 0x18e   :  { %3031 = vmatpush.bf16.msrb.mxu2 %v4767_v29  ;;  %v3993_v29 = vld [vmem:[%s7938_s3 + $0xa0] sm:$0xf] }
 0x18f   :  { %1730 = vperm.xlu2 %4986, %v1699_v63   ;;  %3104 = vmatpush.bf16.msrb.mxu3 %v4775_v51  ;;  %v3994_v13 = vor.u32 %v4666_v31, %v3993_v29  ;;  %v3990_v63 = vor.u32 %v4661_v39, %v3987_v28  ;;  %v4675_v51 = vld [vmem:[%s7938_s3 + $0x108] sm:$0xf0]  ;;  %v4159_v29 = vld [vmem:[%s7938_s3 + $0x21c] sm:$0xf0]  ;;  %v4129_v31 = vld [vmem:[%s7938_s3 + $0x1b8] sm:$0xf] }
 0x190   :  { %1725 = vperm.xlu0 %4984, %v1698_v25   ;;  %3177 = vmatpush.bf16.msrb.mxu0 %v4783_v37  ;;  %v4087_v25 = vld [vmem:[%s7938_s3 + $0x18c] sm:$0xf0]  ;;  %v4683_v37 = vld [vmem:[%s7938_s3 + $0x148] sm:$0xf0] }
 0x191   :  { %2959 = vmatpush.bf16.msrb.mxu1 %v4758_v21  ;;  %v4678_v21 = vld [vmem:[%s7938_s3 + $0x124] sm:$0xf] }
 0x192   :  { %3032 = vmatpush.bf16.msrb.mxu2 %v4766_v30  ;;  %v4021_v30 = vld [vmem:[%s7938_s3 + $0xe0] sm:$0xf]  ;;  %v4054_v36 = vor.u32 %v4678_v21, %v4051_v15  ;;  %v4701_v15 = vld [vmem:[%s7938_s3 + $0x1d8] sm:$0xf0] }
 0x193   :  { %3105 = vmatpush.bf16.msrb.mxu3 %v4774_v18  ;;  %v4022_v10 = vor.u32 %v4674_v32, %v4021_v30  ;;  %v4670_v18 = vld [vmem:[%s7938_s3 + $0xe4] sm:$0xf]  ;;  %v4688_v30 = vld [vmem:[%s7938_s3 + $0x174] sm:$0xf]  ;;  %v4095_v32 = vld [vmem:[%s7938_s3 + $0x194] sm:$0xf0] }
 0x194   :  { %2897 = vmatmul.bf16.gmra.mxu0 %v3978_v0  ;;  %2960 = vmatmul.bf16.vlgmr.msrb.gmra.mxu1 %v3910_v62  ;;  %v4029_v0 = vld [vmem:[%s7938_s3 + $0xe8] sm:$0xf]  ;;  %v4687_v62 = vld [vmem:[%s7938_s3 + $0x16c] sm:$0xf] }
 0x195   :  { %2927 = vmatmul.bf16.gmra.mxu2 %v4194_v49  ;;  %3178 = vmatpush.bf16.msrb.mxu0 %v4782_v24  ;;  %v4057_v49 = vld [vmem:[%s7938_s3 + $0x128] sm:$0xf]  ;;  %v4030_v4 = vor.u32 %v4675_v51, %v4029_v0  ;;  %v4090_v6 = vor.u32 %v4687_v62, %v4087_v25  ;;  %v4130_v62 = vor.u32 %v4701_v15, %v4129_v31 }
 0x196   :  { %2942 = vmatmul.bf16.gmra.mxu3 %v4302_v8  ;;  %v4023_v24 = vld [vmem:[%s7938_s3 + $0x104] sm:$0xf0]  ;;  %v4058_v40 = vor.u32 %v4683_v37, %v4057_v49  ;;  %v4098_v25 = vor.u32 %v4688_v30, %v4095_v32 }
 0x197   :  { %v4026_v14 = vor.u32 %v4670_v18, %v4023_v24 }
 0x1a4   :  { %2902 = vmatmul.bf16.gmra.mxu0 %v4014_v60  ;;  %2965 = vmatmul.bf16.gmra.mxu1 %v3946_v41 }
 0x1a5   :  { %3033 = vmatmul.bf16.vlgmr.msrb.gmra.mxu2 %v3914_v38  ;;  %v4684_v38 = vld [vmem:[%s7938_s3 + $0x150] sm:$0xf0] }
 0x1a6   :  { %2947 = vmatmul.bf16.gmra.mxu3 %v2306_v56  ;;  %v4065_v56 = vld [vmem:[%s7938_s3 + $0x130] sm:$0xf] }
 0x1a7   :  { %v4066_v58 = vor.u32 %v4684_v38, %v4065_v56  ;;  %v4702_v56 = vld [vmem:[%s7938_s3 + $0x1e0] sm:$0xf0] }
 0x1ac   :  { %v7117_v5 = vpop.permute.xlu2 %1780 }
 0x1b4   :  { %3179 = vmatmul.bf16.vlgmr.msrb.gmra.mxu0 %v3922_v3  ;;  %2970 = vmatmul.bf16.gmra.mxu1 %v3982_v11  ;;  %v4126_v11 = vor.u32 %v4696_v46, %v4123_v20  ;;  %v4714_v46 = vld [vmem:[%s7938_s3 + $0x244] sm:$0xf]  ;;  %v4195_v20 = vld [vmem:[%s7938_s3 + $0x264] sm:$0xf0] }
 0x1b5   :  { %3038 = vmatmul.bf16.gmra.mxu2 %v3950_v34  ;;  %v7143_v35 = vpop.permute.xlu2 %1775 }
 0x1b6   :  { %3106 = vmatmul.bf16.vlgmr.msrb.gmra.mxu3 %v3918_v43  ;;  %v4094_v43 = vor.u32 %v4692_v2, %v4093_v23  ;;  %v4165_v23 = vld [vmem:[%s7938_s3 + $0x200] sm:$0xf]  ;;  %v4710_v2 = vld [vmem:[%s7938_s3 + $0x220] sm:$0xf0] }
 0x1bd   :  { %v7173_v9 = vpop.permute.xlu2 %1840 }
 0x1c2   :  { %v7107_v42 = vpop.permute.xlu0 %1800  ;;  %v7115_v17 = vpop.permute.xlu1 %1790 }
 0x1c4   :  { %3184 = vmatmul.bf16.gmra.mxu0 %v3958_v19  ;;  %2975 = vmatmul.bf16.gmra.mxu1 %v4018_v27  ;;  %v4101_v27 = vld [vmem:[%s7938_s3 + $0x178] sm:$0xf] }
 0x1c5   :  { %3043 = vmatmul.bf16.gmra.mxu2 %v3986_v26  ;;  %v7179_v41 = vpop.permute.xlu2 %1760  ;;  %v4693_v26 = vld [vmem:[%s7938_s3 + $0x198] sm:$0xf0] }
 0x1c6   :  { %3111 = vmatmul.bf16.gmra.mxu3 %v3954_v33  ;;  %v4705_v33 = vld [vmem:[%s7938_s3 + $0x1fc] sm:$0xf]  ;;  %v4102_v28 = vor.u32 %v4693_v26, %v4101_v27  ;;  %v4166_v26 = vor.u32 %v4710_v2, %v4165_v23 }
 0x1ca   :  { %v7128_v45 = vpop.permute.xlu0 %1795  ;;  %v7141_v50 = vpop.permute.xlu1 %1785 }
 0x1cd   :  { %v1826_v54 = vpop.permute.xlu2 %1825 }
 0x1d2   :  { %v7139_v12 = vpop.permute.xlu0 %1845  ;;  %v7171_v7 = vpop.permute.xlu1 %1770 }
 0x1d4   :  { %3189 = vmatmul.bf16.gmra.mxu0 %v3994_v13  ;;  %2980 = vmatmul.bf16.gmra.mxu1 %v4054_v36 }
 0x1d5   :  { %3048 = vmatmul.bf16.gmra.mxu2 %v4022_v10  ;;  %v4162_v10 = vor.u32 %v4705_v33, %v4159_v29  ;;  %v4134_v33 = vor.u32 %v4697_v16, %v4131_v53 }
 0x1d6   :  { %3116 = vmatmul.bf16.gmra.mxu3 %v3990_v63  ;;  %v7241_v39 = vpop.permute.xlu2 %1745 }
 0x1da   :  { %v7160_v8 = vpop.permute.xlu0 %1765  ;;  %v7177_v60 = vpop.permute.xlu1 %1835 }
 0x1e2   :  { %v7175_v44 = vpop.permute.xlu0 %1830  ;;  %v7209_v52 = vpop.permute.xlu1 %1755 }
 0x1e4   :  { %3194 = vmatmul.bf16.gmra.mxu0 %v4030_v4  ;;  %2985 = vmatmul.bf16.gmra.mxu1 %v4090_v6 }
 0x1e5   :  { %3053 = vmatmul.bf16.gmra.mxu2 %v4058_v40  ;;  %v1811_v40 = vpop.permute.xlu2 %1810 }
 0x1e6   :  { %3121 = vmatmul.bf16.gmra.mxu3 %v4026_v14  ;;  %v4137_v14 = vld [vmem:[%s7938_s3 + $0x1c0] sm:$0xf] }
 0x1ea   :  { %v7196_v61 = vpop.permute.xlu0 %1750  ;;  %v1821_v21 = vpop.permute.xlu1 %1820 }
 0x1ed   :  { %v1731_v31 = vpop.permute.xlu2 %1730 }
 0x1f1   :  { %v2888_v3 = vpop.f32.mrf.mxu0  ;;  %v7207_v34 = vpop.f32.mrf.mxu1 }
 0x1f2   :  { %v1816_v55 = vpop.permute.xlu0 %1815 }
 0x1f4   :  { %3199 = vmatmul.bf16.gmra.mxu0 %v4066_v58  ;;  %2990 = vmatmul.bf16.gmra.mxu1 %v4126_v11  ;;  %v4138_v58 = vor.u32 %v4702_v56, %v4137_v14  ;;  %v4167_v14 = vld [vmem:[%s7938_s3 + $0x224] sm:$0xf0] }
 0x1f5   :  { %3058 = vmatmul.bf16.gmra.mxu2 %v4094_v43 }
 0x1f6   :  { %3126 = vmatmul.bf16.gmra.mxu3 %v4062_v22 }
 0x1f8   :  { %v7211_v1 = vpop.f32.mrf.mxu2 }
 0x1f9   :  { %v2933_v59 = vpop.f32.mrf.mxu3  ;;  %v2890_v57 = vpop.f32.mrf.mxu0 }
 0x1fa   :  { %v7213_v48 = vadd.f32 %v2933_v59, %v1816_v55  ;;  %v7215_v19 = vpop.f32.mrf.mxu1  ;;  %v1736_v49 = vpop.permute.xlu0 %1735 }
 0x200   :  { %v7243_v13 = vpop.f32.mrf.mxu2 }
 0x201   :  { %v2935_v36 = vpop.f32.mrf.mxu3  ;;  %v2893_v0 = vpop.f32.mrf.mxu0 }
 0x202   :  { %v7245_v63 = vadd.f32 %v2935_v36, %v1821_v21  ;;  %v7247_v51 = vpop.f32.mrf.mxu1  ;;  %v1726_v38 = vpop.permute.xlu0 %1725  ;;  %v2891_v21 = vadd.f32 %v2890_v57, %v1731_v31  ;;  %v4173_v36 = vld [vmem:[%s7938_s3 + $0x208] sm:$0xf]  ;;  %v4723_v57 = vld [vmem:[%s7938_s3 + $0x28c] sm:$0xf] }
 0x203   :  { %v2889_v11 = vadd.f32 %v2888_v3, %v1726_v38  ;;  %v2894_v38 = vadd.f32 %v2893_v0, %v1736_v49 }
 0x204   :  { %3204 = vmatmul.bf16.gmra.mxu0 %v4102_v28  ;;  %2995 = vmatmul.bf16.gmra.mxu1 %v4162_v10  ;;  %v4711_v10 = vld [vmem:[%s7938_s3 + $0x228] sm:$0xf0] }
 0x205   :  { %3063 = vmatmul.bf16.gmra.mxu2 %v4130_v62  ;;  %v4201_v62 = vld [vmem:[%s7938_s3 + $0x248] sm:$0xf]  ;;  %v4174_v56 = vor.u32 %v4711_v10, %v4173_v36  ;;  %v4209_v36 = vld [vmem:[%s7938_s3 + $0x250] sm:$0xf]  ;;  %v4732_v10 = vld [vmem:[%s7938_s3 + $0x2d4] sm:$0xf] }
 0x206   :  { %3131 = vmatmul.bf16.gmra.mxu3 %v4098_v25  ;;  %v4719_v25 = vld [vmem:[%s7938_s3 + $0x268] sm:$0xf0] }
 0x208   :  { %v7249_v37 = vpop.f32.mrf.mxu2 }
 0x209   :  { %v2938_v18 = vpop.f32.mrf.mxu3  ;;  %v2895_v4 = vpop.f32.mrf.mxu0 }
 0x20a   :  { %v7251_v24 = vadd.f32 %v2938_v18, %v1826_v54  ;;  %v7253_v6 = vpop.f32.mrf.mxu1  ;;  %v4198_v54 = vor.u32 %v4714_v46, %v4195_v20  ;;  %v4706_v18 = vld [vmem:[%s7938_s3 + $0x204] sm:$0xf] }
 0x210   :  { %v7279_v43 = vpop.f32.mrf.mxu2 }
 0x211   :  { %v2940_v22 = vpop.f32.mrf.mxu3  ;;  %v7284_v59 = vpop.f32.mrf.mxu0 }
 0x212   :  { %v7282_v55 = vadd.f32 %v2940_v22, %v7175_v44  ;;  %v2961_v27 = vpop.f32.mrf.mxu1 }
 0x213   :  { %v2962_v29 = vadd.f32 %v2961_v27, %v2889_v11  ;;  %v4170_v11 = vor.u32 %v4706_v18, %v4167_v14  ;;  %v1741_v27 = vpop.permute.xlu1 %1740  ;;  %v2899_v14 = vadd.f32 %v7284_v59, %v7241_v39 }
 0x214   :  { %3209 = vmatmul.bf16.gmra.mxu0 %v4138_v58  ;;  %3000 = vmatmul.bf16.gmra.mxu1 %v4198_v54  ;;  %v4202_v58 = vor.u32 %v4719_v25, %v4201_v62  ;;  %v4797_v54 = vld [vmem:[#allocation2 + $0x178] sm:$0xff]  ;;  %v2896_v0 = vadd.f32 %v2895_v4, %v1741_v27  ;;  %v4720_v4 = vld [vmem:[%s7938_s3 + $0x270] sm:$0xf0]  ;;  %v4715_v62 = vld [vmem:[%s7938_s3 + $0x24c] sm:$0xf] }
 0x215   :  { %3068 = vmatmul.bf16.gmra.mxu2 %v4166_v26  ;;  %3244 = vmatpush.bf16.msra.mxu1 %v4797_v54  ;;  %v4203_v25 = vld [vmem:[%s7938_s3 + $0x26c] sm:$0xf0]  ;;  %v4210_v18 = vor.u32 %v4720_v4, %v4209_v36 }
 0x216   :  { %3136 = vmatmul.bf16.gmra.mxu3 %v4134_v33  ;;  %v4796_v33 = vld [vmem:[#allocation2 + $0x170] sm:$0xff]  ;;  %v4206_v27 = vor.u32 %v4715_v62, %v4203_v25  ;;  %v4803_v62 = vld [vmem:[#allocation2 + $0x1a8] sm:$0xff] }
 0x218   :  { %v7286_v3 = vpop.f32.mrf.mxu2 }
 0x219   :  { %v2943_v15 = vpop.f32.mrf.mxu3  ;;  %v7291_v44 = vpop.f32.mrf.mxu0  ;;  %3245 = vmatpush.bf16.msra.mxu1 %v4796_v33  ;;  %v4805_v33 = vld [vmem:[#allocation2 + $0x1b8] sm:$0xff] }
 0x21a   :  { %v7289_v30 = vadd.f32 %v2943_v15, %v7177_v60  ;;  %v2963_v32 = vpop.f32.mrf.mxu1  ;;  %v4231_v60 = vld [vmem:[%s7938_s3 + $0x2ac] sm:$0xf0]  ;;  %3317 = vmatpush.bf16.msra.mxu2 %v4805_v33  ;;  %v2901_v39 = vadd.f32 %v7291_v44, %v7196_v61  ;;  %v4245_v61 = vld [vmem:[%s7938_s3 + $0x298] sm:$0xf]  ;;  %v4729_v44 = vld [vmem:[%s7938_s3 + $0x2b8] sm:$0xf0] }
 0x21b   :  { %v2964_v28 = vadd.f32 %v2963_v32, %v2891_v21  ;;  %v4234_v23 = vor.u32 %v4723_v57, %v4231_v60  ;;  %v4795_v32 = vld [vmem:[#allocation2 + $0x168] sm:$0xff]  ;;  %v4237_v57 = vld [vmem:[%s7938_s3 + $0x290] sm:$0xf]  ;;  %v4728_v60 = vld [vmem:[%s7938_s3 + $0x2b0] sm:$0xf0] }
 0x21c   :  { %v4238_v54 = vor.u32 %v4728_v60, %v4237_v57  ;;  %v4791_v60 = vld [vmem:[#allocation2 + $0x148] sm:$0xff] }
 0x21d   :  { %3246 = vmatpush.bf16.msra.mxu1 %v4795_v32  ;;  %v4804_v32 = vld [vmem:[#allocation2 + $0x1b0] sm:$0xff] }
 0x21e   :  { %3318 = vmatpush.bf16.msra.mxu2 %v4804_v32 }
 0x220   :  { %v2930_v46 = vpop.f32.mrf.mxu2 }
 0x221   :  { %v7317_v20 = vpop.f32.mrf.mxu3  ;;  %v7319_v2 = vadd.f32 %v2930_v46, %v1811_v40  ;;  %v7321_v16 = vpop.f32.mrf.mxu0 }
 0x222   :  { %v2966_v53 = vpop.f32.mrf.mxu1  ;;  %3319 = vmatpush.bf16.msra.mxu2 %v4803_v62  ;;  %v4800_v62 = vld [vmem:[#allocation2 + $0x190] sm:$0xff] }
 0x223   :  { %v2967_v22 = vadd.f32 %v2966_v53, %v2894_v38 }
 0x224   :  { %3214 = vmatmul.bf16.gmra.mxu0 %v4174_v56  ;;  %3005 = vmatmul.bf16.gmra.mxu1 %v4234_v23  ;;  %v4794_v23 = vld [vmem:[#allocation2 + $0x160] sm:$0xff] }
 0x225   :  { %3073 = vmatmul.bf16.gmra.mxu2 %v4202_v58  ;;  %3247 = vmatpush.bf16.msra.mxu1 %v4794_v23  ;;  %v2904_v23 = vadd.f32 %v7321_v16, %v7209_v52  ;;  %v4801_v52 = vld [vmem:[#allocation2 + $0x198] sm:$0xff] }
 0x226   :  { %3141 = vmatmul.bf16.gmra.mxu3 %v4170_v11  ;;  %v4813_v16 = vld [vmem:[#allocation2 + $0x1f8] sm:$0xff] }
 0x227   :  { %3390 = vmatpush.bf16.msra.mxu3 %v4813_v16 }
 0x228   :  { %v3034_v26 = vpop.f32.mrf.mxu2 }
 0x229   :  { %v7323_v49 = vpop.f32.mrf.mxu3  ;;  %v3035_v40 = vadd.f32 %v3034_v26, %v2962_v29  ;;  %v7325_v31 = vpop.f32.mrf.mxu0  ;;  %v4267_v29 = vld [vmem:[%s7938_s3 + $0x2f4] sm:$0xf0] }
 0x22a   :  { %v2968_v21 = vpop.f32.mrf.mxu1  ;;  %v4270_v46 = vor.u32 %v4732_v10, %v4267_v29  ;;  %v4793_v26 = vld [vmem:[#allocation2 + $0x158] sm:$0xff] }
 0x22b   :  { %v7327_v15 = vadd.f32 %v2968_v21, %v2896_v0  ;;  %3248 = vmatpush.bf16.msra.mxu1 %v4793_v26  ;;  %v4792_v21 = vld [vmem:[#allocation2 + $0x150] sm:$0xff]  ;;  %v4802_v26 = vld [vmem:[#allocation2 + $0x1a0] sm:$0xff] }
 0x22c   :  { %3320 = vmatpush.bf16.msra.mxu2 %v4802_v26 }
 0x22f   :  { %3249 = vmatpush.bf16.msra.mxu1 %v4792_v21 }
 0x230   :  { %v3036_v38 = vpop.f32.mrf.mxu2  ;;  %3321 = vmatpush.bf16.msra.mxu2 %v4801_v52 }
 0x231   :  { %v2950_v56 = vpop.f32.mrf.mxu3  ;;  %v3037_v53 = vadd.f32 %v3036_v38, %v2964_v28  ;;  %v3180_v11 = vpop.f32.mrf.mxu0  ;;  %v4239_v38 = vld [vmem:[%s7938_s3 + $0x2b4] sm:$0xf0] }
 0x232   :  { %v2971_v58 = vpop.f32.mrf.mxu1  ;;  %v4724_v56 = vld [vmem:[%s7938_s3 + $0x294] sm:$0xf] }
 0x233   :  { %v7355_v0 = vadd.f32 %v2971_v58, %v2899_v14  ;;  %v4737_v14 = vld [vmem:[%s7938_s3 + $0x2f8] sm:$0xf0]  ;;  %3250 = vmatpush.bf16.msra.mxu1 %v4791_v60  ;;  %v4242_v32 = vor.u32 %v4724_v56, %v4239_v38  ;;  %v4811_v56 = vld [vmem:[#allocation2 + $0x1e8] sm:$0xff] }
 0x234   :  { %3219 = vmatmul.bf16.gmra.mxu0 %v4210_v18  ;;  %3010 = vmatmul.bf16.gmra.mxu1 %v4270_v46  ;;  %v4273_v18 = vld [vmem:[%s7938_s3 + $0x2d8] sm:$0xf]  ;;  %v4246_v46 = vor.u32 %v4729_v44, %v4245_v61  ;;  %v4812_v61 = vld [vmem:[#allocation2 + $0x1f0] sm:$0xff]  ;;  %v4819_v38 = vld [vmem:[#allocation2 + $0x228] sm:$0xff] }
 0x235   :  { %3078 = vmatmul.bf16.gmra.mxu2 %v4238_v54  ;;  %v4274_v21 = vor.u32 %v4737_v14, %v4273_v18  ;;  %3391 = vmatpush.bf16.msra.mxu3 %v4812_v61  ;;  %v4799_v14 = vld [vmem:[#allocation2 + $0x188] sm:$0xff] }
 0x236   :  { %3146 = vmatmul.bf16.gmra.mxu3 %v4206_v27  ;;  %v4790_v27 = vld [vmem:[#allocation2 + $0x140] sm:$0xff]  ;;  %3322 = vmatpush.bf16.msra.mxu2 %v4800_v62 }
 0x237   :  { %3251 = vmatpush.bf16.msra.mxu1 %v4790_v27  ;;  %3465 = vmatpush.bf16.msra.mxu0 %v4819_v38 }
 0x238   :  { %v3039_v59 = vpop.f32.mrf.mxu2 }
 0x239   :  { %v3107_v28 = vpop.f32.mrf.mxu3  ;;  %v3040_v36 = vadd.f32 %v3039_v59, %v2967_v22  ;;  %v3182_v29 = vpop.f32.mrf.mxu0  ;;  %v4741_v22 = vld [vmem:[%s7938_s3 + $0x31c] sm:$0xf]  ;;  %3392 = vmatpush.bf16.msra.mxu3 %v4811_v56 }
 0x23a   :  { %v3108_v4 = vadd.f32 %v3107_v28, %v3035_v40  ;;  %v2973_v10 = vpop.f32.mrf.mxu1  ;;  %v4303_v40 = vld [vmem:[%s7938_s3 + $0x33c] sm:$0xf0]  ;;  %3323 = vmatpush.bf16.msra.mxu2 %v4799_v14  ;;  %v4816_v14 = vld [vmem:[#allocation2 + $0x210] sm:$0xff] }
 0x23b   :  { %v7359_v57 = vadd.f32 %v2973_v10, %v2901_v39  ;;  %v4306_v54 = vor.u32 %v4741_v22, %v4303_v40 }
 0x23c   :  { %v7361_v25 = vadd.f32 %v3180_v11, %v3108_v4 }
 0x240   :  { %v3041_v58 = vpop.f32.mrf.mxu2 }
 0x241   :  { %v3109_v11 = vpop.f32.mrf.mxu3  ;;  %v3042_v33 = vadd.f32 %v3041_v58, %v7327_v15  ;;  %v3185_v28 = vpop.f32.mrf.mxu0  ;;  %v2906_v15 = vadd.f32 %v7325_v31, %v7179_v41  ;;  %v2190_v41 = vunpack.c.h.b16 %v7038_v47  ;;  %v4281_v31 = vld [vmem:[%s7938_s3 + $0x2e0] sm:$0xf]  ;;  %v4733_v47 = vld [vmem:[%s7938_s3 + $0x2dc] sm:$0xf] }
 0x242   :  { %v3110_v39 = vadd.f32 %v3109_v11, %v3037_v53  ;;  %v2976_v59 = vpop.f32.mrf.mxu1  ;;  %v4275_v58 = vld [vmem:[%s7938_s3 + $0x2fc] sm:$0xf0] }
 0x243   :  { %v7390_v4 = vadd.f32 %v2976_v59, %v2904_v23  ;;  %v4746_v23 = vld [vmem:[%s7938_s3 + $0x340] sm:$0xf0] }
 0x244   :  { %3224 = vmatmul.bf16.gmra.mxu0 %v4246_v46  ;;  %v7392_v10 = vadd.f32 %v3182_v29, %v3110_v39  ;;  %3015 = vmatmul.bf16.gmra.mxu1 %v4306_v54  ;;  %v2909_v54 = vadd.f32 %v7207_v34, %v7160_v8  ;;  %v2307_v39 = vpack.c.b16 %v2190_v41, %v2190_v41  ;;  %v4798_v59 = vld [vmem:[#allocation2 + $0x180] sm:$0xff]  ;;  %v4809_v8 = vld [vmem:[#allocation2 + $0x1d8] sm:$0xff] }
 0x245   :  { %3083 = vmatmul.bf16.gmra.mxu2 %v4274_v21  ;;  %v4818_v21 = vld [vmem:[#allocation2 + $0x220] sm:$0xff]  ;;  %v4817_v34 = vld [vmem:[#allocation2 + $0x218] sm:$0xff] }
 0x246   :  { %3151 = vmatmul.bf16.gmra.mxu3 %v4242_v32  ;;  %3324 = vmatpush.bf16.msra.mxu2 %v4798_v59 }
 0x247   :  { %3466 = vmatpush.bf16.msra.mxu0 %v4818_v21  ;;  %v4806_v21 = vld [vmem:[#allocation2 + $0x1c0] sm:$0xff] }
 0x248   :  { %v3044_v53 = vpop.f32.mrf.mxu2 }
 0x249   :  { %v3112_v60 = vpop.f32.mrf.mxu3  ;;  %v3045_v44 = vadd.f32 %v3044_v53, %v7355_v0  ;;  %v3187_v29 = vpop.f32.mrf.mxu0  ;;  %v4738_v0 = vld [vmem:[%s7938_s3 + $0x300] sm:$0xf0] }
 0x24a   :  { %v3113_v22 = vadd.f32 %v3112_v60, %v3040_v36  ;;  %v2978_v40 = vpop.f32.mrf.mxu1  ;;  %v4309_v36 = vld [vmem:[%s7938_s3 + $0x320] sm:$0xf]  ;;  %v4282_v11 = vor.u32 %v4738_v0, %v4281_v31  ;;  %v4278_v60 = vor.u32 %v4733_v47, %v4275_v58  ;;  %v1554_v0 = vld [vmem:[%s7938_s3 + $0x368] sm:$0xff]  ;;  %v4644_v47 = vld [vmem:[%s7938_s3 + $0x14] sm:$0xf] }
 0x24b   :  { %v7397_v18 = vadd.f32 %v2978_v40, %v2906_v15  ;;  %v4310_v53 = vor.u32 %v4746_v23, %v4309_v36  ;;  %3467 = vmatpush.bf16.msra.mxu0 %v4817_v34  ;;  %v4808_v40 = vld [vmem:[#allocation2 + $0x1d0] sm:$0xff]  ;;  %v4807_v36 = vld [vmem:[#allocation2 + $0x1c8] sm:$0xff]  ;;  %v3923_v58 = vld [vmem:[%s7938_s3 + $0x34] sm:$0xf0] }
 0x24c   :  { %v7399_v46 = vadd.f32 %v3185_v28, %v3113_v22  ;;  %v4810_v28 = vld [vmem:[#allocation2 + $0x1e0] sm:$0xff] }
 0x24d   :  { %3393 = vmatpush.bf16.msra.mxu3 %v4810_v28  ;;  %v3926_v28 = vor.u32 %v4644_v47, %v3923_v58 }
 0x24f   :  { %3468 = vmatpush.bf16.msra.mxu0 %v4816_v14 }
 0x250   :  { %v3046_v27 = vpop.f32.mrf.mxu2 }
 0x251   :  { %v3114_v26 = vpop.f32.mrf.mxu3  ;;  %v3047_v32 = vadd.f32 %v3046_v27, %v7359_v57  ;;  %v3190_v15 = vpop.f32.mrf.mxu0  ;;  %3394 = vmatpush.bf16.msra.mxu3 %v4809_v8  ;;  %v2911_v57 = vadd.f32 %v7215_v19, %v7171_v7  ;;  %v4317_v7 = vld [vmem:[%s7938_s3 + $0x328] sm:$0xf]  ;;  %v4747_v19 = vld [vmem:[%s7938_s3 + $0x348] sm:$0xf0] }
 0x252   :  { %v3115_v52 = vadd.f32 %v3114_v26, %v3042_v33  ;;  %v2981_v16 = vpop.f32.mrf.mxu1  ;;  %v4318_v27 = vor.u32 %v4747_v19, %v4317_v7  ;;  %v2914_v26 = vadd.f32 %v7247_v51, %v7143_v35  ;;  %v2916_v35 = vadd.f32 %v7253_v6, %v7117_v5  ;;  %v4653_v5 = vld [vmem:[%s7938_s3 + $0x5c] sm:$0xf]  ;;  %v3959_v6 = vld [vmem:[%s7938_s3 + $0x7c] sm:$0xf0] }
 0x253   :  { %v7423_v62 = vadd.f32 %v2981_v16, %v2909_v54  ;;  %v4311_v54 = vld [vmem:[%s7938_s3 + $0x344] sm:$0xf0]  ;;  %v2192_v7 = vunpack.c.h.b16 %v1554_v0  ;;  %v3962_v47 = vor.u32 %v4653_v5, %v3959_v6 }
 0x254   :  { %3229 = vmatmul.bf16.gmra.mxu0 %v4282_v11  ;;  %v7425_v61 = vadd.f32 %v3187_v29, %v3115_v52  ;;  %3020 = vmatmul.bf16.gmra.mxu1 %v2307_v39  ;;  %v4742_v11 = vld [vmem:[%s7938_s3 + $0x324] sm:$0xf] }
 0x255   :  { %3088 = vmatmul.bf16.gmra.mxu2 %v4310_v53  ;;  %3395 = vmatpush.bf16.msra.mxu3 %v4808_v40  ;;  %v4814_v52 = vld [vmem:[#allocation2 + $0x200] sm:$0xff]  ;;  %v4314_v34 = vor.u32 %v4742_v11, %v4311_v54 }
 0x256   :  { %3156 = vmatmul.bf16.gmra.mxu3 %v4278_v60 }
 0x258   :  { %v3049_v33 = vpop.f32.mrf.mxu2 }
 0x259   :  { %v3117_v22 = vpop.f32.mrf.mxu3  ;;  %v3050_v56 = vadd.f32 %v3049_v33, %v7390_v4  ;;  %v3192_v41 = vpop.f32.mrf.mxu0  ;;  %v4815_v4 = vld [vmem:[#allocation2 + $0x208] sm:$0xff]  ;;  %3396 = vmatpush.bf16.msra.mxu3 %v4807_v36 }
 0x25a   :  { %v3118_v38 = vadd.f32 %v3117_v22, %v3045_v44  ;;  %v2983_v29 = vpop.f32.mrf.mxu1  ;;  %v2191_v44 = vunpack.c.l.b16 %v1554_v0  ;;  %3469 = vmatpush.bf16.msra.mxu0 %v4815_v4  ;;  %v2919_v0 = vadd.f32 %v7211_v1, %v7141_v50 }
 0x25b   :  { %v2984_v31 = vadd.f32 %v2983_v29, %v2911_v57 }
 0x25c   :  { %v7433_v23 = vadd.f32 %v3190_v15, %v3118_v38  ;;  %v2308_v8 = vpack.c.b16 %v2191_v44, %v2191_v44 }
 0x25d   :  { %3397 = vmatpush.bf16.msra.mxu3 %v4806_v21  ;;  %v2921_v21 = vadd.f32 %v7243_v13, %v7115_v17  ;;  %v4662_v17 = vld [vmem:[%s7938_s3 + $0xa4] sm:$0xf]  ;;  %v3995_v13 = vld [vmem:[%s7938_s3 + $0xc4] sm:$0xf0] }
 0x25e   :  { %3470 = vmatpush.bf16.msra.mxu0 %v4814_v52 }
 0x260   :  { %v3051_v39 = vpop.f32.mrf.mxu2 }
 0x261   :  { %v3119_v59 = vpop.f32.mrf.mxu3  ;;  %v3052_v16 = vadd.f32 %v3051_v39, %v7397_v18  ;;  %v3195_v60 = vpop.f32.mrf.mxu0  ;;  %v7463_v18 = vld [vmem:[%s7938_s3 + $0x370] sm:$0xff] }
 0x262   :  { %v3120_v15 = vadd.f32 %v3119_v59, %v3047_v32  ;;  %v2986_v53 = vpop.f32.mrf.mxu1 }
 0x263   :  { %v2987_v57 = vadd.f32 %v2986_v53, %v2914_v26  ;;  %v2309_v26 = vpack.c.b16 %v2192_v7, %v2192_v7 }
 0x264   :  { %3234 = vmatmul.bf16.gmra.mxu0 %v4318_v27  ;;  %v7456_v33 = vadd.f32 %v3192_v41, %v3120_v15  ;;  %3252 = vmatmul.bf16.vlgmr.msra.gmra.mxu1 %v3926_v28  ;;  %v2193_v41 = vunpack.c.l.b16 %v7463_v18 }
 0x265   :  { %3093 = vmatmul.bf16.gmra.mxu2 %v2308_v8  ;;  %v3937_v8 = vld [vmem:[%s7938_s3 + $0x20] sm:$0xf] }
 0x266   :  { %3161 = vmatmul.bf16.gmra.mxu3 %v4314_v34  ;;  %v2310_v19 = vpack.c.b16 %v2193_v41, %v2193_v41  ;;  %v4650_v34 = vld [vmem:[%s7938_s3 + $0x40] sm:$0xf0]  ;;  %v3998_v41 = vor.u32 %v4662_v17, %v3995_v13 }
 0x268   :  { %v3054_v51 = vpop.f32.mrf.mxu2 }
 0x269   :  { %v3122_v22 = vpop.f32.mrf.mxu3  ;;  %v3055_v32 = vadd.f32 %v3054_v51, %v7423_v62  ;;  %v3197_v38 = vpop.f32.mrf.mxu0  ;;  %v3929_v62 = vld [vmem:[%s7938_s3 + $0x18] sm:$0xf]  ;;  %v4645_v51 = vld [vmem:[%s7938_s3 + $0x1c] sm:$0xf] }
 0x26a   :  { %v3123_v40 = vadd.f32 %v3122_v22, %v3050_v56  ;;  %v2988_v14 = vpop.f32.mrf.mxu1  ;;  %v4649_v56 = vld [vmem:[%s7938_s3 + $0x38] sm:$0xf0]  ;;  %v3931_v22 = vld [vmem:[%s7938_s3 + $0x3c] sm:$0xf0] }
 0x26b   :  { %v2989_v29 = vadd.f32 %v2988_v14, %v2916_v35  ;;  %v3930_v39 = vor.u32 %v4649_v56, %v3929_v62  ;;  %v4658_v35 = vld [vmem:[%s7938_s3 + $0x80] sm:$0xf0] }
 0x26c   :  { %v7467_v36 = vadd.f32 %v3195_v60, %v3123_v40  ;;  %v2924_v40 = vadd.f32 %v7249_v37, %v7128_v45  ;;  %v2926_v45 = vadd.f32 %v7279_v43, %v7107_v42  ;;  %v4671_v42 = vld [vmem:[%s7938_s3 + $0xec] sm:$0xf]  ;;  %v4031_v43 = vld [vmem:[%s7938_s3 + $0x10c] sm:$0xf0] }
 0x270   :  { %v3056_v4 = vpop.f32.mrf.mxu2 }
 0x271   :  { %v3124_v44 = vpop.f32.mrf.mxu3  ;;  %v3057_v58 = vadd.f32 %v3056_v4, %v2984_v31  ;;  %v3200_v27 = vpop.f32.mrf.mxu0 }
 0x272   :  { %v3125_v11 = vadd.f32 %v3124_v44, %v3052_v16  ;;  %v2991_v54 = vpop.f32.mrf.mxu1 }
 0x273   :  { %v2992_v59 = vadd.f32 %v2991_v54, %v2919_v0 }
 0x274   :  { %3239 = vmatmul.bf16.gmra.mxu0 %v2310_v19  ;;  %v7483_v28 = vadd.f32 %v3197_v38, %v3125_v11  ;;  %3257 = vmatmul.bf16.gmra.mxu1 %v3962_v47  ;;  %v3934_v19 = vor.u32 %v4645_v51, %v3931_v22 }
 0x275   :  { %3325 = vmatmul.bf16.vlgmr.msra.gmra.mxu2 %v3930_v39  ;;  %v4659_v39 = vld [vmem:[%s7938_s3 + $0x88] sm:$0xf0] }
 0x276   :  { %3166 = vmatmul.bf16.gmra.mxu3 %v2309_v26  ;;  %v3973_v26 = vld [vmem:[%s7938_s3 + $0x68] sm:$0xf] }
 0x278   :  { %v3059_v50 = vpop.f32.mrf.mxu2 }
 0x279   :  { %v3127_v1 = vpop.f32.mrf.mxu3  ;;  %v3060_v52 = vadd.f32 %v3059_v50, %v2987_v57  ;;  %v3202_v16 = vpop.f32.mrf.mxu0  ;;  %v3965_v57 = vld [vmem:[%s7938_s3 + $0x60] sm:$0xf]  ;;  %v4667_v50 = vld [vmem:[%s7938_s3 + $0xc8] sm:$0xf0] }
 0x27a   :  { %v3128_v15 = vadd.f32 %v3127_v1, %v3055_v32  ;;  %v2993_v31 = vpop.f32.mrf.mxu1  ;;  %v3938_v32 = vor.u32 %v4650_v34, %v3937_v8  ;;  %v3966_v56 = vor.u32 %v4658_v35, %v3965_v57  ;;  %v4654_v1 = vld [vmem:[%s7938_s3 + $0x64] sm:$0xf]  ;;  %v4034_v34 = vor.u32 %v4671_v42, %v4031_v43 }
 0x27b   :  { %v2994_v53 = vadd.f32 %v2993_v31, %v2921_v21  ;;  %v1806_v21 = vpop.permute.xlu1 %1805 }
 0x27c   :  { %v7487_v60 = vadd.f32 %v3200_v27, %v3128_v15  ;;  %v3974_v15 = vor.u32 %v4659_v39, %v3973_v26  ;;  %v2929_v31 = vadd.f32 %v7286_v3, %v1806_v21 }
 0x280   :  { %v3061_v14 = vpop.f32.mrf.mxu2 }
 0x281   :  { %v3129_v38 = vpop.f32.mrf.mxu3  ;;  %v3062_v7 = vadd.f32 %v3061_v14, %v2989_v29  ;;  %v3205_v62 = vpop.f32.mrf.mxu0 }
 0x282   :  { %v3130_v5 = vadd.f32 %v3129_v38, %v3057_v58  ;;  %v2996_v6 = vpop.f32.mrf.mxu1 }
 0x283   :  { %v2997_v0 = vadd.f32 %v2996_v6, %v2924_v40 }
 0x284   :  { %4615 = vmatmul.msk.bf16.vlgmr.msra.gmra.mxu0 %vm2839_vm0, %v3938_v32  ;;  %v7516_v4 = vadd.f32 %v3202_v16, %v3130_v5  ;;  %3262 = vmatmul.bf16.gmra.mxu1 %v3998_v41 }
 0x285   :  { %3330 = vmatmul.bf16.gmra.mxu2 %v3966_v56  ;;  %v4668_v56 = vld [vmem:[%s7938_s3 + $0xd0] sm:$0xf0] }
 0x286   :  { %3398 = vmatmul.bf16.vlgmr.msra.gmra.mxu3 %v3934_v19  ;;  %v4680_v19 = vld [vmem:[%s7938_s3 + $0x134] sm:$0xf] }
 0x288   :  { %v3064_v37 = vpop.f32.mrf.mxu2 }
 0x289   :  { %v3132_v44 = vpop.f32.mrf.mxu3  ;;  %v3065_v47 = vadd.f32 %v3064_v37, %v2992_v59  ;;  %v3207_v11 = vpop.f32.mrf.mxu0  ;;  %v4001_v59 = vld [vmem:[%s7938_s3 + $0xa8] sm:$0xf]  ;;  %v4663_v37 = vld [vmem:[%s7938_s3 + $0xac] sm:$0xf] }
 0x28a   :  { %v3133_v29 = vadd.f32 %v3132_v44, %v3060_v52  ;;  %v2998_v58 = vpop.f32.mrf.mxu1  ;;  %v3967_v52 = vld [vmem:[%s7938_s3 + $0x84] sm:$0xf0]  ;;  %v4002_v51 = vor.u32 %v4667_v50, %v4001_v59  ;;  %v4003_v44 = vld [vmem:[%s7938_s3 + $0xcc] sm:$0xf0] }
 0x28b   :  { %v2999_v54 = vadd.f32 %v2998_v58, %v2926_v45  ;;  %v3970_v22 = vor.u32 %v4654_v1, %v3967_v52  ;;  %v4676_v45 = vld [vmem:[%s7938_s3 + $0x110] sm:$0xf0]  ;;  %v4006_v59 = vor.u32 %v4663_v37, %v4003_v44 }
 0x28c   :  { %v7520_v27 = vadd.f32 %v3205_v62, %v3133_v29  ;;  %v4009_v62 = vld [vmem:[%s7938_s3 + $0xb0] sm:$0xf] }
 0x290   :  { %v3066_v16 = vpop.f32.mrf.mxu2 }
 0x291   :  { %v3134_v8 = vpop.f32.mrf.mxu3  ;;  %v3067_v17 = vadd.f32 %v3066_v16, %v2994_v53  ;;  %v3210_v35 = vpop.f32.mrf.mxu0 }
 0x292   :  { %v3135_v13 = vadd.f32 %v3134_v8, %v3062_v7  ;;  %v3001_v57 = vpop.f32.mrf.mxu1 }
 0x293   :  { %v3002_v32 = vadd.f32 %v3001_v57, %v2929_v31  ;;  %v4689_v57 = vld [vmem:[%s7938_s3 + $0x17c] sm:$0xf] }
 0x294   :  { %4616 = vmatmul.msk.bf16.gmra.mxu0 %vm2839_vm0, %v3974_v15  ;;  %v7548_v40 = vadd.f32 %v3207_v11, %v3135_v13  ;;  %3267 = vmatmul.bf16.gmra.mxu1 %v4034_v34  ;;  %v4677_v13 = vld [vmem:[%s7938_s3 + $0x118] sm:$0xf0] }
 0x295   :  { %3335 = vmatmul.bf16.gmra.mxu2 %v4002_v51  ;;  %v4685_v51 = vld [vmem:[%s7938_s3 + $0x158] sm:$0xf0] }
 0x296   :  { %3403 = vmatmul.bf16.gmra.mxu3 %v3970_v22  ;;  %v4672_v22 = vld [vmem:[%s7938_s3 + $0xf4] sm:$0xf] }
 0x298   :  { %v3069_v14 = vpop.f32.mrf.mxu2 }
 0x299   :  { %v3137_v38 = vpop.f32.mrf.mxu3  ;;  %v3070_v3 = vadd.f32 %v3069_v14, %v2997_v0  ;;  %v3212_v6 = vpop.f32.mrf.mxu0  ;;  %v4067_v0 = vld [vmem:[%s7938_s3 + $0x154] sm:$0xf0] }
 0x29a   :  { %v3138_v41 = vadd.f32 %v3137_v38, %v3065_v47  ;;  %v3003_v5 = vpop.f32.mrf.mxu1  ;;  %v4010_v47 = vor.u32 %v4668_v56, %v4009_v62  ;;  %v4070_v11 = vor.u32 %v4680_v19, %v4067_v0 }
 0x29b   :  { %v3004_v53 = vadd.f32 %v3003_v5, %v7319_v2  ;;  %v4037_v2 = vld [vmem:[%s7938_s3 + $0xf0] sm:$0xf] }
 0x29c   :  { %v7551_v7 = vadd.f32 %v3210_v35, %v3138_v41  ;;  %v4038_v43 = vor.u32 %v4676_v45, %v4037_v2  ;;  %v4103_v35 = vld [vmem:[%s7938_s3 + $0x19c] sm:$0xf0] }
 0x29d   :  { %v4106_v41 = vor.u32 %v4689_v57, %v4103_v35 }
 0x2a0   :  { %v3071_v29 = vpop.f32.mrf.mxu2 }
 0x2a1   :  { %v3139_v58 = vpop.f32.mrf.mxu3  ;;  %v3072_v26 = vadd.f32 %v3071_v29, %v2999_v54  ;;  %v3215_v42 = vpop.f32.mrf.mxu0 }
 0x2a2   :  { %v3140_v39 = vadd.f32 %v3139_v58, %v3067_v17  ;;  %v3006_v21 = vpop.f32.mrf.mxu1 }
 0x2a3   :  { %v3007_v50 = vadd.f32 %v3006_v21, %v7213_v48  ;;  %v4045_v48 = vld [vmem:[%s7938_s3 + $0xf8] sm:$0xf]  ;;  %v4698_v21 = vld [vmem:[%s7938_s3 + $0x1c4] sm:$0xf] }
 0x2a4   :  { %4617 = vmatmul.msk.bf16.gmra.mxu0 %vm2839_vm0, %v4010_v47  ;;  %v7579_v1 = vadd.f32 %v3212_v6, %v3140_v39  ;;  %3272 = vmatmul.bf16.gmra.mxu1 %v4070_v11  ;;  %v4046_v14 = vor.u32 %v4677_v13, %v4045_v48  ;;  %v4686_v39 = vld [vmem:[%s7938_s3 + $0x160] sm:$0xf0] }
 0x2a5   :  { %3340 = vmatmul.bf16.gmra.mxu2 %v4038_v43  ;;  %v4694_v43 = vld [vmem:[%s7938_s3 + $0x1a0] sm:$0xf0] }
 0x2a6   :  { %3408 = vmatmul.bf16.gmra.mxu3 %v4006_v59  ;;  %v4681_v59 = vld [vmem:[%s7938_s3 + $0x13c] sm:$0xf] }
 0x2a8   :  { %v3074_v52 = vpop.f32.mrf.mxu2 }
 0x2a9   :  { %v3142_v15 = vpop.f32.mrf.mxu3  ;;  %v3075_v31 = vadd.f32 %v3074_v52, %v3002_v32  ;;  %v3217_v54 = vpop.f32.mrf.mxu0  ;;  %v4039_v32 = vld [vmem:[%s7938_s3 + $0x114] sm:$0xf0] }
 0x2aa   :  { %v3143_v16 = vadd.f32 %v3142_v15, %v3070_v3  ;;  %v3008_v8 = vpop.f32.mrf.mxu1  ;;  %v4042_v0 = vor.u32 %v4672_v22, %v4039_v32  ;;  %v2946_v22 = vadd.f32 %v7317_v20, %v7173_v9  ;;  %v4707_v9 = vld [vmem:[%s7938_s3 + $0x20c] sm:$0xf]  ;;  %v4175_v20 = vld [vmem:[%s7938_s3 + $0x22c] sm:$0xf0] }
 0x2ab   :  { %v3009_v34 = vadd.f32 %v3008_v8, %v7245_v63  ;;  %v4073_v63 = vld [vmem:[%s7938_s3 + $0x138] sm:$0xf] }
 0x2ac   :  { %v7582_v17 = vadd.f32 %v3215_v42, %v3143_v16  ;;  %v4074_v19 = vor.u32 %v4685_v51, %v4073_v63  ;;  %v4139_v42 = vld [vmem:[%s7938_s3 + $0x1e4] sm:$0xf0] }
 0x2ad   :  { %v4142_v16 = vor.u32 %v4698_v21, %v4139_v42 }
 0x2b0   :  { %v3076_v38 = vpop.f32.mrf.mxu2 }
 0x2b1   :  { %v3144_v3 = vpop.f32.mrf.mxu3  ;;  %v3077_v5 = vadd.f32 %v3076_v38, %v3004_v53  ;;  %v3220_v56 = vpop.f32.mrf.mxu0 }
 0x2b2   :  { %v3145_v6 = vadd.f32 %v3144_v3, %v3072_v26  ;;  %v3011_v62 = vpop.f32.mrf.mxu1 }
 0x2b3   :  { %v3012_v2 = vadd.f32 %v3011_v62, %v7251_v24  ;;  %v4081_v24 = vld [vmem:[%s7938_s3 + $0x140] sm:$0xf]  ;;  %v4695_v62 = vld [vmem:[%s7938_s3 + $0x1a8] sm:$0xf0] }
 0x2b4   :  { %4618 = vmatmul.msk.bf16.gmra.mxu0 %vm2839_vm0, %v4046_v14  ;;  %v7610_v45 = vadd.f32 %v3217_v54, %v3145_v6  ;;  %3277 = vmatmul.bf16.gmra.mxu1 %v4106_v41  ;;  %v4082_v52 = vor.u32 %v4686_v39, %v4081_v24 }
 0x2b5   :  { %3345 = vmatmul.bf16.gmra.mxu2 %v4074_v19  ;;  %v4703_v19 = vld [vmem:[%s7938_s3 + $0x1e8] sm:$0xf0] }
 0x2b6   :  { %3413 = vmatmul.bf16.gmra.mxu3 %v4042_v0  ;;  %v4690_v0 = vld [vmem:[%s7938_s3 + $0x184] sm:$0xf] }
 0x2b8   :  { %v3079_v37 = vpop.f32.mrf.mxu2 }
 0x2b9   :  { %v3147_v44 = vpop.f32.mrf.mxu3  ;;  %v3080_v47 = vadd.f32 %v3079_v37, %v3007_v50  ;;  %v3222_v53 = vpop.f32.mrf.mxu0  ;;  %v4075_v50 = vld [vmem:[%s7938_s3 + $0x15c] sm:$0xf0] }
 0x2ba   :  { %v3148_v29 = vadd.f32 %v3147_v44, %v3075_v31  ;;  %v3013_v58 = vpop.f32.mrf.mxu1  ;;  %v4078_v35 = vor.u32 %v4681_v59, %v4075_v50  ;;  %v2949_v44 = vadd.f32 %v7323_v49, %v7139_v12 }
 0x2bb   :  { %v3014_v11 = vadd.f32 %v3013_v58, %v7282_v55  ;;  %v4109_v55 = vld [vmem:[%s7938_s3 + $0x180] sm:$0xf]  ;;  %v4178_v58 = vor.u32 %v4707_v9, %v4175_v20 }
 0x2bc   :  { %v7613_v26 = vadd.f32 %v3220_v56, %v3148_v29  ;;  %v4110_v57 = vor.u32 %v4694_v43, %v4109_v55  ;;  %v4145_v56 = vld [vmem:[%s7938_s3 + $0x1c8] sm:$0xf] }
 0x2bd   :  { %v4146_v42 = vor.u32 %v4703_v19, %v4145_v56 }
 0x2c0   :  { %v3081_v15 = vpop.f32.mrf.mxu2 }
 0x2c1   :  { %v3149_v31 = vpop.f32.mrf.mxu3  ;;  %v3082_v8 = vadd.f32 %v3081_v15, %v3009_v34  ;;  %v3225_v13 = vpop.f32.mrf.mxu0 }
 0x2c2   :  { %v3150_v54 = vadd.f32 %v3149_v31, %v3077_v5  ;;  %v3016_v48 = vpop.f32.mrf.mxu1 }
 0x2c3   :  { %v3017_v63 = vadd.f32 %v3016_v48, %v7289_v30  ;;  %v4117_v30 = vld [vmem:[%s7938_s3 + $0x188] sm:$0xf]  ;;  %v4211_v48 = vld [vmem:[%s7938_s3 + $0x274] sm:$0xf0] }
 0x2c4   :  { %4619 = vmatmul.msk.bf16.gmra.mxu0 %vm2839_vm0, %v4082_v52  ;;  %v7641_v51 = vadd.f32 %v3222_v53, %v3150_v54  ;;  %3282 = vmatmul.bf16.gmra.mxu1 %v4142_v16  ;;  %v4118_v37 = vor.u32 %v4695_v62, %v4117_v30  ;;  %v4153_v16 = vld [vmem:[%s7938_s3 + $0x1d0] sm:$0xf]  ;;  %v4716_v54 = vld [vmem:[%s7938_s3 + $0x254] sm:$0xf] }
 0x2c5   :  { %3350 = vmatmul.bf16.gmra.mxu2 %v4110_v57  ;;  %v4712_v57 = vld [vmem:[%s7938_s3 + $0x230] sm:$0xf0] }
 0x2c6   :  { %3418 = vmatmul.bf16.gmra.mxu3 %v4078_v35  ;;  %v4699_v35 = vld [vmem:[%s7938_s3 + $0x1cc] sm:$0xf] }
 0x2c8   :  { %v3084_v32 = vpop.f32.mrf.mxu2 }
 0x2c9   :  { %v3152_v14 = vpop.f32.mrf.mxu3  ;;  %v3085_v34 = vadd.f32 %v3084_v32, %v3012_v2  ;;  %v3227_v41 = vpop.f32.mrf.mxu0  ;;  %v4111_v2 = vld [vmem:[%s7938_s3 + $0x1a4] sm:$0xf0] }
 0x2ca   :  { %v3153_v38 = vadd.f32 %v3152_v14, %v3080_v47  ;;  %v3018_v3 = vpop.f32.mrf.mxu1  ;;  %v4114_v55 = vor.u32 %v4690_v0, %v4111_v2 }
 0x2cb   :  { %v3019_v5 = vadd.f32 %v3018_v3, %v2946_v22 }
 0x2cc   :  { %v7645_v6 = vadd.f32 %v3225_v13, %v3153_v38  ;;  %v4181_v13 = vld [vmem:[%s7938_s3 + $0x210] sm:$0xf] }
 0x2cd   :  { %v4182_v62 = vor.u32 %v4712_v57, %v4181_v13 }
 0x2d0   :  { %v3086_v47 = vpop.f32.mrf.mxu2 }
 0x2d1   :  { %v3154_v29 = vpop.f32.mrf.mxu3  ;;  %v3087_v53 = vadd.f32 %v3086_v47, %v3014_v11  ;;  %v3230_v21 = vpop.f32.mrf.mxu0 }
 0x2d2   :  { %v3155_v24 = vadd.f32 %v3154_v29, %v3082_v8  ;;  %v3021_v39 = vpop.f32.mrf.mxu1  ;;  %v4704_v8 = vld [vmem:[%s7938_s3 + $0x1f0] sm:$0xf0] }
 0x2d3   :  { %v3022_v43 = vadd.f32 %v3021_v39, %v2949_v44  ;;  %v4154_v22 = vor.u32 %v4704_v8, %v4153_v16  ;;  %v4721_v39 = vld [vmem:[%s7938_s3 + $0x278] sm:$0xf0] }
 0x2d4   :  { %4620 = vmatmul.msk.bf16.gmra.mxu0 %vm2839_vm0, %v4118_v37  ;;  %v7674_v59 = vadd.f32 %v3227_v41, %v3155_v24  ;;  %3287 = vmatmul.bf16.gmra.mxu1 %v4178_v58  ;;  %v4713_v58 = vld [vmem:[%s7938_s3 + $0x238] sm:$0xf0]  ;;  %v4247_v24 = vld [vmem:[%s7938_s3 + $0x2bc] sm:$0xf0] }
 0x2d5   :  { %3355 = vmatmul.bf16.gmra.mxu2 %v4146_v42  ;;  %v4183_v42 = vld [vmem:[%s7938_s3 + $0x234] sm:$0xf0] }
 0x2d6   :  { %3423 = vmatmul.bf16.gmra.mxu3 %v4114_v55 }
 0x2d8   :  { %v3089_v50 = vpop.f32.mrf.mxu2 }
 0x2d9   :  { %v3157_v52 = vpop.f32.mrf.mxu3  ;;  %v3090_v12 = vadd.f32 %v3089_v50, %v3017_v63  ;;  %v3232_v31 = vpop.f32.mrf.mxu0  ;;  %v4147_v63 = vld [vmem:[%s7938_s3 + $0x1ec] sm:$0xf0] }
 0x2da   :  { %v3158_v49 = vadd.f32 %v3157_v52, %v3085_v34  ;;  %v3023_v15 = vpop.f32.mrf.mxu1  ;;  %v4214_v34 = vor.u32 %v4716_v54, %v4211_v48  ;;  %v4150_v9 = vor.u32 %v4699_v35, %v4147_v63 }
 0x2dc   :  { %v7676_v11 = vadd.f32 %v3230_v21, %v3158_v49  ;;  %v4708_v21 = vld [vmem:[%s7938_s3 + $0x214] sm:$0xf] }
 0x2dd   :  { %v4186_v16 = vor.u32 %v4708_v21, %v4183_v42 }
 0x2e0   :  { %v3091_v32 = vpop.f32.mrf.mxu2 }
 0x2e1   :  { %v3159_v14 = vpop.f32.mrf.mxu3  ;;  %v3092_v38 = vadd.f32 %v3091_v32, %v3019_v5  ;;  %v3235_v41 = vpop.f32.mrf.mxu0  ;;  %v4225_v32 = vld [vmem:[%s7938_s3 + $0x260] sm:$0xf] }
 0x2e2   :  { %v3160_v3 = vadd.f32 %v3159_v14, %v3087_v53  ;;  %v3253_v30 = vpop.f32.mrf.mxu1  ;;  %v4725_v53 = vld [vmem:[%s7938_s3 + $0x29c] sm:$0xf]  ;;  %v4722_v14 = vld [vmem:[%s7938_s3 + $0x280] sm:$0xf0] }
 0x2e3   :  { %v3254_v20 = vadd.f32 %v3253_v30, %v7361_v25  ;;  %v4189_v25 = vld [vmem:[%s7938_s3 + $0x218] sm:$0xf]  ;;  %v4250_v52 = vor.u32 %v4725_v53, %v4247_v24  ;;  %v4717_v30 = vld [vmem:[%s7938_s3 + $0x25c] sm:$0xf] }
 0x2e4   :  { %4621 = vmatmul.msk.bf16.gmra.mxu0 %vm2839_vm0, %v4154_v22  ;;  %v7704_v56 = vadd.f32 %v3232_v31, %v3160_v3  ;;  %3292 = vmatmul.bf16.gmra.mxu1 %v4214_v34  ;;  %v4190_v55 = vor.u32 %v4713_v58, %v4189_v25  ;;  %v4734_v34 = vld [vmem:[%s7938_s3 + $0x2e4] sm:$0xf]  ;;  %v4253_v3 = vld [vmem:[%s7938_s3 + $0x2a0] sm:$0xf] }
 0x2e5   :  { %3360 = vmatmul.bf16.gmra.mxu2 %v4182_v62  ;;  %v4219_v62 = vld [vmem:[%s7938_s3 + $0x27c] sm:$0xf0] }
 0x2e6   :  { %3428 = vmatmul.bf16.gmra.mxu3 %v4150_v9  ;;  %v4226_v9 = vor.u32 %v4722_v14, %v4225_v32  ;;  %v4222_v58 = vor.u32 %v4717_v30, %v4219_v62 }
 0x2e8   :  { %v3094_v19 = vpop.f32.mrf.mxu2 }
 0x2e9   :  { %v3162_v0 = vpop.f32.mrf.mxu3  ;;  %v3095_v2 = vadd.f32 %v3094_v19, %v3022_v43  ;;  %v3237_v44 = vpop.f32.mrf.mxu0 }
 0x2ea   :  { %v3163_v37 = vadd.f32 %v3162_v0, %v3090_v12  ;;  %v3255_v5 = vpop.f32.mrf.mxu1 }
 0x2eb   :  { %v3256_v47 = vadd.f32 %v3255_v5, %v7392_v10  ;;  %v4217_v10 = vld [vmem:[%s7938_s3 + $0x258] sm:$0xf] }
 0x2ec   :  { %v7707_v29 = vadd.f32 %v3235_v41, %v3163_v37  ;;  %v4218_v31 = vor.u32 %v4721_v39, %v4217_v10  ;;  %v4730_v41 = vld [vmem:[%s7938_s3 + $0x2c0] sm:$0xf0] }
 0x2ed   :  { %v4254_v25 = vor.u32 %v4730_v41, %v4253_v3 }
 0x2f0   :  { %v3096_v43 = vpop.f32.mrf.mxu2 }
 0x2f1   :  { %v3164_v50 = vpop.f32.mrf.mxu3  ;;  %v3240_v49 = vpop.f32.mrf.mxu0 }
 0x2f2   :  { %v3165_v12 = vadd.f32 %v3164_v50, %v3092_v38  ;;  %v7733_v15 = vpop.f32.mrf.mxu1  ;;  %v4283_v38 = vld [vmem:[%s7938_s3 + $0x304] sm:$0xf0]  ;;  %v4743_v50 = vld [vmem:[%s7938_s3 + $0x32c] sm:$0xf] }
 0x2f3   :  { %v3259_v41 = vadd.f32 %v7733_v15, %v7399_v46  ;;  %v2194_v46 = vunpack.c.h.b16 %v7463_v18  ;;  %v4297_v15 = vld [vmem:[%s7938_s3 + $0x2f0] sm:$0xf]  ;;  %v4735_v18 = vld [vmem:[%s7938_s3 + $0x2ec] sm:$0xf] }
 0x2f4   :  { %4622 = vmatmul.msk.bf16.gmra.mxu0 %vm2839_vm0, %v4190_v55  ;;  %v7736_v8 = vadd.f32 %v3237_v44, %v3165_v12  ;;  %3297 = vmatmul.bf16.gmra.mxu1 %v4250_v52  ;;  %v4319_v52 = vld [vmem:[%s7938_s3 + $0x34c] sm:$0xf0]  ;;  %v4739_v12 = vld [vmem:[%s7938_s3 + $0x308] sm:$0xf0] }
 0x2f5   :  { %3365 = vmatmul.bf16.gmra.mxu2 %v4218_v31  ;;  %v4255_v31 = vld [vmem:[%s7938_s3 + $0x2c4] sm:$0xf0] }
 0x2f6   :  { %3433 = vmatmul.bf16.gmra.mxu3 %v4186_v16 }
 0x2f8   :  { %v3326_v48 = vpop.f32.mrf.mxu2 }
 0x2f9   :  { %v3167_v54 = vpop.f32.mrf.mxu3  ;;  %v3327_v57 = vadd.f32 %v3326_v48, %v3254_v20  ;;  %v3242_v35 = vpop.f32.mrf.mxu0  ;;  %v3565_v20 = vld [vmem:[%s7941_s6] sm:$0xff] }
 0x2fa   :  { %v3168_v13 = vadd.f32 %v3167_v54, %v3095_v2  ;;  %v7738_v63 = vpop.f32.mrf.mxu1  ;;  %v4286_v2 = vor.u32 %v4734_v34, %v4283_v38  ;;  %3569 = vperm.xlu1 %4985, %v3565_v20  }
 0x2fc   :  { %v7740_v22 = vadd.f32 %v3240_v49, %v3168_v13  ;;  %v4726_v49 = vld [vmem:[%s7938_s3 + $0x2a4] sm:$0xf]  ;;  %v4322_v13 = vor.u32 %v4743_v50, %v4319_v52 }
 0x2fd   :  { %v4258_v34 = vor.u32 %v4726_v49, %v4255_v31 }
 0x300   :  { %v3328_v0 = vpop.f32.mrf.mxu2 }
 0x301   :  { %v3169_v19 = vpop.f32.mrf.mxu3  ;;  %v3329_v37 = vadd.f32 %v3328_v0, %v3256_v47  ;;  %v3472_v5 = vpop.f32.mrf.mxu0  ;;  %v4261_v47 = vld [vmem:[%s7938_s3 + $0x2a8] sm:$0xf] }
 0x302   :  { %v3263_v44 = vpop.f32.mrf.mxu1 }
 0x303   :  { %v3264_v53 = vadd.f32 %v3263_v44, %v7433_v23  ;;  %v4731_v23 = vld [vmem:[%s7938_s3 + $0x2c8] sm:$0xf0] }
 0x304   :  { %4623 = vmatmul.msk.bf16.gmra.mxu0 %vm2839_vm0, %v4226_v9  ;;  %3302 = vmatmul.bf16.gmra.mxu1 %v4286_v2  ;;  %v4262_v16 = vor.u32 %v4731_v23, %v4261_v47 }
 0x305   :  { %3370 = vmatmul.bf16.gmra.mxu2 %v4254_v25  ;;  %v3261_v25 = vadd.f32 %v7738_v63, %v7425_v61  ;;  %v2311_v63 = vpack.c.b16 %v2194_v46, %v2194_v46 }
 0x306   :  { %3438 = vmatmul.bf16.gmra.mxu3 %v4222_v58  ;;  %v4748_v58 = vld [vmem:[%s7938_s3 + $0x350] sm:$0xf0] }
 0x308   :  { %v3331_v24 = vpop.f32.mrf.mxu2 }
 0x309   :  { %v3399_v10 = vpop.f32.mrf.mxu3  ;;  %v3474_v42 = vpop.f32.mrf.mxu0  ;;  %v3332_v30 = vadd.f32 %v3331_v24, %v3259_v41 }
 0x30a   :  { %v3400_v39 = vadd.f32 %v3399_v10, %v3327_v57  ;;  %v3265_v21 = vpop.f32.mrf.mxu1 }
 0x30b   :  { %v3266_v55 = vadd.f32 %v3265_v21, %v7456_v33  ;;  %v4289_v33 = vld [vmem:[%s7938_s3 + $0x2e8] sm:$0xf] }
 0x30c   :  { %v7772_v43 = vadd.f32 %v3472_v5, %v3400_v39  ;;  %v4290_v14 = vor.u32 %v4739_v12, %v4289_v33  ;;  %v4740_v5 = vld [vmem:[%s7938_s3 + $0x310] sm:$0xf0] }
 0x30d   :  { %v4298_v10 = vor.u32 %v4740_v5, %v4297_v15 }
 0x310   :  { %v3333_v54 = vpop.f32.mrf.mxu2 }
 0x311   :  { %v3401_v48 = vpop.f32.mrf.mxu3  ;;  %v3477_v32 = vpop.f32.mrf.mxu0  ;;  %v3334_v24 = vadd.f32 %v3333_v54, %v3261_v25  ;;  %v1557_v25 = vld [vmem:[%s7938_s3 + $0x380] sm:$0xf] }
 0x312   :  { %v3402_v57 = vadd.f32 %v3401_v48, %v3329_v37  ;;  %v3268_v35 = vpop.f32.mrf.mxu1 }
 0x313   :  { %v3269_v38 = vadd.f32 %v3268_v35, %v7467_v36  ;;  %v3566_v36 = vld [vmem:[%s7941_s6 + $0x8] sm:$0x3]  ;;  %v4333_v35 = vld [vmem:[%s7938_s3 + $0x338] sm:$0xf] }
 0x314   :  { %v7799_v3 = vadd.f32 %v3474_v42, %v3402_v57  ;;  %4624 = vmatmul.msk.bf16.gmra.mxu0 %vm2839_vm0, %v4262_v16  ;;  %3307 = vmatmul.bf16.gmra.mxu1 %v4322_v13  ;;  %v1556_v57 = vld [vmem:[%s7938_s3 + $0x378] sm:$0xff] }
 0x315   :  { %3375 = vmatmul.bf16.gmra.mxu2 %v4290_v14  ;;  %3574 = vperm.xlu2 %4986, %v3566_v36   ;;  %v2195_v14 = vunpack.c.l.b16 %v1556_v57 }
 0x316   :  { %3443 = vmatmul.bf16.gmra.mxu3 %v4258_v34  ;;  %v4744_v34 = vld [vmem:[%s7938_s3 + $0x334] sm:$0xf] }
 0x318   :  { %v3336_v62 = vpop.f32.mrf.mxu2 }
 0x319   :  { %v3404_v9 = vpop.f32.mrf.mxu3  ;;  %v3337_v20 = vadd.f32 %v3336_v62, %v3264_v53  ;;  %v3479_v2 = vpop.f32.mrf.mxu0  ;;  %v4291_v53 = vld [vmem:[%s7938_s3 + $0x30c] sm:$0xf0] }
 0x31a   :  { %v3405_v19 = vadd.f32 %v3404_v9, %v3332_v30  ;;  %v3270_v0 = vpop.f32.mrf.mxu1  ;;  %v4294_v52 = vor.u32 %v4735_v18, %v4291_v53 }
 0x31b   :  { %v3271_v37 = vadd.f32 %v3270_v0, %v7483_v28  ;;  %v4325_v28 = vld [vmem:[%s7938_s3 + $0x330] sm:$0xf]  ;;  %v2312_v0 = vpack.c.b16 %v2195_v14, %v2195_v14 }
 0x31c   :  { %v7808_v44 = vadd.f32 %v3477_v32, %v3405_v19  ;;  %v4326_v50 = vor.u32 %v4748_v58, %v4325_v28  ;;  %v4749_v32 = vld [vmem:[%s7938_s3 + $0x358] sm:$0xf0] }
 0x320   :  { %v3338_v39 = vpop.f32.mrf.mxu2 }
 0x321   :  { %v3406_v61 = vpop.f32.mrf.mxu3  ;;  %v3339_v21 = vadd.f32 %v3338_v39, %v3266_v55  ;;  %v3482_v23 = vpop.f32.mrf.mxu0 }
 0x322   :  { %v3407_v42 = vadd.f32 %v3406_v61, %v3334_v24  ;;  %v3273_v47 = vpop.f32.mrf.mxu1  ;;  %v2197_v24 = vunpack.c.l.b16 %v1557_v25 }
 0x323   :  { %v3274_v33 = vadd.f32 %v3273_v47, %v7487_v60 }
 0x324   :  { %v7832_v12 = vadd.f32 %v3479_v2, %v3407_v42  ;;  %4625 = vmatmul.msk.bf16.gmra.mxu0 %vm2839_vm0, %v4298_v10  ;;  %3312 = vmatmul.bf16.gmra.mxu1 %v2311_v63  ;;  %v2196_v10 = vunpack.c.h.b16 %v1556_v57  ;;  %v2314_v39 = vpack.c.b16 %v2197_v24, %v2197_v24 }
 0x325   :  { %3380 = vmatmul.bf16.gmra.mxu2 %v4326_v50 }
 0x326   :  { %3448 = vmatmul.bf16.gmra.mxu3 %v4294_v52  ;;  %v2313_v50 = vpack.c.b16 %v2196_v10, %v2196_v10 }
 0x328   :  { %v3341_v49 = vpop.f32.mrf.mxu2 }
 0x329   :  { %v3409_v31 = vpop.f32.mrf.mxu3  ;;  %v3342_v16 = vadd.f32 %v3341_v49, %v3269_v38  ;;  %v3484_v55 = vpop.f32.mrf.mxu0  ;;  %v4334_v38 = vor.u32 %v4749_v32, %v4333_v35 }
 0x32a   :  { %v3410_v54 = vadd.f32 %v3409_v31, %v3337_v20  ;;  %v3275_v48 = vpop.f32.mrf.mxu1 }
 0x32b   :  { %v3276_v13 = vadd.f32 %v3275_v48, %v7516_v4  ;;  %v4327_v4 = vld [vmem:[%s7938_s3 + $0x354] sm:$0xf0] }
 0x32c   :  { %v7839_v60 = vadd.f32 %v3482_v23, %v3410_v54  ;;  %v4330_v2 = vor.u32 %v4744_v34, %v4327_v4 }
 0x330   :  { %v3343_v41 = vpop.f32.mrf.mxu2 }
 0x331   :  { %v3411_v30 = vpop.f32.mrf.mxu3  ;;  %v3344_v62 = vadd.f32 %v3343_v41, %v3271_v37  ;;  %v3487_v19 = vpop.f32.mrf.mxu0 }
 0x332   :  { %v3412_v9 = vadd.f32 %v3411_v30, %v3339_v21  ;;  %v3278_v20 = vpop.f32.mrf.mxu1 }
 0x333   :  { %v3279_v36 = vadd.f32 %v3278_v20, %v7520_v27 }
 0x334   :  { %v7854_v46 = vadd.f32 %v3484_v55, %v3412_v9  ;;  %4626 = vmatmul.msk.bf16.gmra.mxu0 %vm2839_vm0, %v4334_v38 }
 0x335   :  { %3385 = vmatmul.bf16.gmra.mxu2 %v2312_v0 }
 0x336   :  { %3453 = vmatmul.bf16.gmra.mxu3 %v4330_v2 }
 0x338   :  { %v3346_v15 = vpop.f32.mrf.mxu2 }
 0x339   :  { %v3414_v5 = vpop.f32.mrf.mxu3  ;;  %v3347_v37 = vadd.f32 %v3346_v15, %v3274_v33  ;;  %v3489_v18 = vpop.f32.mrf.mxu0 }
 0x33a   :  { %v3415_v28 = vadd.f32 %v3414_v5, %v3342_v16  ;;  %v3280_v58 = vpop.f32.mrf.mxu1 }
 0x33b   :  { %v7861_v53 = vadd.f32 %v3280_v58, %v7548_v40 }
 0x33c   :  { %v7863_v27 = vadd.f32 %v3487_v19, %v3415_v28 }
 0x340   :  { %v3348_v61 = vpop.f32.mrf.mxu2 }
 0x341   :  { %v3416_v63 = vpop.f32.mrf.mxu3  ;;  %v3349_v21 = vadd.f32 %v3348_v61, %v3276_v13  ;;  %v3492_v23 = vpop.f32.mrf.mxu0 }
 0x342   :  { %v3417_v42 = vadd.f32 %v3416_v63, %v3344_v62  ;;  %v3283_v47 = vpop.f32.mrf.mxu1 }
 0x343   :  { %v3284_v52 = vadd.f32 %v3283_v47, %v7551_v7 }
 0x344   :  { %v7866_v33 = vadd.f32 %v3489_v18, %v3417_v42  ;;  %4627 = vmatmul.msk.bf16.gmra.mxu0 %vm2839_vm0, %v2314_v39 }
 0x346   :  { %3458 = vmatmul.bf16.gmra.mxu3 %v2313_v50 }
 0x348   :  { %v3351_v40 = vpop.f32.mrf.mxu2 }
 0x349   :  { %v3419_v49 = vpop.f32.mrf.mxu3  ;;  %v3352_v31 = vadd.f32 %v3351_v40, %v3279_v36  ;;  %v3494_v48 = vpop.f32.mrf.mxu0 }
 0x34a   :  { %v3420_v16 = vadd.f32 %v3419_v49, %v3347_v37  ;;  %v3285_v54 = vpop.f32.mrf.mxu1 }
 0x34b   :  { %v3286_v42 = vadd.f32 %v3285_v54, %v7579_v1 }
 0x34c   :  { %v7869_v55 = vadd.f32 %v3492_v23, %v3420_v16 }
 0x350   :  { %v3353_v13 = vpop.f32.mrf.mxu2 }
 0x351   :  { %v3421_v57 = vpop.f32.mrf.mxu3  ;;  %v7871_v14 = vpop.f32.mrf.mxu0 }
 0x352   :  { %v3422_v35 = vadd.f32 %v3421_v57, %v3349_v21  ;;  %v3288_v32 = vpop.f32.mrf.mxu1 }
 0x354   :  { %v7873_v7 = vadd.f32 %v3494_v48, %v3422_v35 }
 0x358   :  { %v3356_v34 = vpop.f32.mrf.mxu2 }
 0x359   :  { %v3424_v4 = vpop.f32.mrf.mxu3  ;;  %v3499_v41 = vpop.f32.mrf.mxu0 }
 0x35a   :  { %v3290_v38 = vpop.f32.mrf.mxu1 }
 0x35b   :  { %v3291_v47 = vadd.f32 %v3290_v38, %v7610_v45 }
 0x360   :  { %v3358_v30 = vpop.f32.mrf.mxu2 }
 0x361   :  { %v3426_v62 = vpop.f32.mrf.mxu3  ;;  %v3502_v20 = vpop.f32.mrf.mxu0  ;;  %v3359_v23 = vadd.f32 %v3358_v30, %v3286_v42 }
 0x362   :  { %v3293_v9 = vpop.f32.mrf.mxu1 }
 0x363   :  { %v3294_v19 = vadd.f32 %v3293_v9, %v7613_v26  ;;  %v3289_v26 = vadd.f32 %v3288_v32, %v7582_v17  ;;  %v3354_v17 = vadd.f32 %v3353_v13, %v7861_v53 }
 0x365   :  { %v3427_v32 = vadd.f32 %v3426_v62, %v3354_v17 }
 0x368   :  { %v3361_v0 = vpop.f32.mrf.mxu2 }
 0x369   :  { %v3429_v2 = vpop.f32.mrf.mxu3  ;;  %v3504_v15 = vpop.f32.mrf.mxu0 }
 0x36a   :  { %v3295_v36 = vpop.f32.mrf.mxu1 }
 0x36b   :  { %v3296_v5 = vadd.f32 %v3295_v36, %v7641_v51  ;;  %v3362_v51 = vadd.f32 %v3361_v0, %v3289_v26  ;;  %v3425_v0 = vadd.f32 %v3424_v4, %v3352_v31  ;;  %v3542_v26 = vmax.f32 %v7863_v27, 0.0 }
 0x36d   :  { %v3498_v13 = vadd.f32 %v7871_v14, %v3425_v0  ;;  %v3544_v14 = vmax.f32 %v7869_v55, 0.0 }
 0x36f   :  { %v3546_v4 = vmax.f32 %v3498_v13, 0.0 }
 0x370   :  { %v3363_v25 = vpop.f32.mrf.mxu2 }
 0x371   :  { %v3431_v37 = vpop.f32.mrf.mxu3  ;;  %v3507_v58 = vpop.f32.mrf.mxu0  ;;  %v3364_v50 = vadd.f32 %v3363_v25, %v3291_v47 }
 0x372   :  { %v3298_v28 = vpop.f32.mrf.mxu1  ;;  %v3432_v48 = vadd.f32 %v3431_v37, %v3359_v23 }
 0x373   :  { %v3299_v18 = vadd.f32 %v3298_v28, %v7645_v6  ;;  %v3357_v6 = vadd.f32 %v3356_v34, %v3284_v52 }
 0x374   :  { %v3505_v38 = vadd.f32 %v3504_v15, %v3432_v48  ;;  %v3545_v15 = vmax.f32 %v7873_v7, 0.0  ;;  %v3541_v7 = vmax.f32 %v7854_v46, 0.0  ;;  %v3536_v48 = vmax.f32 %v7772_v43, 0.0 }
 0x375   :  { %v3430_v1 = vadd.f32 %v3429_v2, %v3357_v6  ;;  %v3537_v6 = vmax.f32 %v7799_v3, 0.0 }
 0x376   :  { %v3549_v37 = vmax.f32 %v3505_v38, 0.0 }
 0x377   :  { %v3503_v36 = vadd.f32 %v3502_v20, %v3430_v1 }
 0x378   :  { %v3366_v24 = vpop.f32.mrf.mxu2 }
 0x379   :  { %v3434_v10 = vpop.f32.mrf.mxu3  ;;  %v3367_v39 = vadd.f32 %v3366_v24, %v3294_v19  ;;  %v3509_v63 = vpop.f32.mrf.mxu0  ;;  %v3548_v62 = vmax.f32 %v3503_v36, 0.0 }
 0x37a   :  { %v3300_v61 = vpop.f32.mrf.mxu1  ;;  %v3435_v40 = vadd.f32 %v3434_v10, %v3362_v51 }
 0x37b   :  { %v3301_v21 = vadd.f32 %v3300_v61, %v7674_v59 }
 0x37c   :  { %v3508_v54 = vadd.f32 %v3507_v58, %v3435_v40  ;;  %v3539_v40 = vmax.f32 %v7832_v12, 0.0 }
 0x37e   :  { %v3550_v25 = vmax.f32 %v3508_v54, 0.0 }
 0x380   :  { %v3368_v49 = vpop.f32.mrf.mxu2 }
 0x381   :  { %v3436_v16 = vpop.f32.mrf.mxu3  ;;  %v3369_v57 = vadd.f32 %v3368_v49, %v3296_v5  ;;  %v3512_v19 = vpop.f32.mrf.mxu0  ;;  %v3500_v5 = vadd.f32 %v3499_v41, %v3427_v32 }
 0x382   :  { %v3437_v35 = vadd.f32 %v3436_v16, %v3364_v50  ;;  %v3303_v9 = vpop.f32.mrf.mxu1  ;;  %v3540_v50 = vmax.f32 %v7839_v60, 0.0  ;;  %v3561_v60 = vld [vmem:[%s7940_s5] sm:$0xff] }
 0x383   :  { %v7883_v59 = vadd.f32 %v3303_v9, %v7676_v11  ;;  %v3547_v31 = vmax.f32 %v3500_v5, 0.0  ;;  %v3563_v9 = vld [vmem:[%s7940_s5 + $0x10] sm:$0x3] }
 0x384   :  { %v3510_v45 = vadd.f32 %v3509_v63, %v3437_v35  ;;  %v3543_v63 = vmax.f32 %v7866_v33, 0.0  ;;  %v3538_v33 = vmax.f32 %v7808_v44, 0.0 }
 0x386   :  { %v3551_v30 = vmax.f32 %v3510_v45, 0.0 }
 0x388   :  { %3584 = vmatpush.msrb.mxu1 %v3551_v30  ;;  %v3371_v52 = vpop.f32.mrf.mxu2 }
 0x389   :  { %v3439_v34 = vpop.f32.mrf.mxu3  ;;  %v3372_v28 = vadd.f32 %v3371_v52, %v3299_v18  ;;  %v3514_v10 = vpop.f32.mrf.mxu0 }
 0x38a   :  { %v3440_v24 = vadd.f32 %v3439_v34, %v3367_v39  ;;  %3585 = vmatpush.msrb.mxu1 %v3550_v25  ;;  %v3305_v11 = vpop.f32.mrf.mxu1 }
 0x38b   :  { %v7887_v53 = vadd.f32 %v3305_v11, %v7704_v56 }
 0x38c   :  { %v7890_v2 = vadd.f32 %v3512_v19, %v3440_v24  ;;  %3586 = vmatpush.msrb.mxu1 %v3549_v37 }
 0x38e   :  { %3587 = vmatpush.msrb.mxu1 %v3548_v62 }
 0x390   :  { %3588 = vmatpush.msrb.mxu1 %v3547_v31  ;;  %v3373_v41 = vpop.f32.mrf.mxu2 }
 0x391   :  { %v3441_v20 = vpop.f32.mrf.mxu3  ;;  %v7893_v58 = vadd.f32 %v3373_v41, %v3301_v21  ;;  %v3517_v39 = vpop.f32.mrf.mxu0 }
 0x392   :  { %v3442_v18 = vadd.f32 %v3441_v20, %v3369_v57  ;;  %3589 = vmatpush.msrb.mxu1 %v3546_v4  ;;  %v3308_v56 = vpop.f32.mrf.mxu1 }
 0x393   :  { %v3309_v0 = vadd.f32 %v3308_v56, %v7707_v29 }
 0x394   :  { %v7896_v61 = vadd.f32 %v3514_v10, %v3442_v18  ;;  %3590 = vmatpush.msrb.mxu1 %v3545_v15 }
 0x396   :  { %3591 = vmatpush.msrb.mxu1 %v3544_v14 }
 0x398   :  { %3592 = vmatpush.msrb.mxu1 %v3543_v63  ;;  %v3376_v42 = vpop.f32.mrf.mxu2 }
 0x399   :  { %v3444_v47 = vpop.f32.mrf.mxu3  ;;  %v3519_v23 = vpop.f32.mrf.mxu0  ;;  %v3377_v13 = vadd.f32 %v3376_v42, %v7883_v59  ;;  %v3553_v42 = vmax.f32 %v7896_v61, 0.0 }
 0x39a   :  { %v3445_v21 = vadd.f32 %v3444_v47, %v3372_v28  ;;  %3593 = vmatpush.msrb.mxu1 %v3542_v26  ;;  %v3310_v51 = vpop.f32.mrf.mxu1  ;;  %v3562_v47 = vld [vmem:[%s7940_s5 + $0x8] sm:$0xff] }
 0x39b   :  { %v3311_v30 = vadd.f32 %v3310_v51, %v7736_v8  ;;  %v3570_v51 = vpop.permute.xlu1 %3569 }
 0x39c   :  { %v7902_v55 = vadd.f32 %v3517_v39, %v3445_v21  ;;  %3594 = vmatpush.msrb.mxu1 %v3541_v7  ;;  %v3564_v7 = vld [vmem:[%s7940_s5 + $0x18] sm:$0x3] }
 0x39e   :  { %3595 = vmatpush.msrb.mxu1 %v3540_v50  ;;  %v3554_v26 = vmax.f32 %v7902_v55, 0.0  ;;  %v3575_v55 = vpop.permute.xlu2 %3574 }
 0x3a0   :  { %3596 = vmatpush.msrb.mxu1 %v3539_v40  ;;  %v3378_v27 = vpop.f32.mrf.mxu2 }
 0x3a1   :  { %v3446_v49 = vpop.f32.mrf.mxu3  ;;  %v3522_v46 = vpop.f32.mrf.mxu0  ;;  %v3379_v28 = vadd.f32 %v3378_v27, %v7887_v53 }
 0x3a2   :  { %3597 = vmatpush.msrb.mxu1 %v3538_v33  ;;  %v3313_v16 = vpop.f32.mrf.mxu1 }
 0x3a3   :  { %v3314_v36 = vadd.f32 %v3313_v16, %v7740_v22  ;;  %v3447_v22 = vadd.f32 %v3446_v49, %v7893_v58  ;;  %v3552_v58 = vmax.f32 %v7890_v2, 0.0 }
 0x3a4   :  { %3598 = vmatpush.msrb.mxu1 %v3537_v6 }
 0x3a5   :  { %v3520_v53 = vadd.f32 %v3519_v23, %v3447_v22 }
 0x3a6   :  { %3599 = vmatpush.msrb.mxu1 %v3536_v48 }
 0x3a7   :  { %3600 = vmatmul.f32.vlgmr.msrb.gmra.mxu1 %v3561_v60  ;;  %v3555_v59 = vmax.f32 %v3520_v53, 0.0 }
 0x3a8   :  { %v3381_v12 = vpop.f32.mrf.mxu2 }
 0x3a9   :  { %v3449_v57 = vpop.f32.mrf.mxu3  ;;  %v3524_v44 = vpop.f32.mrf.mxu0  ;;  %v3382_v52 = vadd.f32 %v3381_v12, %v3309_v0 }
 0x3aa   :  { %v3315_v35 = vpop.f32.mrf.mxu1  ;;  %v3450_v8 = vadd.f32 %v3449_v57, %v3377_v13 }
 0x3ac   :  { %v3523_v56 = vadd.f32 %v3522_v46, %v3450_v8 }
 0x3ae   :  { %v3556_v63 = vmax.f32 %v3523_v56, 0.0 }
 0x3af   :  { %3603 = vmatmul.f32.gmra.mxu1 %v3563_v9 }
 0x3b0   :  { %v3383_v19 = vpop.f32.mrf.mxu2 }
 0x3b1   :  { %v3451_v3 = vpop.f32.mrf.mxu3  ;;  %v3527_v17 = vpop.f32.mrf.mxu0  ;;  %v3384_v25 = vadd.f32 %v3383_v19, %v3311_v30 }
 0x3b2   :  { %v3452_v62 = vadd.f32 %v3451_v3, %v3379_v28 }
 0x3b4   :  { %v3525_v20 = vadd.f32 %v3524_v44, %v3452_v62 }
 0x3b6   :  { %v3557_v14 = vmax.f32 %v3525_v20, 0.0 }
 0x3b8   :  { %v3386_v43 = vpop.f32.mrf.mxu2 }
 0x3b9   :  { %v3454_v1 = vpop.f32.mrf.mxu3  ;;  %v3529_v54 = vpop.f32.mrf.mxu0  ;;  %v3387_v34 = vadd.f32 %v3386_v43, %v3314_v36 }
 0x3ba   :  { %v3455_v24 = vadd.f32 %v3454_v1, %v3382_v52 }
 0x3bc   :  { %v3528_v41 = vadd.f32 %v3527_v17, %v3455_v24 }
 0x3be   :  { %v3558_v39 = vmax.f32 %v3528_v41, 0.0 }
 0x3c0   :  { %v3388_v32 = vpop.f32.mrf.mxu2 }
 0x3c1   :  { %v3456_v45 = vpop.f32.mrf.mxu3  ;;  %v3532_v38 = vpop.f32.mrf.mxu0 }
 0x3c2   :  { %v3457_v5 = vadd.f32 %v3456_v45, %v3384_v25 }
 0x3c4   :  { %v3530_v31 = vadd.f32 %v3529_v54, %v3457_v5 }
 0x3c6   :  { %v3559_v15 = vmax.f32 %v3530_v31, 0.0 }
 0x3c9   :  { %v3459_v37 = vpop.f32.mrf.mxu3  ;;  %v3534_v10 = vpop.f32.mrf.mxu0 }
 0x3ca   :  { %v3460_v11 = vadd.f32 %v3459_v37, %v3387_v34 }
 0x3cc   :  { %v3533_v4 = vadd.f32 %v3532_v38, %v3460_v11 }
 0x3ce   :  { %v3560_v29 = vmax.f32 %v3533_v4, 0.0 }
 0x3d0   :  { %3614 = vmatpush.msrb.mxu2 %v3560_v29 }
 0x3d1   :  { %v3461_v18 = vpop.f32.mrf.mxu3 }
 0x3d2   :  { %3615 = vmatpush.msrb.mxu2 %v3559_v15 }
 0x3d4   :  { %3616 = vmatpush.msrb.mxu2 %v3558_v39 }
 0x3d6   :  { %3617 = vmatpush.msrb.mxu2 %v3557_v14 }
 0x3d8   :  { %3618 = vmatpush.msrb.mxu2 %v3556_v63 }
 0x3da   :  { %3619 = vmatpush.msrb.mxu2 %v3555_v59 }
 0x3dc   :  { %3620 = vmatpush.msrb.mxu2 %v3554_v26 }
 0x3de   :  { %3621 = vmatpush.msrb.mxu2 %v3553_v42 }
 0x3e0   :  { %3622 = vmatpush.msrb.mxu2 %v3552_v58 }
 0x3e1   :  { %4628 = vmatmul.msk.f32.vlgmr.msrb.gmra.mxu2 %vm3577_vm1, %v3562_v47 }
 0x3e9   :  { %4629 = vmatmul.msk.f32.gmra.mxu2 %vm3577_vm1, %v3564_v7 }
 0x424   :  { %v3601_v21 = vpop.f32.mrf.mxu1 }
 0x425   :  { %v3602_v23 = vadd.f32 %v3601_v21, %v3570_v51 }
 0x42c   :  { %v3604_v2 = vpop.f32.mrf.mxu1 }
 0x42d   :  { %v3605_v40 = vadd.f32 %v3604_v2, %v3575_v55 }
 0x464   :  { %v3624_v61 = vpop.f32.mrf.mxu2 }
 0x465   :  { %v3625_v50 = vadd.f32 %v3624_v61, %v3602_v23 }
 0x467   :  { %3630 = vst [vmem:[%s7942_s7] sm:$0xff] %v3625_v50 }
 0x46c   :  { %v3627_v33 = vpop.f32.mrf.mxu2 }
 0x46d   :  { %v3628_v27 = vadd.f32 %v3627_v33, %v3605_v40 }
 0x46f   :  { %3631 = vst [vmem:[%s7942_s7 + $0x8] sm:$0x3] %v3628_v27 }
 0x470   :  { %3636 = vsyncpa [#allocation4], 1 }
 0x471   :  { %3637 = vsyncpa [#allocation6], 1 }

</bundles_post_ra>
